<compile_context>
chip_gen: v5e
topology: v5e:2x2
jax: 0.10.0
libtpu: 0.0.40
codegen_flags: <defaults>
</compile_context>

<pallas_src>
import functools

import jax
import jax.numpy as jnp
import numpy as np
from jax.experimental import pallas as pl
from jax.experimental.pallas import tpu as pltpu

LN_EPS = 1e-5
NEG_INF = -1e9  # finite stand-in for -inf; exp() underflows to exactly 0 after max-sub


# ---------------------------------------------------------------------------
# shared math helper
# ---------------------------------------------------------------------------
def _layer_norm(x, g, b):
    mu = jnp.mean(x, axis=-1, keepdims=True)
    var = jnp.mean((x - mu) ** 2, axis=-1, keepdims=True)
    return (x - mu) * jax.lax.rsqrt(var + LN_EPS) * g + b


# ---------------------------------------------------------------------------
# in-kernel building blocks (bf16 MXU operands, f32 accumulation)
# ---------------------------------------------------------------------------
def _mm(x, w):
    """x @ w with bf16 operands and f32 accumulation (w is already bf16)."""
    return jnp.dot(x.astype(jnp.bfloat16), w, preferred_element_type=jnp.float32)


def _mha(q, k, v, wo, bo, mask, nhead, o_scr):
    """Multi-head attention on a flattened (B*S, D) slab.

    `mask` is an additive (B*S, B*S) mask (block-diagonal same-batch, optionally
    causal).  Per-head outputs are written to the VMEM scratch `o_scr` so the
    output projection is one (B*S, D) @ (D, D) matmul.
    """
    n, d = q.shape
    dh = d // nhead
    scale = 1.0 / float(np.sqrt(dh))
    kt = k.T                                    # one f32 transpose, reused by all heads
    for h in range(nhead):
        lo = h * dh
        qh = q[:, lo:lo + dh].astype(jnp.bfloat16)
        kth = kt[lo:lo + dh, :].astype(jnp.bfloat16)
        vh = v[:, lo:lo + dh].astype(jnp.bfloat16)
        s = jnp.dot(qh, kth, preferred_element_type=jnp.float32) * scale + mask
        s = s - jnp.max(s, axis=-1, keepdims=True)
        p = jnp.exp(s)
        p = p * pl.reciprocal(jnp.sum(p, axis=-1, keepdims=True), approx=True)
        o_scr[:, lo:lo + dh] = jnp.dot(p.astype(jnp.bfloat16), vh,
                                       preferred_element_type=jnp.float32)
    return _mm(o_scr[...], wo) + bo


def _encoder_layer(x, mask, w, l, nhead, o_scr):
    """One post-norm TransformerEncoderLayer (relu FFN), weights stacked over layers."""
    (wqkv, bqkv, wo, bo, ln1g, ln1b, w1, b1, w2, b2, ln2g, ln2b) = w
    d = x.shape[-1]
    qkv = _mm(x, wqkv[l]) + bqkv[l]                       # fused QKV projection
    attn = _mha(qkv[:, :d], qkv[:, d:2 * d], qkv[:, 2 * d:],
                wo[l], bo[l], mask, nhead, o_scr)
    x = _layer_norm(x + attn, ln1g[l], ln1b[l])
    h = jnp.maximum(_mm(x, w1[l]) + b1[l], 0.0)
    ff = _mm(h, w2[l]) + b2[l]
    return _layer_norm(x + ff, ln2g[l], ln2b[l])


# ---------------------------------------------------------------------------
# the single fused kernel
# ---------------------------------------------------------------------------
def _two_tower_kernel(*refs, nhead, batch, seq, n_layers):
    # ref layout: [x, pos, 12 enc tower refs, 12 pred tower refs,
    #              inter_w, inter_b, cwq, cbq, cwkv, cbkv, cwo, cbo, out_w, out_b,
    #              out_ref, o_scratch]
    x_ref, pos_ref = refs[0], refs[1]
    enc_w = refs[2:14]
    pred_w = refs[14:26]
    (inter_w, inter_b, cwq, cbq, cwkv, cbkv, cwo, cbo, out_w, out_b) = refs[26:36]
    out_ref = refs[36]
    o_scr = refs[37]

    bs = batch * seq
    d = x_ref.shape[-1]

    x = x_ref[...] + pos_ref[...]                          # (B*S, D), f32

    # Masks built in-kernel (no (S,S) constants DMA'd).  Batch is folded into the
    # row axis, so attention needs a block-diagonal "same batch" mask; the
    # predictor tower additionally needs the causal constraint.  (Avoids int
    # vector division by OR-ing per-batch range tests; `batch` is tiny & static.)
    ri = jax.lax.broadcasted_iota(jnp.int32, (bs, bs), 0)
    ci = jax.lax.broadcasted_iota(jnp.int32, (bs, bs), 1)
    same = None
    for b in range(batch):
        blk = ((ri >= b * seq) & (ri < (b + 1) * seq)
               & (ci >= b * seq) & (ci < (b + 1) * seq))
        same = blk if same is None else (same | blk)
    enc_mask = jnp.where(same, 0.0, NEG_INF).astype(jnp.float32)
    pred_mask = jnp.where(same & (ci <= ri), 0.0, NEG_INF).astype(jnp.float32)

    # encoder tower + intermediate linear
    enc = x
    for l in range(n_layers):
        enc = _encoder_layer(enc, enc_mask, enc_w, l, nhead, o_scr)
    enc = _mm(enc, inter_w[...]) + inter_b[...]

    # predictor tower (causal)
    pred = x
    for l in range(n_layers):
        pred = _encoder_layer(pred, pred_mask, pred_w, l, nhead, o_scr)

    # cross-attention (q from pred, fused k|v from enc) + residual + output linear
    q = _mm(pred, cwq[...]) + cbq[...]
    kv = _mm(enc, cwkv[...]) + cbkv[...]
    attn = _mha(q, kv[:, :d], kv[:, d:], cwo[...], cbo[...], enc_mask, nhead, o_scr)
    out_ref[...] = _mm(attn + pred, out_w[...]) + out_b[...]


# ---------------------------------------------------------------------------
# wrapper: one pallas_call, everything resident in VMEM
# ---------------------------------------------------------------------------
_LAYER_KEYS = ('wqkv', 'bqkv', 'wo', 'bo', 'ln1g', 'ln1b',
               'w1', 'b1', 'w2', 'b2', 'ln2g', 'ln2b')


def two_tower_forward(src, params, nhead):
    B, S, D = src.shape
    src = src.astype(jnp.float32)                # .to(torch.float32); normalize()=identity
    pos = jnp.broadcast_to(params['pos_emb'][:S][None], (B, S, D)).reshape(B * S, D)
    x = src.reshape(B * S, D)                    # fold batch into the sublane axis

    enc_p, pred_p, cross = params['enc'], params['pred'], params['cross']
    n_layers = enc_p['wqkv'].shape[0]

    inputs = ([x, pos]
              + [enc_p[k] for k in _LAYER_KEYS]
              + [pred_p[k] for k in _LAYER_KEYS]
              + [params['inter_w'], params['inter_b'],
                 cross['wq'], cross['bq'], cross['wkv'], cross['bkv'],
                 cross['wo'], cross['bo'],
                 params['out_w'], params['out_b']])

    vmem = pl.BlockSpec(memory_space=pltpu.MemorySpace.VMEM)
    out = pl.pallas_call(
        functools.partial(_two_tower_kernel, nhead=nhead, batch=B, seq=S,
                          n_layers=n_layers),
        out_shape=jax.ShapeDtypeStruct((B * S, D), jnp.float32),
        in_specs=[vmem] * len(inputs),           # everything resident in VMEM, no grid
        out_specs=vmem,
        scratch_shapes=[pltpu.VMEM((B * S, D), jnp.float32)],   # per-head attn slab
    )(*inputs)
    # denormalize() is the identity (scaler=None); reshape outside is free.
    return out.reshape(B, S, D)


# ---------------------------------------------------------------------------
# pure-JAX reference (f32 math, per-example vmap) for the correctness check
# ---------------------------------------------------------------------------
def _f32(a):
    return a.astype(jnp.float32)


def _ref_mha(q, k, v, wo, bo, mask, nhead):
    S, D = q.shape
    dh = D // nhead
    scale = 1.0 / float(np.sqrt(dh))
    outs = []
    for h in range(nhead):
        lo = h * dh
        s = (q[:, lo:lo + dh] @ k[:, lo:lo + dh].T) * scale
        if mask is not None:
            s = s + mask
        p = jax.nn.softmax(s, axis=-1)
        outs.append(p @ v[:, lo:lo + dh])
    return jnp.concatenate(outs, axis=-1) @ wo + bo


def _ref_encoder_layer(x, mask, p, l, nhead):
    D = x.shape[-1]
    qkv = x @ _f32(p['wqkv'][l]) + p['bqkv'][l]
    attn = _ref_mha(qkv[:, :D], qkv[:, D:2 * D], qkv[:, 2 * D:],
                    _f32(p['wo'][l]), p['bo'][l], mask, nhead)
    x = _layer_norm(x + attn, p['ln1g'][l], p['ln1b'][l])
    h = jnp.maximum(x @ _f32(p['w1'][l]) + p['b1'][l], 0.0)
    return _layer_norm(x + h @ _f32(p['w2'][l]) + p['b2'][l],
                       p['ln2g'][l], p['ln2b'][l])


def ref_forward(src, params, nhead):
    B, S, D = src.shape
    x = src.astype(jnp.float32) + params['pos_emb'][:S][None]
    causal = jnp.where(jnp.arange(S)[None, :] > jnp.arange(S)[:, None],
                       NEG_INF, 0.0).astype(jnp.float32)
    n_layers = params['enc']['wqkv'].shape[0]

    def per_example(xb):
        enc = xb
        for l in range(n_layers):
            enc = _ref_encoder_layer(enc, None, params['enc'], l, nhead)
        enc = enc @ _f32(params['inter_w']) + params['inter_b']
        pred = xb
        for l in range(n_layers):
            pred = _ref_encoder_layer(pred, causal, params['pred'], l, nhead)
        c = params['cross']
        q = pred @ _f32(c['wq']) + c['bq']
        kv = enc @ _f32(c['wkv']) + c['bkv']
        attn = _ref_mha(q, kv[:, :D], kv[:, D:], _f32(c['wo']), c['bo'], None, nhead)
        return (attn + pred) @ _f32(params['out_w']) + params['out_b']

    return jax.vmap(per_example)(x)


# ---------------------------------------------------------------------------
# deterministic synthetic parameters (shapes follow the PyTorch module;
# matmul weights stored bf16, biases / LN params f32)
# ---------------------------------------------------------------------------
def _dense(key, shape, std=0.05):
    return jax.random.normal(key, shape, jnp.float32) * std


def _init_layer(key, D, F):
    ks = jax.random.split(key, 8)
    bf = jnp.bfloat16
    return dict(
        wqkv=_dense(ks[0], (D, 3 * D)).astype(bf), bqkv=_dense(ks[1], (1, 3 * D)),
        wo=_dense(ks[2], (D, D)).astype(bf), bo=_dense(ks[3], (1, D)),
        ln1g=jnp.ones((1, D), jnp.float32), ln1b=jnp.zeros((1, D), jnp.float32),
        w1=_dense(ks[4], (D, F)).astype(bf), b1=_dense(ks[5], (1, F)),
        w2=_dense(ks[6], (F, D)).astype(bf), b2=_dense(ks[7], (1, D)),
        ln2g=jnp.ones((1, D), jnp.float32), ln2b=jnp.zeros((1, D), jnp.float32),
    )


def _stack(layers):
    return {k: jnp.stack([lyr[k] for lyr in layers]) for k in layers[0]}


def init_params(key, D, nhead, num_layers, F):
    n_tower = num_layers // 2
    keys = jax.random.split(key, 2 * n_tower + 4)
    enc = [_init_layer(keys[i], D, F) for i in range(n_tower)]
    pred = [_init_layer(keys[n_tower + i], D, F) for i in range(n_tower)]
    k_pos, k_inter, k_out, k_cross = keys[2 * n_tower:]
    ki = jax.random.split(k_inter, 2)
    ko = jax.random.split(k_out, 2)
    kc = jax.random.split(k_cross, 6)
    bf = jnp.bfloat16
    return dict(
        pos_emb=_dense(k_pos, (50, D)),                      # nn.Embedding(50, d_model)
        enc=_stack(enc), pred=_stack(pred),
        inter_w=_dense(ki[0], (D, D)).astype(bf), inter_b=_dense(ki[1], (1, D)),
        out_w=_dense(ko[0], (D, D)).astype(bf), out_b=_dense(ko[1], (1, D)),
        cross=dict(
            wq=_dense(kc[0], (D, D)).astype(bf), bq=_dense(kc[1], (1, D)),
            wkv=_dense(kc[2], (D, 2 * D)).astype(bf), bkv=_dense(kc[3], (1, 2 * D)),
            wo=_dense(kc[4], (D, D)).astype(bf), bo=_dense(kc[5], (1, D)),
        ),
    )


if __name__ == "__main__":
    # Small shapes consistent with the module: d_model=32, nhead=4,
    # num_layers=4 (-> 2 layers per tower), dim_feedforward=64, batch=2, seq=8.
    B, S, D, H, F, L = 2, 8, 32, 4, 64, 4

    key = jax.random.PRNGKey(0)
    k_src, k_param = jax.random.split(key)
    src = jax.random.normal(k_src, (B, S, D), jnp.float32)
    params = init_params(k_param, D, H, L, F)

    out = jax.block_until_ready(two_tower_forward(src, params, H))
    ref = jax.block_until_ready(ref_forward(src, params, H))

    assert out.shape == (B, S, D) and out.dtype == jnp.float32
    # Tolerance covers bf16 MXU operands + approximate softmax reciprocal in the
    # kernel vs. the all-f32 reference.
    np.testing.assert_allclose(np.asarray(out), np.asarray(ref), rtol=3e-2, atol=3e-2)
    print("KERNEL_OK")
</pallas_src>

<mosaic_0001>
module attributes {stable_mosaic.version = 11 : i64} {
  func.func @_two_tower_kernel(%arg0: memref<16x32xf32, #tpu.memory_space<vmem>>, %arg1: memref<16x32xf32, #tpu.memory_space<vmem>>, %arg2: memref<2x32x96xbf16, #tpu.memory_space<vmem>>, %arg3: memref<2x1x96xf32, #tpu.memory_space<vmem>>, %arg4: memref<2x32x32xbf16, #tpu.memory_space<vmem>>, %arg5: memref<2x1x32xf32, #tpu.memory_space<vmem>>, %arg6: memref<2x1x32xf32, #tpu.memory_space<vmem>>, %arg7: memref<2x1x32xf32, #tpu.memory_space<vmem>>, %arg8: memref<2x32x64xbf16, #tpu.memory_space<vmem>>, %arg9: memref<2x1x64xf32, #tpu.memory_space<vmem>>, %arg10: memref<2x64x32xbf16, #tpu.memory_space<vmem>>, %arg11: memref<2x1x32xf32, #tpu.memory_space<vmem>>, %arg12: memref<2x1x32xf32, #tpu.memory_space<vmem>>, %arg13: memref<2x1x32xf32, #tpu.memory_space<vmem>>, %arg14: memref<2x32x96xbf16, #tpu.memory_space<vmem>>, %arg15: memref<2x1x96xf32, #tpu.memory_space<vmem>>, %arg16: memref<2x32x32xbf16, #tpu.memory_space<vmem>>, %arg17: memref<2x1x32xf32, #tpu.memory_space<vmem>>, %arg18: memref<2x1x32xf32, #tpu.memory_space<vmem>>, %arg19: memref<2x1x32xf32, #tpu.memory_space<vmem>>, %arg20: memref<2x32x64xbf16, #tpu.memory_space<vmem>>, %arg21: memref<2x1x64xf32, #tpu.memory_space<vmem>>, %arg22: memref<2x64x32xbf16, #tpu.memory_space<vmem>>, %arg23: memref<2x1x32xf32, #tpu.memory_space<vmem>>, %arg24: memref<2x1x32xf32, #tpu.memory_space<vmem>>, %arg25: memref<2x1x32xf32, #tpu.memory_space<vmem>>, %arg26: memref<32x32xbf16, #tpu.memory_space<vmem>>, %arg27: memref<1x32xf32, #tpu.memory_space<vmem>>, %arg28: memref<32x32xbf16, #tpu.memory_space<vmem>>, %arg29: memref<1x32xf32, #tpu.memory_space<vmem>>, %arg30: memref<32x64xbf16, #tpu.memory_space<vmem>>, %arg31: memref<1x64xf32, #tpu.memory_space<vmem>>, %arg32: memref<32x32xbf16, #tpu.memory_space<vmem>>, %arg33: memref<1x32xf32, #tpu.memory_space<vmem>>, %arg34: memref<32x32xbf16, #tpu.memory_space<vmem>>, %arg35: memref<1x32xf32, #tpu.memory_space<vmem>>, %arg36: memref<16x32xf32, #tpu.memory_space<vmem>>, %arg37: memref<16x32xf32, #tpu.memory_space<vmem>>) attributes {dimension_semantics = [], scalar_prefetch = 0 : i64, scratch_operands = 1 : i64, tpu.core_type = #tpu.core_type<tc>} {
    %c0 = arith.constant 0 : index
    %c0_0 = arith.constant 0 : index
    %0 = vector.load %arg0[%c0, %c0_0] : memref<16x32xf32, #tpu.memory_space<vmem>>, vector<16x32xf32>
    %c0_1 = arith.constant 0 : index
    %c0_2 = arith.constant 0 : index
    %1 = vector.load %arg1[%c0_1, %c0_2] : memref<16x32xf32, #tpu.memory_space<vmem>>, vector<16x32xf32>
    %2 = arith.addf %0, %1 : vector<16x32xf32>
    %3 = tpu.iota {dimensions = array<i32: 0>} : vector<16x16xi32>
    %4 = tpu.iota {dimensions = array<i32: 1>} : vector<16x16xi32>
    %c0_i32 = arith.constant 0 : i32
    %5 = vector.broadcast %c0_i32 : i32 to vector<16x16xi32>
    %6 = arith.cmpi sge, %3, %5 : vector<16x16xi32>
    %c8_i32 = arith.constant 8 : i32
    %7 = vector.broadcast %c8_i32 : i32 to vector<16x16xi32>
    %8 = arith.cmpi slt, %3, %7 : vector<16x16xi32>
    %9 = arith.andi %6, %8 : vector<16x16xi1>
    %c0_i32_3 = arith.constant 0 : i32
    %10 = vector.broadcast %c0_i32_3 : i32 to vector<16x16xi32>
    %11 = arith.cmpi sge, %4, %10 : vector<16x16xi32>
    %12 = arith.andi %9, %11 : vector<16x16xi1>
    %c8_i32_4 = arith.constant 8 : i32
    %13 = vector.broadcast %c8_i32_4 : i32 to vector<16x16xi32>
    %14 = arith.cmpi slt, %4, %13 : vector<16x16xi32>
    %15 = arith.andi %12, %14 : vector<16x16xi1>
    %c8_i32_5 = arith.constant 8 : i32
    %16 = vector.broadcast %c8_i32_5 : i32 to vector<16x16xi32>
    %17 = arith.cmpi sge, %3, %16 : vector<16x16xi32>
    %c16_i32 = arith.constant 16 : i32
    %18 = vector.broadcast %c16_i32 : i32 to vector<16x16xi32>
    %19 = arith.cmpi slt, %3, %18 : vector<16x16xi32>
    %20 = arith.andi %17, %19 : vector<16x16xi1>
    %c8_i32_6 = arith.constant 8 : i32
    %21 = vector.broadcast %c8_i32_6 : i32 to vector<16x16xi32>
    %22 = arith.cmpi sge, %4, %21 : vector<16x16xi32>
    %23 = arith.andi %20, %22 : vector<16x16xi1>
    %c16_i32_7 = arith.constant 16 : i32
    %24 = vector.broadcast %c16_i32_7 : i32 to vector<16x16xi32>
    %25 = arith.cmpi slt, %4, %24 : vector<16x16xi32>
    %26 = arith.andi %23, %25 : vector<16x16xi1>
    %27 = arith.ori %15, %26 : vector<16x16xi1>
    %cst = arith.constant 0.000000e+00 : f32
    %cst_8 = arith.constant -1.000000e+09 : f32
    %28 = vector.broadcast %cst : f32 to vector<16x16xf32>
    %29 = vector.broadcast %cst_8 : f32 to vector<16x16xf32>
    %30 = arith.select %27, %28, %29 : vector<16x16xi1>, vector<16x16xf32>
    %31 = arith.cmpi sle, %4, %3 : vector<16x16xi32>
    %32 = arith.andi %27, %31 : vector<16x16xi1>
    %cst_9 = arith.constant 0.000000e+00 : f32
    %cst_10 = arith.constant -1.000000e+09 : f32
    %33 = vector.broadcast %cst_9 : f32 to vector<16x16xf32>
    %34 = vector.broadcast %cst_10 : f32 to vector<16x16xf32>
    %35 = arith.select %32, %33, %34 : vector<16x16xi1>, vector<16x16xf32>
    %c0_11 = arith.constant 0 : index
    %c0_12 = arith.constant 0 : index
    %c0_13 = arith.constant 0 : index
    %36 = vector.load %arg2[%c0_11, %c0_12, %c0_13] : memref<2x32x96xbf16, #tpu.memory_space<vmem>>, vector<1x32x96xbf16>
    %37 = vector.shape_cast %36 : vector<1x32x96xbf16> to vector<32x96xbf16>
    %38 = arith.truncf %2 : vector<16x32xf32> to vector<16x32xbf16>
    %cst_14 = arith.constant dense<0.000000e+00> : vector<16x96xf32>
    %39 = tpu.matmul %38, %37, %cst_14 {dimension_numbers = #tpu.dot_dimension_numbers<[1], [0], [0], [1], [0, 0, 1, 1], [], []>} : vector<16x32xbf16>, vector<32x96xbf16>, vector<16x96xf32> -> vector<16x96xf32>
    %c0_15 = arith.constant 0 : index
    %c0_16 = arith.constant 0 : index
    %c0_17 = arith.constant 0 : index
    %40 = vector.load %arg3[%c0_15, %c0_16, %c0_17] : memref<2x1x96xf32, #tpu.memory_space<vmem>>, vector<1x1x96xf32>
    %41 = vector.shape_cast %40 : vector<1x1x96xf32> to vector<1x96xf32>
    %42 = vector.broadcast %41 : vector<1x96xf32> to vector<16x96xf32>
    %43 = arith.addf %39, %42 : vector<16x96xf32>
    %44 = vector.extract_strided_slice %43 {offsets = [0, 0], sizes = [16, 32], strides = [1, 1]} : vector<16x96xf32> to vector<16x32xf32>
    %45 = vector.extract_strided_slice %43 {offsets = [0, 32], sizes = [16, 32], strides = [1, 1]} : vector<16x96xf32> to vector<16x32xf32>
    %46 = vector.extract_strided_slice %43 {offsets = [0, 64], sizes = [16, 32], strides = [1, 1]} : vector<16x96xf32> to vector<16x32xf32>
    %c0_18 = arith.constant 0 : index
    %c0_19 = arith.constant 0 : index
    %c0_20 = arith.constant 0 : index
    %47 = vector.load %arg4[%c0_18, %c0_19, %c0_20] : memref<2x32x32xbf16, #tpu.memory_space<vmem>>, vector<1x32x32xbf16>
    %48 = vector.shape_cast %47 : vector<1x32x32xbf16> to vector<32x32xbf16>
    %c0_21 = arith.constant 0 : index
    %c0_22 = arith.constant 0 : index
    %c0_23 = arith.constant 0 : index
    %49 = vector.load %arg5[%c0_21, %c0_22, %c0_23] : memref<2x1x32xf32, #tpu.memory_space<vmem>>, vector<1x1x32xf32>
    %50 = vector.shape_cast %49 : vector<1x1x32xf32> to vector<1x32xf32>
    %51 = tpu.transpose %45, [1, 0] : vector<16x32xf32> -> vector<32x16xf32>
    %52 = vector.extract_strided_slice %44 {offsets = [0, 0], sizes = [16, 8], strides = [1, 1]} : vector<16x32xf32> to vector<16x8xf32>
    %53 = arith.truncf %52 : vector<16x8xf32> to vector<16x8xbf16>
    %54 = vector.extract_strided_slice %51 {offsets = [0, 0], sizes = [8, 16], strides = [1, 1]} : vector<32x16xf32> to vector<8x16xf32>
    %55 = arith.truncf %54 : vector<8x16xf32> to vector<8x16xbf16>
    %56 = vector.extract_strided_slice %46 {offsets = [0, 0], sizes = [16, 8], strides = [1, 1]} : vector<16x32xf32> to vector<16x8xf32>
    %57 = arith.truncf %56 : vector<16x8xf32> to vector<16x8xbf16>
    %cst_24 = arith.constant dense<0.000000e+00> : vector<16x16xf32>
    %58 = tpu.matmul %53, %55, %cst_24 {dimension_numbers = #tpu.dot_dimension_numbers<[1], [0], [0], [1], [0, 0, 1, 1], [], []>} : vector<16x8xbf16>, vector<8x16xbf16>, vector<16x16xf32> -> vector<16x16xf32>
    %cst_25 = arith.constant 0.353553385 : f32
    %59 = vector.broadcast %cst_25 : f32 to vector<16x16xf32>
    %60 = arith.mulf %58, %59 : vector<16x16xf32>
    %61 = arith.addf %60, %30 : vector<16x16xf32>
    %cst_26 = arith.constant dense<0xFF800000> : vector<16xf32>
    %62 = vector.multi_reduction <maximumf>, %61, %cst_26 [1] : vector<16x16xf32> to vector<16xf32>
    %63 = vector.shape_cast %62 : vector<16xf32> to vector<16x1xf32>
    %64 = vector.broadcast %63 : vector<16x1xf32> to vector<16x16xf32>
    %65 = arith.subf %61, %64 : vector<16x16xf32>
    %66 = math.exp %65 : vector<16x16xf32>
    %cst_27 = arith.constant dense<0.000000e+00> : vector<16xf32>
    %67 = vector.multi_reduction <add>, %66, %cst_27 [1] : vector<16x16xf32> to vector<16xf32>
    %68 = vector.shape_cast %67 : vector<16xf32> to vector<16x1xf32>
    %69 = tpu.reciprocal %68 {approx = true} : vector<16x1xf32> -> vector<16x1xf32>
    %70 = vector.broadcast %69 : vector<16x1xf32> to vector<16x16xf32>
    %71 = arith.mulf %66, %70 : vector<16x16xf32>
    %72 = arith.truncf %71 : vector<16x16xf32> to vector<16x16xbf16>
    %cst_28 = arith.constant dense<0.000000e+00> : vector<16x8xf32>
    %73 = tpu.matmul %72, %57, %cst_28 {dimension_numbers = #tpu.dot_dimension_numbers<[1], [0], [0], [1], [0, 0, 1, 1], [], []>} : vector<16x16xbf16>, vector<16x8xbf16>, vector<16x8xf32> -> vector<16x8xf32>
    %c0_29 = arith.constant 0 : index
    %c0_30 = arith.constant 0 : index
    %74 = vector.load %arg37[%c0_29, %c0_30] : memref<16x32xf32, #tpu.memory_space<vmem>>, vector<16x8xf32>
    tpu.vector_store %arg37[%c0_29, %c0_30], %73 {strides = array<i32>} : memref<16x32xf32, #tpu.memory_space<vmem>>, vector<16x8xf32>,
    %75 = vector.extract_strided_slice %44 {offsets = [0, 8], sizes = [16, 8], strides = [1, 1]} : vector<16x32xf32> to vector<16x8xf32>
    %76 = arith.truncf %75 : vector<16x8xf32> to vector<16x8xbf16>
    %77 = vector.extract_strided_slice %51 {offsets = [8, 0], sizes = [8, 16], strides = [1, 1]} : vector<32x16xf32> to vector<8x16xf32>
    %78 = arith.truncf %77 : vector<8x16xf32> to vector<8x16xbf16>
    %79 = vector.extract_strided_slice %46 {offsets = [0, 8], sizes = [16, 8], strides = [1, 1]} : vector<16x32xf32> to vector<16x8xf32>
    %80 = arith.truncf %79 : vector<16x8xf32> to vector<16x8xbf16>
    %cst_31 = arith.constant dense<0.000000e+00> : vector<16x16xf32>
    %81 = tpu.matmul %76, %78, %cst_31 {dimension_numbers = #tpu.dot_dimension_numbers<[1], [0], [0], [1], [0, 0, 1, 1], [], []>} : vector<16x8xbf16>, vector<8x16xbf16>, vector<16x16xf32> -> vector<16x16xf32>
    %cst_32 = arith.constant 0.353553385 : f32
    %82 = vector.broadcast %cst_32 : f32 to vector<16x16xf32>
    %83 = arith.mulf %81, %82 : vector<16x16xf32>
    %84 = arith.addf %83, %30 : vector<16x16xf32>
    %cst_33 = arith.constant dense<0xFF800000> : vector<16xf32>
    %85 = vector.multi_reduction <maximumf>, %84, %cst_33 [1] : vector<16x16xf32> to vector<16xf32>
    %86 = vector.shape_cast %85 : vector<16xf32> to vector<16x1xf32>
    %87 = vector.broadcast %86 : vector<16x1xf32> to vector<16x16xf32>
    %88 = arith.subf %84, %87 : vector<16x16xf32>
    %89 = math.exp %88 : vector<16x16xf32>
    %cst_34 = arith.constant dense<0.000000e+00> : vector<16xf32>
    %90 = vector.multi_reduction <add>, %89, %cst_34 [1] : vector<16x16xf32> to vector<16xf32>
    %91 = vector.shape_cast %90 : vector<16xf32> to vector<16x1xf32>
    %92 = tpu.reciprocal %91 {approx = true} : vector<16x1xf32> -> vector<16x1xf32>
    %93 = vector.broadcast %92 : vector<16x1xf32> to vector<16x16xf32>
    %94 = arith.mulf %89, %93 : vector<16x16xf32>
    %95 = arith.truncf %94 : vector<16x16xf32> to vector<16x16xbf16>
    %cst_35 = arith.constant dense<0.000000e+00> : vector<16x8xf32>
    %96 = tpu.matmul %95, %80, %cst_35 {dimension_numbers = #tpu.dot_dimension_numbers<[1], [0], [0], [1], [0, 0, 1, 1], [], []>} : vector<16x16xbf16>, vector<16x8xbf16>, vector<16x8xf32> -> vector<16x8xf32>
    %c0_36 = arith.constant 0 : index
    %c8 = arith.constant 8 : index
    %97 = vector.load %arg37[%c0_36, %c8] : memref<16x32xf32, #tpu.memory_space<vmem>>, vector<16x8xf32>
    tpu.vector_store %arg37[%c0_36, %c8], %96 {strides = array<i32>} : memref<16x32xf32, #tpu.memory_space<vmem>>, vector<16x8xf32>,
    %98 = vector.extract_strided_slice %44 {offsets = [0, 16], sizes = [16, 8], strides = [1, 1]} : vector<16x32xf32> to vector<16x8xf32>
    %99 = arith.truncf %98 : vector<16x8xf32> to vector<16x8xbf16>
    %100 = vector.extract_strided_slice %51 {offsets = [16, 0], sizes = [8, 16], strides = [1, 1]} : vector<32x16xf32> to vector<8x16xf32>
    %101 = arith.truncf %100 : vector<8x16xf32> to vector<8x16xbf16>
    %102 = vector.extract_strided_slice %46 {offsets = [0, 16], sizes = [16, 8], strides = [1, 1]} : vector<16x32xf32> to vector<16x8xf32>
    %103 = arith.truncf %102 : vector<16x8xf32> to vector<16x8xbf16>
    %cst_37 = arith.constant dense<0.000000e+00> : vector<16x16xf32>
    %104 = tpu.matmul %99, %101, %cst_37 {dimension_numbers = #tpu.dot_dimension_numbers<[1], [0], [0], [1], [0, 0, 1, 1], [], []>} : vector<16x8xbf16>, vector<8x16xbf16>, vector<16x16xf32> -> vector<16x16xf32>
    %cst_38 = arith.constant 0.353553385 : f32
    %105 = vector.broadcast %cst_38 : f32 to vector<16x16xf32>
    %106 = arith.mulf %104, %105 : vector<16x16xf32>
    %107 = arith.addf %106, %30 : vector<16x16xf32>
    %cst_39 = arith.constant dense<0xFF800000> : vector<16xf32>
    %108 = vector.multi_reduction <maximumf>, %107, %cst_39 [1] : vector<16x16xf32> to vector<16xf32>
    %109 = vector.shape_cast %108 : vector<16xf32> to vector<16x1xf32>
    %110 = vector.broadcast %109 : vector<16x1xf32> to vector<16x16xf32>
    %111 = arith.subf %107, %110 : vector<16x16xf32>
    %112 = math.exp %111 : vector<16x16xf32>
    %cst_40 = arith.constant dense<0.000000e+00> : vector<16xf32>
    %113 = vector.multi_reduction <add>, %112, %cst_40 [1] : vector<16x16xf32> to vector<16xf32>
    %114 = vector.shape_cast %113 : vector<16xf32> to vector<16x1xf32>
    %115 = tpu.reciprocal %114 {approx = true} : vector<16x1xf32> -> vector<16x1xf32>
    %116 = vector.broadcast %115 : vector<16x1xf32> to vector<16x16xf32>
    %117 = arith.mulf %112, %116 : vector<16x16xf32>
    %118 = arith.truncf %117 : vector<16x16xf32> to vector<16x16xbf16>
    %cst_41 = arith.constant dense<0.000000e+00> : vector<16x8xf32>
    %119 = tpu.matmul %118, %103, %cst_41 {dimension_numbers = #tpu.dot_dimension_numbers<[1], [0], [0], [1], [0, 0, 1, 1], [], []>} : vector<16x16xbf16>, vector<16x8xbf16>, vector<16x8xf32> -> vector<16x8xf32>
    %c0_42 = arith.constant 0 : index
    %c16 = arith.constant 16 : index
    %120 = vector.load %arg37[%c0_42, %c16] : memref<16x32xf32, #tpu.memory_space<vmem>>, vector<16x8xf32>
    tpu.vector_store %arg37[%c0_42, %c16], %119 {strides = array<i32>} : memref<16x32xf32, #tpu.memory_space<vmem>>, vector<16x8xf32>,
    %121 = vector.extract_strided_slice %44 {offsets = [0, 24], sizes = [16, 8], strides = [1, 1]} : vector<16x32xf32> to vector<16x8xf32>
    %122 = arith.truncf %121 : vector<16x8xf32> to vector<16x8xbf16>
    %123 = vector.extract_strided_slice %51 {offsets = [24, 0], sizes = [8, 16], strides = [1, 1]} : vector<32x16xf32> to vector<8x16xf32>
    %124 = arith.truncf %123 : vector<8x16xf32> to vector<8x16xbf16>
    %125 = vector.extract_strided_slice %46 {offsets = [0, 24], sizes = [16, 8], strides = [1, 1]} : vector<16x32xf32> to vector<16x8xf32>
    %126 = arith.truncf %125 : vector<16x8xf32> to vector<16x8xbf16>
    %cst_43 = arith.constant dense<0.000000e+00> : vector<16x16xf32>
    %127 = tpu.matmul %122, %124, %cst_43 {dimension_numbers = #tpu.dot_dimension_numbers<[1], [0], [0], [1], [0, 0, 1, 1], [], []>} : vector<16x8xbf16>, vector<8x16xbf16>, vector<16x16xf32> -> vector<16x16xf32>
    %cst_44 = arith.constant 0.353553385 : f32
    %128 = vector.broadcast %cst_44 : f32 to vector<16x16xf32>
    %129 = arith.mulf %127, %128 : vector<16x16xf32>
    %130 = arith.addf %129, %30 : vector<16x16xf32>
    %cst_45 = arith.constant dense<0xFF800000> : vector<16xf32>
    %131 = vector.multi_reduction <maximumf>, %130, %cst_45 [1] : vector<16x16xf32> to vector<16xf32>
    %132 = vector.shape_cast %131 : vector<16xf32> to vector<16x1xf32>
    %133 = vector.broadcast %132 : vector<16x1xf32> to vector<16x16xf32>
    %134 = arith.subf %130, %133 : vector<16x16xf32>
    %135 = math.exp %134 : vector<16x16xf32>
    %cst_46 = arith.constant dense<0.000000e+00> : vector<16xf32>
    %136 = vector.multi_reduction <add>, %135, %cst_46 [1] : vector<16x16xf32> to vector<16xf32>
    %137 = vector.shape_cast %136 : vector<16xf32> to vector<16x1xf32>
    %138 = tpu.reciprocal %137 {approx = true} : vector<16x1xf32> -> vector<16x1xf32>
    %139 = vector.broadcast %138 : vector<16x1xf32> to vector<16x16xf32>
    %140 = arith.mulf %135, %139 : vector<16x16xf32>
    %141 = arith.truncf %140 : vector<16x16xf32> to vector<16x16xbf16>
    %cst_47 = arith.constant dense<0.000000e+00> : vector<16x8xf32>
    %142 = tpu.matmul %141, %126, %cst_47 {dimension_numbers = #tpu.dot_dimension_numbers<[1], [0], [0], [1], [0, 0, 1, 1], [], []>} : vector<16x16xbf16>, vector<16x8xbf16>, vector<16x8xf32> -> vector<16x8xf32>
    %c0_48 = arith.constant 0 : index
    %c24 = arith.constant 24 : index
    %143 = vector.load %arg37[%c0_48, %c24] : memref<16x32xf32, #tpu.memory_space<vmem>>, vector<16x8xf32>
    tpu.vector_store %arg37[%c0_48, %c24], %142 {strides = array<i32>} : memref<16x32xf32, #tpu.memory_space<vmem>>, vector<16x8xf32>,
    %c0_49 = arith.constant 0 : index
    %c0_50 = arith.constant 0 : index
    %144 = vector.load %arg37[%c0_49, %c0_50] : memref<16x32xf32, #tpu.memory_space<vmem>>, vector<16x32xf32>
    %145 = arith.truncf %144 : vector<16x32xf32> to vector<16x32xbf16>
    %cst_51 = arith.constant dense<0.000000e+00> : vector<16x32xf32>
    %146 = tpu.matmul %145, %48, %cst_51 {dimension_numbers = #tpu.dot_dimension_numbers<[1], [0], [0], [1], [0, 0, 1, 1], [], []>} : vector<16x32xbf16>, vector<32x32xbf16>, vector<16x32xf32> -> vector<16x32xf32>
    %147 = vector.broadcast %50 : vector<1x32xf32> to vector<16x32xf32>
    %148 = arith.addf %146, %147 : vector<16x32xf32>
    %149 = arith.addf %2, %148 : vector<16x32xf32>
    %c0_52 = arith.constant 0 : index
    %c0_53 = arith.constant 0 : index
    %c0_54 = arith.constant 0 : index
    %150 = vector.load %arg6[%c0_52, %c0_53, %c0_54] : memref<2x1x32xf32, #tpu.memory_space<vmem>>, vector<1x1x32xf32>
    %151 = vector.shape_cast %150 : vector<1x1x32xf32> to vector<1x32xf32>
    %c0_55 = arith.constant 0 : index
    %c0_56 = arith.constant 0 : index
    %c0_57 = arith.constant 0 : index
    %152 = vector.load %arg7[%c0_55, %c0_56, %c0_57] : memref<2x1x32xf32, #tpu.memory_space<vmem>>, vector<1x1x32xf32>
    %153 = vector.shape_cast %152 : vector<1x1x32xf32> to vector<1x32xf32>
    %cst_58 = arith.constant dense<0.000000e+00> : vector<16xf32>
    %154 = vector.multi_reduction <add>, %149, %cst_58 [1] : vector<16x32xf32> to vector<16xf32>
    %155 = vector.shape_cast %154 : vector<16xf32> to vector<16x1xf32>
    %cst_59 = arith.constant 3.200000e+01 : f32
    %156 = vector.broadcast %cst_59 : f32 to vector<16x1xf32>
    %157 = arith.divf %155, %156 : vector<16x1xf32>
    %158 = vector.broadcast %157 : vector<16x1xf32> to vector<16x32xf32>
    %159 = arith.subf %149, %158 : vector<16x32xf32>
    %160 = arith.mulf %159, %159 : vector<16x32xf32>
    %cst_60 = arith.constant dense<0.000000e+00> : vector<16xf32>
    %161 = vector.multi_reduction <add>, %160, %cst_60 [1] : vector<16x32xf32> to vector<16xf32>
    %162 = vector.shape_cast %161 : vector<16xf32> to vector<16x1xf32>
    %cst_61 = arith.constant 3.200000e+01 : f32
    %163 = vector.broadcast %cst_61 : f32 to vector<16x1xf32>
    %164 = arith.divf %162, %163 : vector<16x1xf32>
    %165 = vector.broadcast %157 : vector<16x1xf32> to vector<16x32xf32>
    %166 = arith.subf %149, %165 : vector<16x32xf32>
    %cst_62 = arith.constant 9.99999974E-6 : f32
    %167 = vector.broadcast %cst_62 : f32 to vector<16x1xf32>
    %168 = arith.addf %164, %167 : vector<16x1xf32>
    %169 = math.rsqrt %168 : vector<16x1xf32>
    %170 = vector.broadcast %169 : vector<16x1xf32> to vector<16x32xf32>
    %171 = arith.mulf %166, %170 : vector<16x32xf32>
    %172 = vector.broadcast %151 : vector<1x32xf32> to vector<16x32xf32>
    %173 = arith.mulf %171, %172 : vector<16x32xf32>
    %174 = vector.broadcast %153 : vector<1x32xf32> to vector<16x32xf32>
    %175 = arith.addf %173, %174 : vector<16x32xf32>
    %c0_63 = arith.constant 0 : index
    %c0_64 = arith.constant 0 : index
    %c0_65 = arith.constant 0 : index
    %176 = vector.load %arg8[%c0_63, %c0_64, %c0_65] : memref<2x32x64xbf16, #tpu.memory_space<vmem>>, vector<1x32x64xbf16>
    %177 = vector.shape_cast %176 : vector<1x32x64xbf16> to vector<32x64xbf16>
    %178 = arith.truncf %175 : vector<16x32xf32> to vector<16x32xbf16>
    %cst_66 = arith.constant dense<0.000000e+00> : vector<16x64xf32>
    %179 = tpu.matmul %178, %177, %cst_66 {dimension_numbers = #tpu.dot_dimension_numbers<[1], [0], [0], [1], [0, 0, 1, 1], [], []>} : vector<16x32xbf16>, vector<32x64xbf16>, vector<16x64xf32> -> vector<16x64xf32>
    %c0_67 = arith.constant 0 : index
    %c0_68 = arith.constant 0 : index
    %c0_69 = arith.constant 0 : index
    %180 = vector.load %arg9[%c0_67, %c0_68, %c0_69] : memref<2x1x64xf32, #tpu.memory_space<vmem>>, vector<1x1x64xf32>
    %181 = vector.shape_cast %180 : vector<1x1x64xf32> to vector<1x64xf32>
    %182 = vector.broadcast %181 : vector<1x64xf32> to vector<16x64xf32>
    %183 = arith.addf %179, %182 : vector<16x64xf32>
    %cst_70 = arith.constant 0.000000e+00 : f32
    %184 = vector.broadcast %cst_70 : f32 to vector<16x64xf32>
    %185 = arith.maximumf %183, %184 : vector<16x64xf32>
    %c0_71 = arith.constant 0 : index
    %c0_72 = arith.constant 0 : index
    %c0_73 = arith.constant 0 : index
    %186 = vector.load %arg10[%c0_71, %c0_72, %c0_73] : memref<2x64x32xbf16, #tpu.memory_space<vmem>>, vector<1x64x32xbf16>
    %187 = vector.shape_cast %186 : vector<1x64x32xbf16> to vector<64x32xbf16>
    %188 = arith.truncf %185 : vector<16x64xf32> to vector<16x64xbf16>
    %cst_74 = arith.constant dense<0.000000e+00> : vector<16x32xf32>
    %189 = tpu.matmul %188, %187, %cst_74 {dimension_numbers = #tpu.dot_dimension_numbers<[1], [0], [0], [1], [0, 0, 1, 1], [], []>} : vector<16x64xbf16>, vector<64x32xbf16>, vector<16x32xf32> -> vector<16x32xf32>
    %c0_75 = arith.constant 0 : index
    %c0_76 = arith.constant 0 : index
    %c0_77 = arith.constant 0 : index
    %190 = vector.load %arg11[%c0_75, %c0_76, %c0_77] : memref<2x1x32xf32, #tpu.memory_space<vmem>>, vector<1x1x32xf32>
    %191 = vector.shape_cast %190 : vector<1x1x32xf32> to vector<1x32xf32>
    %192 = vector.broadcast %191 : vector<1x32xf32> to vector<16x32xf32>
    %193 = arith.addf %189, %192 : vector<16x32xf32>
    %194 = arith.addf %175, %193 : vector<16x32xf32>
    %c0_78 = arith.constant 0 : index
    %c0_79 = arith.constant 0 : index
    %c0_80 = arith.constant 0 : index
    %195 = vector.load %arg12[%c0_78, %c0_79, %c0_80] : memref<2x1x32xf32, #tpu.memory_space<vmem>>, vector<1x1x32xf32>
    %196 = vector.shape_cast %195 : vector<1x1x32xf32> to vector<1x32xf32>
    %c0_81 = arith.constant 0 : index
    %c0_82 = arith.constant 0 : index
    %c0_83 = arith.constant 0 : index
    %197 = vector.load %arg13[%c0_81, %c0_82, %c0_83] : memref<2x1x32xf32, #tpu.memory_space<vmem>>, vector<1x1x32xf32>
    %198 = vector.shape_cast %197 : vector<1x1x32xf32> to vector<1x32xf32>
    %cst_84 = arith.constant dense<0.000000e+00> : vector<16xf32>
    %199 = vector.multi_reduction <add>, %194, %cst_84 [1] : vector<16x32xf32> to vector<16xf32>
    %200 = vector.shape_cast %199 : vector<16xf32> to vector<16x1xf32>
    %cst_85 = arith.constant 3.200000e+01 : f32
    %201 = vector.broadcast %cst_85 : f32 to vector<16x1xf32>
    %202 = arith.divf %200, %201 : vector<16x1xf32>
    %203 = vector.broadcast %202 : vector<16x1xf32> to vector<16x32xf32>
    %204 = arith.subf %194, %203 : vector<16x32xf32>
    %205 = arith.mulf %204, %204 : vector<16x32xf32>
    %cst_86 = arith.constant dense<0.000000e+00> : vector<16xf32>
    %206 = vector.multi_reduction <add>, %205, %cst_86 [1] : vector<16x32xf32> to vector<16xf32>
    %207 = vector.shape_cast %206 : vector<16xf32> to vector<16x1xf32>
    %cst_87 = arith.constant 3.200000e+01 : f32
    %208 = vector.broadcast %cst_87 : f32 to vector<16x1xf32>
    %209 = arith.divf %207, %208 : vector<16x1xf32>
    %210 = vector.broadcast %202 : vector<16x1xf32> to vector<16x32xf32>
    %211 = arith.subf %194, %210 : vector<16x32xf32>
    %cst_88 = arith.constant 9.99999974E-6 : f32
    %212 = vector.broadcast %cst_88 : f32 to vector<16x1xf32>
    %213 = arith.addf %209, %212 : vector<16x1xf32>
    %214 = math.rsqrt %213 : vector<16x1xf32>
    %215 = vector.broadcast %214 : vector<16x1xf32> to vector<16x32xf32>
    %216 = arith.mulf %211, %215 : vector<16x32xf32>
    %217 = vector.broadcast %196 : vector<1x32xf32> to vector<16x32xf32>
    %218 = arith.mulf %216, %217 : vector<16x32xf32>
    %219 = vector.broadcast %198 : vector<1x32xf32> to vector<16x32xf32>
    %220 = arith.addf %218, %219 : vector<16x32xf32>
    %c1 = arith.constant 1 : index
    %c0_89 = arith.constant 0 : index
    %c0_90 = arith.constant 0 : index
    %221 = vector.load %arg2[%c1, %c0_89, %c0_90] : memref<2x32x96xbf16, #tpu.memory_space<vmem>>, vector<1x32x96xbf16>
    %222 = vector.shape_cast %221 : vector<1x32x96xbf16> to vector<32x96xbf16>
    %223 = arith.truncf %220 : vector<16x32xf32> to vector<16x32xbf16>
    %cst_91 = arith.constant dense<0.000000e+00> : vector<16x96xf32>
    %224 = tpu.matmul %223, %222, %cst_91 {dimension_numbers = #tpu.dot_dimension_numbers<[1], [0], [0], [1], [0, 0, 1, 1], [], []>} : vector<16x32xbf16>, vector<32x96xbf16>, vector<16x96xf32> -> vector<16x96xf32>
    %c1_92 = arith.constant 1 : index
    %c0_93 = arith.constant 0 : index
    %c0_94 = arith.constant 0 : index
    %225 = vector.load %arg3[%c1_92, %c0_93, %c0_94] : memref<2x1x96xf32, #tpu.memory_space<vmem>>, vector<1x1x96xf32>
    %226 = vector.shape_cast %225 : vector<1x1x96xf32> to vector<1x96xf32>
    %227 = vector.broadcast %226 : vector<1x96xf32> to vector<16x96xf32>
    %228 = arith.addf %224, %227 : vector<16x96xf32>
    %229 = vector.extract_strided_slice %228 {offsets = [0, 0], sizes = [16, 32], strides = [1, 1]} : vector<16x96xf32> to vector<16x32xf32>
    %230 = vector.extract_strided_slice %228 {offsets = [0, 32], sizes = [16, 32], strides = [1, 1]} : vector<16x96xf32> to vector<16x32xf32>
    %231 = vector.extract_strided_slice %228 {offsets = [0, 64], sizes = [16, 32], strides = [1, 1]} : vector<16x96xf32> to vector<16x32xf32>
    %c1_95 = arith.constant 1 : index
    %c0_96 = arith.constant 0 : index
    %c0_97 = arith.constant 0 : index
    %232 = vector.load %arg4[%c1_95, %c0_96, %c0_97] : memref<2x32x32xbf16, #tpu.memory_space<vmem>>, vector<1x32x32xbf16>
    %233 = vector.shape_cast %232 : vector<1x32x32xbf16> to vector<32x32xbf16>
    %c1_98 = arith.constant 1 : index
    %c0_99 = arith.constant 0 : index
    %c0_100 = arith.constant 0 : index
    %234 = vector.load %arg5[%c1_98, %c0_99, %c0_100] : memref<2x1x32xf32, #tpu.memory_space<vmem>>, vector<1x1x32xf32>
    %235 = vector.shape_cast %234 : vector<1x1x32xf32> to vector<1x32xf32>
    %236 = tpu.transpose %230, [1, 0] : vector<16x32xf32> -> vector<32x16xf32>
    %237 = vector.extract_strided_slice %229 {offsets = [0, 0], sizes = [16, 8], strides = [1, 1]} : vector<16x32xf32> to vector<16x8xf32>
    %238 = arith.truncf %237 : vector<16x8xf32> to vector<16x8xbf16>
    %239 = vector.extract_strided_slice %236 {offsets = [0, 0], sizes = [8, 16], strides = [1, 1]} : vector<32x16xf32> to vector<8x16xf32>
    %240 = arith.truncf %239 : vector<8x16xf32> to vector<8x16xbf16>
    %241 = vector.extract_strided_slice %231 {offsets = [0, 0], sizes = [16, 8], strides = [1, 1]} : vector<16x32xf32> to vector<16x8xf32>
    %242 = arith.truncf %241 : vector<16x8xf32> to vector<16x8xbf16>
    %cst_101 = arith.constant dense<0.000000e+00> : vector<16x16xf32>
    %243 = tpu.matmul %238, %240, %cst_101 {dimension_numbers = #tpu.dot_dimension_numbers<[1], [0], [0], [1], [0, 0, 1, 1], [], []>} : vector<16x8xbf16>, vector<8x16xbf16>, vector<16x16xf32> -> vector<16x16xf32>
    %cst_102 = arith.constant 0.353553385 : f32
    %244 = vector.broadcast %cst_102 : f32 to vector<16x16xf32>
    %245 = arith.mulf %243, %244 : vector<16x16xf32>
    %246 = arith.addf %245, %30 : vector<16x16xf32>
    %cst_103 = arith.constant dense<0xFF800000> : vector<16xf32>
    %247 = vector.multi_reduction <maximumf>, %246, %cst_103 [1] : vector<16x16xf32> to vector<16xf32>
    %248 = vector.shape_cast %247 : vector<16xf32> to vector<16x1xf32>
    %249 = vector.broadcast %248 : vector<16x1xf32> to vector<16x16xf32>
    %250 = arith.subf %246, %249 : vector<16x16xf32>
    %251 = math.exp %250 : vector<16x16xf32>
    %cst_104 = arith.constant dense<0.000000e+00> : vector<16xf32>
    %252 = vector.multi_reduction <add>, %251, %cst_104 [1] : vector<16x16xf32> to vector<16xf32>
    %253 = vector.shape_cast %252 : vector<16xf32> to vector<16x1xf32>
    %254 = tpu.reciprocal %253 {approx = true} : vector<16x1xf32> -> vector<16x1xf32>
    %255 = vector.broadcast %254 : vector<16x1xf32> to vector<16x16xf32>
    %256 = arith.mulf %251, %255 : vector<16x16xf32>
    %257 = arith.truncf %256 : vector<16x16xf32> to vector<16x16xbf16>
    %cst_105 = arith.constant dense<0.000000e+00> : vector<16x8xf32>
    %258 = tpu.matmul %257, %242, %cst_105 {dimension_numbers = #tpu.dot_dimension_numbers<[1], [0], [0], [1], [0, 0, 1, 1], [], []>} : vector<16x16xbf16>, vector<16x8xbf16>, vector<16x8xf32> -> vector<16x8xf32>
    %c0_106 = arith.constant 0 : index
    %c0_107 = arith.constant 0 : index
    %259 = vector.load %arg37[%c0_106, %c0_107] : memref<16x32xf32, #tpu.memory_space<vmem>>, vector<16x8xf32>
    tpu.vector_store %arg37[%c0_106, %c0_107], %258 {strides = array<i32>} : memref<16x32xf32, #tpu.memory_space<vmem>>, vector<16x8xf32>,
    %260 = vector.extract_strided_slice %229 {offsets = [0, 8], sizes = [16, 8], strides = [1, 1]} : vector<16x32xf32> to vector<16x8xf32>
    %261 = arith.truncf %260 : vector<16x8xf32> to vector<16x8xbf16>
    %262 = vector.extract_strided_slice %236 {offsets = [8, 0], sizes = [8, 16], strides = [1, 1]} : vector<32x16xf32> to vector<8x16xf32>
    %263 = arith.truncf %262 : vector<8x16xf32> to vector<8x16xbf16>
    %264 = vector.extract_strided_slice %231 {offsets = [0, 8], sizes = [16, 8], strides = [1, 1]} : vector<16x32xf32> to vector<16x8xf32>
    %265 = arith.truncf %264 : vector<16x8xf32> to vector<16x8xbf16>
    %cst_108 = arith.constant dense<0.000000e+00> : vector<16x16xf32>
    %266 = tpu.matmul %261, %263, %cst_108 {dimension_numbers = #tpu.dot_dimension_numbers<[1], [0], [0], [1], [0, 0, 1, 1], [], []>} : vector<16x8xbf16>, vector<8x16xbf16>, vector<16x16xf32> -> vector<16x16xf32>
    %cst_109 = arith.constant 0.353553385 : f32
    %267 = vector.broadcast %cst_109 : f32 to vector<16x16xf32>
    %268 = arith.mulf %266, %267 : vector<16x16xf32>
    %269 = arith.addf %268, %30 : vector<16x16xf32>
    %cst_110 = arith.constant dense<0xFF800000> : vector<16xf32>
    %270 = vector.multi_reduction <maximumf>, %269, %cst_110 [1] : vector<16x16xf32> to vector<16xf32>
    %271 = vector.shape_cast %270 : vector<16xf32> to vector<16x1xf32>
    %272 = vector.broadcast %271 : vector<16x1xf32> to vector<16x16xf32>
    %273 = arith.subf %269, %272 : vector<16x16xf32>
    %274 = math.exp %273 : vector<16x16xf32>
    %cst_111 = arith.constant dense<0.000000e+00> : vector<16xf32>
    %275 = vector.multi_reduction <add>, %274, %cst_111 [1] : vector<16x16xf32> to vector<16xf32>
    %276 = vector.shape_cast %275 : vector<16xf32> to vector<16x1xf32>
    %277 = tpu.reciprocal %276 {approx = true} : vector<16x1xf32> -> vector<16x1xf32>
    %278 = vector.broadcast %277 : vector<16x1xf32> to vector<16x16xf32>
    %279 = arith.mulf %274, %278 : vector<16x16xf32>
    %280 = arith.truncf %279 : vector<16x16xf32> to vector<16x16xbf16>
    %cst_112 = arith.constant dense<0.000000e+00> : vector<16x8xf32>
    %281 = tpu.matmul %280, %265, %cst_112 {dimension_numbers = #tpu.dot_dimension_numbers<[1], [0], [0], [1], [0, 0, 1, 1], [], []>} : vector<16x16xbf16>, vector<16x8xbf16>, vector<16x8xf32> -> vector<16x8xf32>
    %c0_113 = arith.constant 0 : index
    %c8_114 = arith.constant 8 : index
    %282 = vector.load %arg37[%c0_113, %c8_114] : memref<16x32xf32, #tpu.memory_space<vmem>>, vector<16x8xf32>
    tpu.vector_store %arg37[%c0_113, %c8_114], %281 {strides = array<i32>} : memref<16x32xf32, #tpu.memory_space<vmem>>, vector<16x8xf32>,
    %283 = vector.extract_strided_slice %229 {offsets = [0, 16], sizes = [16, 8], strides = [1, 1]} : vector<16x32xf32> to vector<16x8xf32>
    %284 = arith.truncf %283 : vector<16x8xf32> to vector<16x8xbf16>
    %285 = vector.extract_strided_slice %236 {offsets = [16, 0], sizes = [8, 16], strides = [1, 1]} : vector<32x16xf32> to vector<8x16xf32>
    %286 = arith.truncf %285 : vector<8x16xf32> to vector<8x16xbf16>
    %287 = vector.extract_strided_slice %231 {offsets = [0, 16], sizes = [16, 8], strides = [1, 1]} : vector<16x32xf32> to vector<16x8xf32>
    %288 = arith.truncf %287 : vector<16x8xf32> to vector<16x8xbf16>
    %cst_115 = arith.constant dense<0.000000e+00> : vector<16x16xf32>
    %289 = tpu.matmul %284, %286, %cst_115 {dimension_numbers = #tpu.dot_dimension_numbers<[1], [0], [0], [1], [0, 0, 1, 1], [], []>} : vector<16x8xbf16>, vector<8x16xbf16>, vector<16x16xf32> -> vector<16x16xf32>
    %cst_116 = arith.constant 0.353553385 : f32
    %290 = vector.broadcast %cst_116 : f32 to vector<16x16xf32>
    %291 = arith.mulf %289, %290 : vector<16x16xf32>
    %292 = arith.addf %291, %30 : vector<16x16xf32>
    %cst_117 = arith.constant dense<0xFF800000> : vector<16xf32>
    %293 = vector.multi_reduction <maximumf>, %292, %cst_117 [1] : vector<16x16xf32> to vector<16xf32>
    %294 = vector.shape_cast %293 : vector<16xf32> to vector<16x1xf32>
    %295 = vector.broadcast %294 : vector<16x1xf32> to vector<16x16xf32>
    %296 = arith.subf %292, %295 : vector<16x16xf32>
    %297 = math.exp %296 : vector<16x16xf32>
    %cst_118 = arith.constant dense<0.000000e+00> : vector<16xf32>
    %298 = vector.multi_reduction <add>, %297, %cst_118 [1] : vector<16x16xf32> to vector<16xf32>
    %299 = vector.shape_cast %298 : vector<16xf32> to vector<16x1xf32>
    %300 = tpu.reciprocal %299 {approx = true} : vector<16x1xf32> -> vector<16x1xf32>
    %301 = vector.broadcast %300 : vector<16x1xf32> to vector<16x16xf32>
    %302 = arith.mulf %297, %301 : vector<16x16xf32>
    %303 = arith.truncf %302 : vector<16x16xf32> to vector<16x16xbf16>
    %cst_119 = arith.constant dense<0.000000e+00> : vector<16x8xf32>
    %304 = tpu.matmul %303, %288, %cst_119 {dimension_numbers = #tpu.dot_dimension_numbers<[1], [0], [0], [1], [0, 0, 1, 1], [], []>} : vector<16x16xbf16>, vector<16x8xbf16>, vector<16x8xf32> -> vector<16x8xf32>
    %c0_120 = arith.constant 0 : index
    %c16_121 = arith.constant 16 : index
    %305 = vector.load %arg37[%c0_120, %c16_121] : memref<16x32xf32, #tpu.memory_space<vmem>>, vector<16x8xf32>
    tpu.vector_store %arg37[%c0_120, %c16_121], %304 {strides = array<i32>} : memref<16x32xf32, #tpu.memory_space<vmem>>, vector<16x8xf32>,
    %306 = vector.extract_strided_slice %229 {offsets = [0, 24], sizes = [16, 8], strides = [1, 1]} : vector<16x32xf32> to vector<16x8xf32>
    %307 = arith.truncf %306 : vector<16x8xf32> to vector<16x8xbf16>
    %308 = vector.extract_strided_slice %236 {offsets = [24, 0], sizes = [8, 16], strides = [1, 1]} : vector<32x16xf32> to vector<8x16xf32>
    %309 = arith.truncf %308 : vector<8x16xf32> to vector<8x16xbf16>
    %310 = vector.extract_strided_slice %231 {offsets = [0, 24], sizes = [16, 8], strides = [1, 1]} : vector<16x32xf32> to vector<16x8xf32>
    %311 = arith.truncf %310 : vector<16x8xf32> to vector<16x8xbf16>
    %cst_122 = arith.constant dense<0.000000e+00> : vector<16x16xf32>
    %312 = tpu.matmul %307, %309, %cst_122 {dimension_numbers = #tpu.dot_dimension_numbers<[1], [0], [0], [1], [0, 0, 1, 1], [], []>} : vector<16x8xbf16>, vector<8x16xbf16>, vector<16x16xf32> -> vector<16x16xf32>
    %cst_123 = arith.constant 0.353553385 : f32
    %313 = vector.broadcast %cst_123 : f32 to vector<16x16xf32>
    %314 = arith.mulf %312, %313 : vector<16x16xf32>
    %315 = arith.addf %314, %30 : vector<16x16xf32>
    %cst_124 = arith.constant dense<0xFF800000> : vector<16xf32>
    %316 = vector.multi_reduction <maximumf>, %315, %cst_124 [1] : vector<16x16xf32> to vector<16xf32>
    %317 = vector.shape_cast %316 : vector<16xf32> to vector<16x1xf32>
    %318 = vector.broadcast %317 : vector<16x1xf32> to vector<16x16xf32>
    %319 = arith.subf %315, %318 : vector<16x16xf32>
    %320 = math.exp %319 : vector<16x16xf32>
    %cst_125 = arith.constant dense<0.000000e+00> : vector<16xf32>
    %321 = vector.multi_reduction <add>, %320, %cst_125 [1] : vector<16x16xf32> to vector<16xf32>
    %322 = vector.shape_cast %321 : vector<16xf32> to vector<16x1xf32>
    %323 = tpu.reciprocal %322 {approx = true} : vector<16x1xf32> -> vector<16x1xf32>
    %324 = vector.broadcast %323 : vector<16x1xf32> to vector<16x16xf32>
    %325 = arith.mulf %320, %324 : vector<16x16xf32>
    %326 = arith.truncf %325 : vector<16x16xf32> to vector<16x16xbf16>
    %cst_126 = arith.constant dense<0.000000e+00> : vector<16x8xf32>
    %327 = tpu.matmul %326, %311, %cst_126 {dimension_numbers = #tpu.dot_dimension_numbers<[1], [0], [0], [1], [0, 0, 1, 1], [], []>} : vector<16x16xbf16>, vector<16x8xbf16>, vector<16x8xf32> -> vector<16x8xf32>
    %c0_127 = arith.constant 0 : index
    %c24_128 = arith.constant 24 : index
    %328 = vector.load %arg37[%c0_127, %c24_128] : memref<16x32xf32, #tpu.memory_space<vmem>>, vector<16x8xf32>
    tpu.vector_store %arg37[%c0_127, %c24_128], %327 {strides = array<i32>} : memref<16x32xf32, #tpu.memory_space<vmem>>, vector<16x8xf32>,
    %c0_129 = arith.constant 0 : index
    %c0_130 = arith.constant 0 : index
    %329 = vector.load %arg37[%c0_129, %c0_130] : memref<16x32xf32, #tpu.memory_space<vmem>>, vector<16x32xf32>
    %330 = arith.truncf %329 : vector<16x32xf32> to vector<16x32xbf16>
    %cst_131 = arith.constant dense<0.000000e+00> : vector<16x32xf32>
    %331 = tpu.matmul %330, %233, %cst_131 {dimension_numbers = #tpu.dot_dimension_numbers<[1], [0], [0], [1], [0, 0, 1, 1], [], []>} : vector<16x32xbf16>, vector<32x32xbf16>, vector<16x32xf32> -> vector<16x32xf32>
    %332 = vector.broadcast %235 : vector<1x32xf32> to vector<16x32xf32>
    %333 = arith.addf %331, %332 : vector<16x32xf32>
    %334 = arith.addf %220, %333 : vector<16x32xf32>
    %c1_132 = arith.constant 1 : index
    %c0_133 = arith.constant 0 : index
    %c0_134 = arith.constant 0 : index
    %335 = vector.load %arg6[%c1_132, %c0_133, %c0_134] : memref<2x1x32xf32, #tpu.memory_space<vmem>>, vector<1x1x32xf32>
    %336 = vector.shape_cast %335 : vector<1x1x32xf32> to vector<1x32xf32>
    %c1_135 = arith.constant 1 : index
    %c0_136 = arith.constant 0 : index
    %c0_137 = arith.constant 0 : index
    %337 = vector.load %arg7[%c1_135, %c0_136, %c0_137] : memref<2x1x32xf32, #tpu.memory_space<vmem>>, vector<1x1x32xf32>
    %338 = vector.shape_cast %337 : vector<1x1x32xf32> to vector<1x32xf32>
    %cst_138 = arith.constant dense<0.000000e+00> : vector<16xf32>
    %339 = vector.multi_reduction <add>, %334, %cst_138 [1] : vector<16x32xf32> to vector<16xf32>
    %340 = vector.shape_cast %339 : vector<16xf32> to vector<16x1xf32>
    %cst_139 = arith.constant 3.200000e+01 : f32
    %341 = vector.broadcast %cst_139 : f32 to vector<16x1xf32>
    %342 = arith.divf %340, %341 : vector<16x1xf32>
    %343 = vector.broadcast %342 : vector<16x1xf32> to vector<16x32xf32>
    %344 = arith.subf %334, %343 : vector<16x32xf32>
    %345 = arith.mulf %344, %344 : vector<16x32xf32>
    %cst_140 = arith.constant dense<0.000000e+00> : vector<16xf32>
    %346 = vector.multi_reduction <add>, %345, %cst_140 [1] : vector<16x32xf32> to vector<16xf32>
    %347 = vector.shape_cast %346 : vector<16xf32> to vector<16x1xf32>
    %cst_141 = arith.constant 3.200000e+01 : f32
    %348 = vector.broadcast %cst_141 : f32 to vector<16x1xf32>
    %349 = arith.divf %347, %348 : vector<16x1xf32>
    %350 = vector.broadcast %342 : vector<16x1xf32> to vector<16x32xf32>
    %351 = arith.subf %334, %350 : vector<16x32xf32>
    %cst_142 = arith.constant 9.99999974E-6 : f32
    %352 = vector.broadcast %cst_142 : f32 to vector<16x1xf32>
    %353 = arith.addf %349, %352 : vector<16x1xf32>
    %354 = math.rsqrt %353 : vector<16x1xf32>
    %355 = vector.broadcast %354 : vector<16x1xf32> to vector<16x32xf32>
    %356 = arith.mulf %351, %355 : vector<16x32xf32>
    %357 = vector.broadcast %336 : vector<1x32xf32> to vector<16x32xf32>
    %358 = arith.mulf %356, %357 : vector<16x32xf32>
    %359 = vector.broadcast %338 : vector<1x32xf32> to vector<16x32xf32>
    %360 = arith.addf %358, %359 : vector<16x32xf32>
    %c1_143 = arith.constant 1 : index
    %c0_144 = arith.constant 0 : index
    %c0_145 = arith.constant 0 : index
    %361 = vector.load %arg8[%c1_143, %c0_144, %c0_145] : memref<2x32x64xbf16, #tpu.memory_space<vmem>>, vector<1x32x64xbf16>
    %362 = vector.shape_cast %361 : vector<1x32x64xbf16> to vector<32x64xbf16>
    %363 = arith.truncf %360 : vector<16x32xf32> to vector<16x32xbf16>
    %cst_146 = arith.constant dense<0.000000e+00> : vector<16x64xf32>
    %364 = tpu.matmul %363, %362, %cst_146 {dimension_numbers = #tpu.dot_dimension_numbers<[1], [0], [0], [1], [0, 0, 1, 1], [], []>} : vector<16x32xbf16>, vector<32x64xbf16>, vector<16x64xf32> -> vector<16x64xf32>
    %c1_147 = arith.constant 1 : index
    %c0_148 = arith.constant 0 : index
    %c0_149 = arith.constant 0 : index
    %365 = vector.load %arg9[%c1_147, %c0_148, %c0_149] : memref<2x1x64xf32, #tpu.memory_space<vmem>>, vector<1x1x64xf32>
    %366 = vector.shape_cast %365 : vector<1x1x64xf32> to vector<1x64xf32>
    %367 = vector.broadcast %366 : vector<1x64xf32> to vector<16x64xf32>
    %368 = arith.addf %364, %367 : vector<16x64xf32>
    %cst_150 = arith.constant 0.000000e+00 : f32
    %369 = vector.broadcast %cst_150 : f32 to vector<16x64xf32>
    %370 = arith.maximumf %368, %369 : vector<16x64xf32>
    %c1_151 = arith.constant 1 : index
    %c0_152 = arith.constant 0 : index
    %c0_153 = arith.constant 0 : index
    %371 = vector.load %arg10[%c1_151, %c0_152, %c0_153] : memref<2x64x32xbf16, #tpu.memory_space<vmem>>, vector<1x64x32xbf16>
    %372 = vector.shape_cast %371 : vector<1x64x32xbf16> to vector<64x32xbf16>
    %373 = arith.truncf %370 : vector<16x64xf32> to vector<16x64xbf16>
    %cst_154 = arith.constant dense<0.000000e+00> : vector<16x32xf32>
    %374 = tpu.matmul %373, %372, %cst_154 {dimension_numbers = #tpu.dot_dimension_numbers<[1], [0], [0], [1], [0, 0, 1, 1], [], []>} : vector<16x64xbf16>, vector<64x32xbf16>, vector<16x32xf32> -> vector<16x32xf32>
    %c1_155 = arith.constant 1 : index
    %c0_156 = arith.constant 0 : index
    %c0_157 = arith.constant 0 : index
    %375 = vector.load %arg11[%c1_155, %c0_156, %c0_157] : memref<2x1x32xf32, #tpu.memory_space<vmem>>, vector<1x1x32xf32>
    %376 = vector.shape_cast %375 : vector<1x1x32xf32> to vector<1x32xf32>
    %377 = vector.broadcast %376 : vector<1x32xf32> to vector<16x32xf32>
    %378 = arith.addf %374, %377 : vector<16x32xf32>
    %379 = arith.addf %360, %378 : vector<16x32xf32>
    %c1_158 = arith.constant 1 : index
    %c0_159 = arith.constant 0 : index
    %c0_160 = arith.constant 0 : index
    %380 = vector.load %arg12[%c1_158, %c0_159, %c0_160] : memref<2x1x32xf32, #tpu.memory_space<vmem>>, vector<1x1x32xf32>
    %381 = vector.shape_cast %380 : vector<1x1x32xf32> to vector<1x32xf32>
    %c1_161 = arith.constant 1 : index
    %c0_162 = arith.constant 0 : index
    %c0_163 = arith.constant 0 : index
    %382 = vector.load %arg13[%c1_161, %c0_162, %c0_163] : memref<2x1x32xf32, #tpu.memory_space<vmem>>, vector<1x1x32xf32>
    %383 = vector.shape_cast %382 : vector<1x1x32xf32> to vector<1x32xf32>
    %cst_164 = arith.constant dense<0.000000e+00> : vector<16xf32>
    %384 = vector.multi_reduction <add>, %379, %cst_164 [1] : vector<16x32xf32> to vector<16xf32>
    %385 = vector.shape_cast %384 : vector<16xf32> to vector<16x1xf32>
    %cst_165 = arith.constant 3.200000e+01 : f32
    %386 = vector.broadcast %cst_165 : f32 to vector<16x1xf32>
    %387 = arith.divf %385, %386 : vector<16x1xf32>
    %388 = vector.broadcast %387 : vector<16x1xf32> to vector<16x32xf32>
    %389 = arith.subf %379, %388 : vector<16x32xf32>
    %390 = arith.mulf %389, %389 : vector<16x32xf32>
    %cst_166 = arith.constant dense<0.000000e+00> : vector<16xf32>
    %391 = vector.multi_reduction <add>, %390, %cst_166 [1] : vector<16x32xf32> to vector<16xf32>
    %392 = vector.shape_cast %391 : vector<16xf32> to vector<16x1xf32>
    %cst_167 = arith.constant 3.200000e+01 : f32
    %393 = vector.broadcast %cst_167 : f32 to vector<16x1xf32>
    %394 = arith.divf %392, %393 : vector<16x1xf32>
    %395 = vector.broadcast %387 : vector<16x1xf32> to vector<16x32xf32>
    %396 = arith.subf %379, %395 : vector<16x32xf32>
    %cst_168 = arith.constant 9.99999974E-6 : f32
    %397 = vector.broadcast %cst_168 : f32 to vector<16x1xf32>
    %398 = arith.addf %394, %397 : vector<16x1xf32>
    %399 = math.rsqrt %398 : vector<16x1xf32>
    %400 = vector.broadcast %399 : vector<16x1xf32> to vector<16x32xf32>
    %401 = arith.mulf %396, %400 : vector<16x32xf32>
    %402 = vector.broadcast %381 : vector<1x32xf32> to vector<16x32xf32>
    %403 = arith.mulf %401, %402 : vector<16x32xf32>
    %404 = vector.broadcast %383 : vector<1x32xf32> to vector<16x32xf32>
    %405 = arith.addf %403, %404 : vector<16x32xf32>
    %c0_169 = arith.constant 0 : index
    %c0_170 = arith.constant 0 : index
    %406 = vector.load %arg26[%c0_169, %c0_170] : memref<32x32xbf16, #tpu.memory_space<vmem>>, vector<32x32xbf16>
    %407 = arith.truncf %405 : vector<16x32xf32> to vector<16x32xbf16>
    %cst_171 = arith.constant dense<0.000000e+00> : vector<16x32xf32>
    %408 = tpu.matmul %407, %406, %cst_171 {dimension_numbers = #tpu.dot_dimension_numbers<[1], [0], [0], [1], [0, 0, 1, 1], [], []>} : vector<16x32xbf16>, vector<32x32xbf16>, vector<16x32xf32> -> vector<16x32xf32>
    %c0_172 = arith.constant 0 : index
    %c0_173 = arith.constant 0 : index
    %409 = vector.load %arg27[%c0_172, %c0_173] : memref<1x32xf32, #tpu.memory_space<vmem>>, vector<1x32xf32>
    %410 = vector.broadcast %409 : vector<1x32xf32> to vector<16x32xf32>
    %411 = arith.addf %408, %410 : vector<16x32xf32>
    %c0_174 = arith.constant 0 : index
    %c0_175 = arith.constant 0 : index
    %c0_176 = arith.constant 0 : index
    %412 = vector.load %arg14[%c0_174, %c0_175, %c0_176] : memref<2x32x96xbf16, #tpu.memory_space<vmem>>, vector<1x32x96xbf16>
    %413 = vector.shape_cast %412 : vector<1x32x96xbf16> to vector<32x96xbf16>
    %414 = arith.truncf %2 : vector<16x32xf32> to vector<16x32xbf16>
    %cst_177 = arith.constant dense<0.000000e+00> : vector<16x96xf32>
    %415 = tpu.matmul %414, %413, %cst_177 {dimension_numbers = #tpu.dot_dimension_numbers<[1], [0], [0], [1], [0, 0, 1, 1], [], []>} : vector<16x32xbf16>, vector<32x96xbf16>, vector<16x96xf32> -> vector<16x96xf32>
    %c0_178 = arith.constant 0 : index
    %c0_179 = arith.constant 0 : index
    %c0_180 = arith.constant 0 : index
    %416 = vector.load %arg15[%c0_178, %c0_179, %c0_180] : memref<2x1x96xf32, #tpu.memory_space<vmem>>, vector<1x1x96xf32>
    %417 = vector.shape_cast %416 : vector<1x1x96xf32> to vector<1x96xf32>
    %418 = vector.broadcast %417 : vector<1x96xf32> to vector<16x96xf32>
    %419 = arith.addf %415, %418 : vector<16x96xf32>
    %420 = vector.extract_strided_slice %419 {offsets = [0, 0], sizes = [16, 32], strides = [1, 1]} : vector<16x96xf32> to vector<16x32xf32>
    %421 = vector.extract_strided_slice %419 {offsets = [0, 32], sizes = [16, 32], strides = [1, 1]} : vector<16x96xf32> to vector<16x32xf32>
    %422 = vector.extract_strided_slice %419 {offsets = [0, 64], sizes = [16, 32], strides = [1, 1]} : vector<16x96xf32> to vector<16x32xf32>
    %c0_181 = arith.constant 0 : index
    %c0_182 = arith.constant 0 : index
    %c0_183 = arith.constant 0 : index
    %423 = vector.load %arg16[%c0_181, %c0_182, %c0_183] : memref<2x32x32xbf16, #tpu.memory_space<vmem>>, vector<1x32x32xbf16>
    %424 = vector.shape_cast %423 : vector<1x32x32xbf16> to vector<32x32xbf16>
    %c0_184 = arith.constant 0 : index
    %c0_185 = arith.constant 0 : index
    %c0_186 = arith.constant 0 : index
    %425 = vector.load %arg17[%c0_184, %c0_185, %c0_186] : memref<2x1x32xf32, #tpu.memory_space<vmem>>, vector<1x1x32xf32>
    %426 = vector.shape_cast %425 : vector<1x1x32xf32> to vector<1x32xf32>
    %427 = tpu.transpose %421, [1, 0] : vector<16x32xf32> -> vector<32x16xf32>
    %428 = vector.extract_strided_slice %420 {offsets = [0, 0], sizes = [16, 8], strides = [1, 1]} : vector<16x32xf32> to vector<16x8xf32>
    %429 = arith.truncf %428 : vector<16x8xf32> to vector<16x8xbf16>
    %430 = vector.extract_strided_slice %427 {offsets = [0, 0], sizes = [8, 16], strides = [1, 1]} : vector<32x16xf32> to vector<8x16xf32>
    %431 = arith.truncf %430 : vector<8x16xf32> to vector<8x16xbf16>
    %432 = vector.extract_strided_slice %422 {offsets = [0, 0], sizes = [16, 8], strides = [1, 1]} : vector<16x32xf32> to vector<16x8xf32>
    %433 = arith.truncf %432 : vector<16x8xf32> to vector<16x8xbf16>
    %cst_187 = arith.constant dense<0.000000e+00> : vector<16x16xf32>
    %434 = tpu.matmul %429, %431, %cst_187 {dimension_numbers = #tpu.dot_dimension_numbers<[1], [0], [0], [1], [0, 0, 1, 1], [], []>} : vector<16x8xbf16>, vector<8x16xbf16>, vector<16x16xf32> -> vector<16x16xf32>
    %cst_188 = arith.constant 0.353553385 : f32
    %435 = vector.broadcast %cst_188 : f32 to vector<16x16xf32>
    %436 = arith.mulf %434, %435 : vector<16x16xf32>
    %437 = arith.addf %436, %35 : vector<16x16xf32>
    %cst_189 = arith.constant dense<0xFF800000> : vector<16xf32>
    %438 = vector.multi_reduction <maximumf>, %437, %cst_189 [1] : vector<16x16xf32> to vector<16xf32>
    %439 = vector.shape_cast %438 : vector<16xf32> to vector<16x1xf32>
    %440 = vector.broadcast %439 : vector<16x1xf32> to vector<16x16xf32>
    %441 = arith.subf %437, %440 : vector<16x16xf32>
    %442 = math.exp %441 : vector<16x16xf32>
    %cst_190 = arith.constant dense<0.000000e+00> : vector<16xf32>
    %443 = vector.multi_reduction <add>, %442, %cst_190 [1] : vector<16x16xf32> to vector<16xf32>
    %444 = vector.shape_cast %443 : vector<16xf32> to vector<16x1xf32>
    %445 = tpu.reciprocal %444 {approx = true} : vector<16x1xf32> -> vector<16x1xf32>
    %446 = vector.broadcast %445 : vector<16x1xf32> to vector<16x16xf32>
    %447 = arith.mulf %442, %446 : vector<16x16xf32>
    %448 = arith.truncf %447 : vector<16x16xf32> to vector<16x16xbf16>
    %cst_191 = arith.constant dense<0.000000e+00> : vector<16x8xf32>
    %449 = tpu.matmul %448, %433, %cst_191 {dimension_numbers = #tpu.dot_dimension_numbers<[1], [0], [0], [1], [0, 0, 1, 1], [], []>} : vector<16x16xbf16>, vector<16x8xbf16>, vector<16x8xf32> -> vector<16x8xf32>
    %c0_192 = arith.constant 0 : index
    %c0_193 = arith.constant 0 : index
    %450 = vector.load %arg37[%c0_192, %c0_193] : memref<16x32xf32, #tpu.memory_space<vmem>>, vector<16x8xf32>
    tpu.vector_store %arg37[%c0_192, %c0_193], %449 {strides = array<i32>} : memref<16x32xf32, #tpu.memory_space<vmem>>, vector<16x8xf32>,
    %451 = vector.extract_strided_slice %420 {offsets = [0, 8], sizes = [16, 8], strides = [1, 1]} : vector<16x32xf32> to vector<16x8xf32>
    %452 = arith.truncf %451 : vector<16x8xf32> to vector<16x8xbf16>
    %453 = vector.extract_strided_slice %427 {offsets = [8, 0], sizes = [8, 16], strides = [1, 1]} : vector<32x16xf32> to vector<8x16xf32>
    %454 = arith.truncf %453 : vector<8x16xf32> to vector<8x16xbf16>
    %455 = vector.extract_strided_slice %422 {offsets = [0, 8], sizes = [16, 8], strides = [1, 1]} : vector<16x32xf32> to vector<16x8xf32>
    %456 = arith.truncf %455 : vector<16x8xf32> to vector<16x8xbf16>
    %cst_194 = arith.constant dense<0.000000e+00> : vector<16x16xf32>
    %457 = tpu.matmul %452, %454, %cst_194 {dimension_numbers = #tpu.dot_dimension_numbers<[1], [0], [0], [1], [0, 0, 1, 1], [], []>} : vector<16x8xbf16>, vector<8x16xbf16>, vector<16x16xf32> -> vector<16x16xf32>
    %cst_195 = arith.constant 0.353553385 : f32
    %458 = vector.broadcast %cst_195 : f32 to vector<16x16xf32>
    %459 = arith.mulf %457, %458 : vector<16x16xf32>
    %460 = arith.addf %459, %35 : vector<16x16xf32>
    %cst_196 = arith.constant dense<0xFF800000> : vector<16xf32>
    %461 = vector.multi_reduction <maximumf>, %460, %cst_196 [1] : vector<16x16xf32> to vector<16xf32>
    %462 = vector.shape_cast %461 : vector<16xf32> to vector<16x1xf32>
    %463 = vector.broadcast %462 : vector<16x1xf32> to vector<16x16xf32>
    %464 = arith.subf %460, %463 : vector<16x16xf32>
    %465 = math.exp %464 : vector<16x16xf32>
    %cst_197 = arith.constant dense<0.000000e+00> : vector<16xf32>
    %466 = vector.multi_reduction <add>, %465, %cst_197 [1] : vector<16x16xf32> to vector<16xf32>
    %467 = vector.shape_cast %466 : vector<16xf32> to vector<16x1xf32>
    %468 = tpu.reciprocal %467 {approx = true} : vector<16x1xf32> -> vector<16x1xf32>
    %469 = vector.broadcast %468 : vector<16x1xf32> to vector<16x16xf32>
    %470 = arith.mulf %465, %469 : vector<16x16xf32>
    %471 = arith.truncf %470 : vector<16x16xf32> to vector<16x16xbf16>
    %cst_198 = arith.constant dense<0.000000e+00> : vector<16x8xf32>
    %472 = tpu.matmul %471, %456, %cst_198 {dimension_numbers = #tpu.dot_dimension_numbers<[1], [0], [0], [1], [0, 0, 1, 1], [], []>} : vector<16x16xbf16>, vector<16x8xbf16>, vector<16x8xf32> -> vector<16x8xf32>
    %c0_199 = arith.constant 0 : index
    %c8_200 = arith.constant 8 : index
    %473 = vector.load %arg37[%c0_199, %c8_200] : memref<16x32xf32, #tpu.memory_space<vmem>>, vector<16x8xf32>
    tpu.vector_store %arg37[%c0_199, %c8_200], %472 {strides = array<i32>} : memref<16x32xf32, #tpu.memory_space<vmem>>, vector<16x8xf32>,
    %474 = vector.extract_strided_slice %420 {offsets = [0, 16], sizes = [16, 8], strides = [1, 1]} : vector<16x32xf32> to vector<16x8xf32>
    %475 = arith.truncf %474 : vector<16x8xf32> to vector<16x8xbf16>
    %476 = vector.extract_strided_slice %427 {offsets = [16, 0], sizes = [8, 16], strides = [1, 1]} : vector<32x16xf32> to vector<8x16xf32>
    %477 = arith.truncf %476 : vector<8x16xf32> to vector<8x16xbf16>
    %478 = vector.extract_strided_slice %422 {offsets = [0, 16], sizes = [16, 8], strides = [1, 1]} : vector<16x32xf32> to vector<16x8xf32>
    %479 = arith.truncf %478 : vector<16x8xf32> to vector<16x8xbf16>
    %cst_201 = arith.constant dense<0.000000e+00> : vector<16x16xf32>
    %480 = tpu.matmul %475, %477, %cst_201 {dimension_numbers = #tpu.dot_dimension_numbers<[1], [0], [0], [1], [0, 0, 1, 1], [], []>} : vector<16x8xbf16>, vector<8x16xbf16>, vector<16x16xf32> -> vector<16x16xf32>
    %cst_202 = arith.constant 0.353553385 : f32
    %481 = vector.broadcast %cst_202 : f32 to vector<16x16xf32>
    %482 = arith.mulf %480, %481 : vector<16x16xf32>
    %483 = arith.addf %482, %35 : vector<16x16xf32>
    %cst_203 = arith.constant dense<0xFF800000> : vector<16xf32>
    %484 = vector.multi_reduction <maximumf>, %483, %cst_203 [1] : vector<16x16xf32> to vector<16xf32>
    %485 = vector.shape_cast %484 : vector<16xf32> to vector<16x1xf32>
    %486 = vector.broadcast %485 : vector<16x1xf32> to vector<16x16xf32>
    %487 = arith.subf %483, %486 : vector<16x16xf32>
    %488 = math.exp %487 : vector<16x16xf32>
    %cst_204 = arith.constant dense<0.000000e+00> : vector<16xf32>
    %489 = vector.multi_reduction <add>, %488, %cst_204 [1] : vector<16x16xf32> to vector<16xf32>
    %490 = vector.shape_cast %489 : vector<16xf32> to vector<16x1xf32>
    %491 = tpu.reciprocal %490 {approx = true} : vector<16x1xf32> -> vector<16x1xf32>
    %492 = vector.broadcast %491 : vector<16x1xf32> to vector<16x16xf32>
    %493 = arith.mulf %488, %492 : vector<16x16xf32>
    %494 = arith.truncf %493 : vector<16x16xf32> to vector<16x16xbf16>
    %cst_205 = arith.constant dense<0.000000e+00> : vector<16x8xf32>
    %495 = tpu.matmul %494, %479, %cst_205 {dimension_numbers = #tpu.dot_dimension_numbers<[1], [0], [0], [1], [0, 0, 1, 1], [], []>} : vector<16x16xbf16>, vector<16x8xbf16>, vector<16x8xf32> -> vector<16x8xf32>
    %c0_206 = arith.constant 0 : index
    %c16_207 = arith.constant 16 : index
    %496 = vector.load %arg37[%c0_206, %c16_207] : memref<16x32xf32, #tpu.memory_space<vmem>>, vector<16x8xf32>
    tpu.vector_store %arg37[%c0_206, %c16_207], %495 {strides = array<i32>} : memref<16x32xf32, #tpu.memory_space<vmem>>, vector<16x8xf32>,
    %497 = vector.extract_strided_slice %420 {offsets = [0, 24], sizes = [16, 8], strides = [1, 1]} : vector<16x32xf32> to vector<16x8xf32>
    %498 = arith.truncf %497 : vector<16x8xf32> to vector<16x8xbf16>
    %499 = vector.extract_strided_slice %427 {offsets = [24, 0], sizes = [8, 16], strides = [1, 1]} : vector<32x16xf32> to vector<8x16xf32>
    %500 = arith.truncf %499 : vector<8x16xf32> to vector<8x16xbf16>
    %501 = vector.extract_strided_slice %422 {offsets = [0, 24], sizes = [16, 8], strides = [1, 1]} : vector<16x32xf32> to vector<16x8xf32>
    %502 = arith.truncf %501 : vector<16x8xf32> to vector<16x8xbf16>
    %cst_208 = arith.constant dense<0.000000e+00> : vector<16x16xf32>
    %503 = tpu.matmul %498, %500, %cst_208 {dimension_numbers = #tpu.dot_dimension_numbers<[1], [0], [0], [1], [0, 0, 1, 1], [], []>} : vector<16x8xbf16>, vector<8x16xbf16>, vector<16x16xf32> -> vector<16x16xf32>
    %cst_209 = arith.constant 0.353553385 : f32
    %504 = vector.broadcast %cst_209 : f32 to vector<16x16xf32>
    %505 = arith.mulf %503, %504 : vector<16x16xf32>
    %506 = arith.addf %505, %35 : vector<16x16xf32>
    %cst_210 = arith.constant dense<0xFF800000> : vector<16xf32>
    %507 = vector.multi_reduction <maximumf>, %506, %cst_210 [1] : vector<16x16xf32> to vector<16xf32>
    %508 = vector.shape_cast %507 : vector<16xf32> to vector<16x1xf32>
    %509 = vector.broadcast %508 : vector<16x1xf32> to vector<16x16xf32>
    %510 = arith.subf %506, %509 : vector<16x16xf32>
    %511 = math.exp %510 : vector<16x16xf32>
    %cst_211 = arith.constant dense<0.000000e+00> : vector<16xf32>
    %512 = vector.multi_reduction <add>, %511, %cst_211 [1] : vector<16x16xf32> to vector<16xf32>
    %513 = vector.shape_cast %512 : vector<16xf32> to vector<16x1xf32>
    %514 = tpu.reciprocal %513 {approx = true} : vector<16x1xf32> -> vector<16x1xf32>
    %515 = vector.broadcast %514 : vector<16x1xf32> to vector<16x16xf32>
    %516 = arith.mulf %511, %515 : vector<16x16xf32>
    %517 = arith.truncf %516 : vector<16x16xf32> to vector<16x16xbf16>
    %cst_212 = arith.constant dense<0.000000e+00> : vector<16x8xf32>
    %518 = tpu.matmul %517, %502, %cst_212 {dimension_numbers = #tpu.dot_dimension_numbers<[1], [0], [0], [1], [0, 0, 1, 1], [], []>} : vector<16x16xbf16>, vector<16x8xbf16>, vector<16x8xf32> -> vector<16x8xf32>
    %c0_213 = arith.constant 0 : index
    %c24_214 = arith.constant 24 : index
    %519 = vector.load %arg37[%c0_213, %c24_214] : memref<16x32xf32, #tpu.memory_space<vmem>>, vector<16x8xf32>
    tpu.vector_store %arg37[%c0_213, %c24_214], %518 {strides = array<i32>} : memref<16x32xf32, #tpu.memory_space<vmem>>, vector<16x8xf32>,
    %c0_215 = arith.constant 0 : index
    %c0_216 = arith.constant 0 : index
    %520 = vector.load %arg37[%c0_215, %c0_216] : memref<16x32xf32, #tpu.memory_space<vmem>>, vector<16x32xf32>
    %521 = arith.truncf %520 : vector<16x32xf32> to vector<16x32xbf16>
    %cst_217 = arith.constant dense<0.000000e+00> : vector<16x32xf32>
    %522 = tpu.matmul %521, %424, %cst_217 {dimension_numbers = #tpu.dot_dimension_numbers<[1], [0], [0], [1], [0, 0, 1, 1], [], []>} : vector<16x32xbf16>, vector<32x32xbf16>, vector<16x32xf32> -> vector<16x32xf32>
    %523 = vector.broadcast %426 : vector<1x32xf32> to vector<16x32xf32>
    %524 = arith.addf %522, %523 : vector<16x32xf32>
    %525 = arith.addf %2, %524 : vector<16x32xf32>
    %c0_218 = arith.constant 0 : index
    %c0_219 = arith.constant 0 : index
    %c0_220 = arith.constant 0 : index
    %526 = vector.load %arg18[%c0_218, %c0_219, %c0_220] : memref<2x1x32xf32, #tpu.memory_space<vmem>>, vector<1x1x32xf32>
    %527 = vector.shape_cast %526 : vector<1x1x32xf32> to vector<1x32xf32>
    %c0_221 = arith.constant 0 : index
    %c0_222 = arith.constant 0 : index
    %c0_223 = arith.constant 0 : index
    %528 = vector.load %arg19[%c0_221, %c0_222, %c0_223] : memref<2x1x32xf32, #tpu.memory_space<vmem>>, vector<1x1x32xf32>
    %529 = vector.shape_cast %528 : vector<1x1x32xf32> to vector<1x32xf32>
    %cst_224 = arith.constant dense<0.000000e+00> : vector<16xf32>
    %530 = vector.multi_reduction <add>, %525, %cst_224 [1] : vector<16x32xf32> to vector<16xf32>
    %531 = vector.shape_cast %530 : vector<16xf32> to vector<16x1xf32>
    %cst_225 = arith.constant 3.200000e+01 : f32
    %532 = vector.broadcast %cst_225 : f32 to vector<16x1xf32>
    %533 = arith.divf %531, %532 : vector<16x1xf32>
    %534 = vector.broadcast %533 : vector<16x1xf32> to vector<16x32xf32>
    %535 = arith.subf %525, %534 : vector<16x32xf32>
    %536 = arith.mulf %535, %535 : vector<16x32xf32>
    %cst_226 = arith.constant dense<0.000000e+00> : vector<16xf32>
    %537 = vector.multi_reduction <add>, %536, %cst_226 [1] : vector<16x32xf32> to vector<16xf32>
    %538 = vector.shape_cast %537 : vector<16xf32> to vector<16x1xf32>
    %cst_227 = arith.constant 3.200000e+01 : f32
    %539 = vector.broadcast %cst_227 : f32 to vector<16x1xf32>
    %540 = arith.divf %538, %539 : vector<16x1xf32>
    %541 = vector.broadcast %533 : vector<16x1xf32> to vector<16x32xf32>
    %542 = arith.subf %525, %541 : vector<16x32xf32>
    %cst_228 = arith.constant 9.99999974E-6 : f32
    %543 = vector.broadcast %cst_228 : f32 to vector<16x1xf32>
    %544 = arith.addf %540, %543 : vector<16x1xf32>
    %545 = math.rsqrt %544 : vector<16x1xf32>
    %546 = vector.broadcast %545 : vector<16x1xf32> to vector<16x32xf32>
    %547 = arith.mulf %542, %546 : vector<16x32xf32>
    %548 = vector.broadcast %527 : vector<1x32xf32> to vector<16x32xf32>
    %549 = arith.mulf %547, %548 : vector<16x32xf32>
    %550 = vector.broadcast %529 : vector<1x32xf32> to vector<16x32xf32>
    %551 = arith.addf %549, %550 : vector<16x32xf32>
    %c0_229 = arith.constant 0 : index
    %c0_230 = arith.constant 0 : index
    %c0_231 = arith.constant 0 : index
    %552 = vector.load %arg20[%c0_229, %c0_230, %c0_231] : memref<2x32x64xbf16, #tpu.memory_space<vmem>>, vector<1x32x64xbf16>
    %553 = vector.shape_cast %552 : vector<1x32x64xbf16> to vector<32x64xbf16>
    %554 = arith.truncf %551 : vector<16x32xf32> to vector<16x32xbf16>
    %cst_232 = arith.constant dense<0.000000e+00> : vector<16x64xf32>
    %555 = tpu.matmul %554, %553, %cst_232 {dimension_numbers = #tpu.dot_dimension_numbers<[1], [0], [0], [1], [0, 0, 1, 1], [], []>} : vector<16x32xbf16>, vector<32x64xbf16>, vector<16x64xf32> -> vector<16x64xf32>
    %c0_233 = arith.constant 0 : index
    %c0_234 = arith.constant 0 : index
    %c0_235 = arith.constant 0 : index
    %556 = vector.load %arg21[%c0_233, %c0_234, %c0_235] : memref<2x1x64xf32, #tpu.memory_space<vmem>>, vector<1x1x64xf32>
    %557 = vector.shape_cast %556 : vector<1x1x64xf32> to vector<1x64xf32>
    %558 = vector.broadcast %557 : vector<1x64xf32> to vector<16x64xf32>
    %559 = arith.addf %555, %558 : vector<16x64xf32>
    %cst_236 = arith.constant 0.000000e+00 : f32
    %560 = vector.broadcast %cst_236 : f32 to vector<16x64xf32>
    %561 = arith.maximumf %559, %560 : vector<16x64xf32>
    %c0_237 = arith.constant 0 : index
    %c0_238 = arith.constant 0 : index
    %c0_239 = arith.constant 0 : index
    %562 = vector.load %arg22[%c0_237, %c0_238, %c0_239] : memref<2x64x32xbf16, #tpu.memory_space<vmem>>, vector<1x64x32xbf16>
    %563 = vector.shape_cast %562 : vector<1x64x32xbf16> to vector<64x32xbf16>
    %564 = arith.truncf %561 : vector<16x64xf32> to vector<16x64xbf16>
    %cst_240 = arith.constant dense<0.000000e+00> : vector<16x32xf32>
    %565 = tpu.matmul %564, %563, %cst_240 {dimension_numbers = #tpu.dot_dimension_numbers<[1], [0], [0], [1], [0, 0, 1, 1], [], []>} : vector<16x64xbf16>, vector<64x32xbf16>, vector<16x32xf32> -> vector<16x32xf32>
    %c0_241 = arith.constant 0 : index
    %c0_242 = arith.constant 0 : index
    %c0_243 = arith.constant 0 : index
    %566 = vector.load %arg23[%c0_241, %c0_242, %c0_243] : memref<2x1x32xf32, #tpu.memory_space<vmem>>, vector<1x1x32xf32>
    %567 = vector.shape_cast %566 : vector<1x1x32xf32> to vector<1x32xf32>
    %568 = vector.broadcast %567 : vector<1x32xf32> to vector<16x32xf32>
    %569 = arith.addf %565, %568 : vector<16x32xf32>
    %570 = arith.addf %551, %569 : vector<16x32xf32>
    %c0_244 = arith.constant 0 : index
    %c0_245 = arith.constant 0 : index
    %c0_246 = arith.constant 0 : index
    %571 = vector.load %arg24[%c0_244, %c0_245, %c0_246] : memref<2x1x32xf32, #tpu.memory_space<vmem>>, vector<1x1x32xf32>
    %572 = vector.shape_cast %571 : vector<1x1x32xf32> to vector<1x32xf32>
    %c0_247 = arith.constant 0 : index
    %c0_248 = arith.constant 0 : index
    %c0_249 = arith.constant 0 : index
    %573 = vector.load %arg25[%c0_247, %c0_248, %c0_249] : memref<2x1x32xf32, #tpu.memory_space<vmem>>, vector<1x1x32xf32>
    %574 = vector.shape_cast %573 : vector<1x1x32xf32> to vector<1x32xf32>
    %cst_250 = arith.constant dense<0.000000e+00> : vector<16xf32>
    %575 = vector.multi_reduction <add>, %570, %cst_250 [1] : vector<16x32xf32> to vector<16xf32>
    %576 = vector.shape_cast %575 : vector<16xf32> to vector<16x1xf32>
    %cst_251 = arith.constant 3.200000e+01 : f32
    %577 = vector.broadcast %cst_251 : f32 to vector<16x1xf32>
    %578 = arith.divf %576, %577 : vector<16x1xf32>
    %579 = vector.broadcast %578 : vector<16x1xf32> to vector<16x32xf32>
    %580 = arith.subf %570, %579 : vector<16x32xf32>
    %581 = arith.mulf %580, %580 : vector<16x32xf32>
    %cst_252 = arith.constant dense<0.000000e+00> : vector<16xf32>
    %582 = vector.multi_reduction <add>, %581, %cst_252 [1] : vector<16x32xf32> to vector<16xf32>
    %583 = vector.shape_cast %582 : vector<16xf32> to vector<16x1xf32>
    %cst_253 = arith.constant 3.200000e+01 : f32
    %584 = vector.broadcast %cst_253 : f32 to vector<16x1xf32>
    %585 = arith.divf %583, %584 : vector<16x1xf32>
    %586 = vector.broadcast %578 : vector<16x1xf32> to vector<16x32xf32>
    %587 = arith.subf %570, %586 : vector<16x32xf32>
    %cst_254 = arith.constant 9.99999974E-6 : f32
    %588 = vector.broadcast %cst_254 : f32 to vector<16x1xf32>
    %589 = arith.addf %585, %588 : vector<16x1xf32>
    %590 = math.rsqrt %589 : vector<16x1xf32>
    %591 = vector.broadcast %590 : vector<16x1xf32> to vector<16x32xf32>
    %592 = arith.mulf %587, %591 : vector<16x32xf32>
    %593 = vector.broadcast %572 : vector<1x32xf32> to vector<16x32xf32>
    %594 = arith.mulf %592, %593 : vector<16x32xf32>
    %595 = vector.broadcast %574 : vector<1x32xf32> to vector<16x32xf32>
    %596 = arith.addf %594, %595 : vector<16x32xf32>
    %c1_255 = arith.constant 1 : index
    %c0_256 = arith.constant 0 : index
    %c0_257 = arith.constant 0 : index
    %597 = vector.load %arg14[%c1_255, %c0_256, %c0_257] : memref<2x32x96xbf16, #tpu.memory_space<vmem>>, vector<1x32x96xbf16>
    %598 = vector.shape_cast %597 : vector<1x32x96xbf16> to vector<32x96xbf16>
    %599 = arith.truncf %596 : vector<16x32xf32> to vector<16x32xbf16>
    %cst_258 = arith.constant dense<0.000000e+00> : vector<16x96xf32>
    %600 = tpu.matmul %599, %598, %cst_258 {dimension_numbers = #tpu.dot_dimension_numbers<[1], [0], [0], [1], [0, 0, 1, 1], [], []>} : vector<16x32xbf16>, vector<32x96xbf16>, vector<16x96xf32> -> vector<16x96xf32>
    %c1_259 = arith.constant 1 : index
    %c0_260 = arith.constant 0 : index
    %c0_261 = arith.constant 0 : index
    %601 = vector.load %arg15[%c1_259, %c0_260, %c0_261] : memref<2x1x96xf32, #tpu.memory_space<vmem>>, vector<1x1x96xf32>
    %602 = vector.shape_cast %601 : vector<1x1x96xf32> to vector<1x96xf32>
    %603 = vector.broadcast %602 : vector<1x96xf32> to vector<16x96xf32>
    %604 = arith.addf %600, %603 : vector<16x96xf32>
    %605 = vector.extract_strided_slice %604 {offsets = [0, 0], sizes = [16, 32], strides = [1, 1]} : vector<16x96xf32> to vector<16x32xf32>
    %606 = vector.extract_strided_slice %604 {offsets = [0, 32], sizes = [16, 32], strides = [1, 1]} : vector<16x96xf32> to vector<16x32xf32>
    %607 = vector.extract_strided_slice %604 {offsets = [0, 64], sizes = [16, 32], strides = [1, 1]} : vector<16x96xf32> to vector<16x32xf32>
    %c1_262 = arith.constant 1 : index
    %c0_263 = arith.constant 0 : index
    %c0_264 = arith.constant 0 : index
    %608 = vector.load %arg16[%c1_262, %c0_263, %c0_264] : memref<2x32x32xbf16, #tpu.memory_space<vmem>>, vector<1x32x32xbf16>
    %609 = vector.shape_cast %608 : vector<1x32x32xbf16> to vector<32x32xbf16>
    %c1_265 = arith.constant 1 : index
    %c0_266 = arith.constant 0 : index
    %c0_267 = arith.constant 0 : index
    %610 = vector.load %arg17[%c1_265, %c0_266, %c0_267] : memref<2x1x32xf32, #tpu.memory_space<vmem>>, vector<1x1x32xf32>
    %611 = vector.shape_cast %610 : vector<1x1x32xf32> to vector<1x32xf32>
    %612 = tpu.transpose %606, [1, 0] : vector<16x32xf32> -> vector<32x16xf32>
    %613 = vector.extract_strided_slice %605 {offsets = [0, 0], sizes = [16, 8], strides = [1, 1]} : vector<16x32xf32> to vector<16x8xf32>
    %614 = arith.truncf %613 : vector<16x8xf32> to vector<16x8xbf16>
    %615 = vector.extract_strided_slice %612 {offsets = [0, 0], sizes = [8, 16], strides = [1, 1]} : vector<32x16xf32> to vector<8x16xf32>
    %616 = arith.truncf %615 : vector<8x16xf32> to vector<8x16xbf16>
    %617 = vector.extract_strided_slice %607 {offsets = [0, 0], sizes = [16, 8], strides = [1, 1]} : vector<16x32xf32> to vector<16x8xf32>
    %618 = arith.truncf %617 : vector<16x8xf32> to vector<16x8xbf16>
    %cst_268 = arith.constant dense<0.000000e+00> : vector<16x16xf32>
    %619 = tpu.matmul %614, %616, %cst_268 {dimension_numbers = #tpu.dot_dimension_numbers<[1], [0], [0], [1], [0, 0, 1, 1], [], []>} : vector<16x8xbf16>, vector<8x16xbf16>, vector<16x16xf32> -> vector<16x16xf32>
    %cst_269 = arith.constant 0.353553385 : f32
    %620 = vector.broadcast %cst_269 : f32 to vector<16x16xf32>
    %621 = arith.mulf %619, %620 : vector<16x16xf32>
    %622 = arith.addf %621, %35 : vector<16x16xf32>
    %cst_270 = arith.constant dense<0xFF800000> : vector<16xf32>
    %623 = vector.multi_reduction <maximumf>, %622, %cst_270 [1] : vector<16x16xf32> to vector<16xf32>
    %624 = vector.shape_cast %623 : vector<16xf32> to vector<16x1xf32>
    %625 = vector.broadcast %624 : vector<16x1xf32> to vector<16x16xf32>
    %626 = arith.subf %622, %625 : vector<16x16xf32>
    %627 = math.exp %626 : vector<16x16xf32>
    %cst_271 = arith.constant dense<0.000000e+00> : vector<16xf32>
    %628 = vector.multi_reduction <add>, %627, %cst_271 [1] : vector<16x16xf32> to vector<16xf32>
    %629 = vector.shape_cast %628 : vector<16xf32> to vector<16x1xf32>
    %630 = tpu.reciprocal %629 {approx = true} : vector<16x1xf32> -> vector<16x1xf32>
    %631 = vector.broadcast %630 : vector<16x1xf32> to vector<16x16xf32>
    %632 = arith.mulf %627, %631 : vector<16x16xf32>
    %633 = arith.truncf %632 : vector<16x16xf32> to vector<16x16xbf16>
    %cst_272 = arith.constant dense<0.000000e+00> : vector<16x8xf32>
    %634 = tpu.matmul %633, %618, %cst_272 {dimension_numbers = #tpu.dot_dimension_numbers<[1], [0], [0], [1], [0, 0, 1, 1], [], []>} : vector<16x16xbf16>, vector<16x8xbf16>, vector<16x8xf32> -> vector<16x8xf32>
    %c0_273 = arith.constant 0 : index
    %c0_274 = arith.constant 0 : index
    %635 = vector.load %arg37[%c0_273, %c0_274] : memref<16x32xf32, #tpu.memory_space<vmem>>, vector<16x8xf32>
    tpu.vector_store %arg37[%c0_273, %c0_274], %634 {strides = array<i32>} : memref<16x32xf32, #tpu.memory_space<vmem>>, vector<16x8xf32>,
    %636 = vector.extract_strided_slice %605 {offsets = [0, 8], sizes = [16, 8], strides = [1, 1]} : vector<16x32xf32> to vector<16x8xf32>
    %637 = arith.truncf %636 : vector<16x8xf32> to vector<16x8xbf16>
    %638 = vector.extract_strided_slice %612 {offsets = [8, 0], sizes = [8, 16], strides = [1, 1]} : vector<32x16xf32> to vector<8x16xf32>
    %639 = arith.truncf %638 : vector<8x16xf32> to vector<8x16xbf16>
    %640 = vector.extract_strided_slice %607 {offsets = [0, 8], sizes = [16, 8], strides = [1, 1]} : vector<16x32xf32> to vector<16x8xf32>
    %641 = arith.truncf %640 : vector<16x8xf32> to vector<16x8xbf16>
    %cst_275 = arith.constant dense<0.000000e+00> : vector<16x16xf32>
    %642 = tpu.matmul %637, %639, %cst_275 {dimension_numbers = #tpu.dot_dimension_numbers<[1], [0], [0], [1], [0, 0, 1, 1], [], []>} : vector<16x8xbf16>, vector<8x16xbf16>, vector<16x16xf32> -> vector<16x16xf32>
    %cst_276 = arith.constant 0.353553385 : f32
    %643 = vector.broadcast %cst_276 : f32 to vector<16x16xf32>
    %644 = arith.mulf %642, %643 : vector<16x16xf32>
    %645 = arith.addf %644, %35 : vector<16x16xf32>
    %cst_277 = arith.constant dense<0xFF800000> : vector<16xf32>
    %646 = vector.multi_reduction <maximumf>, %645, %cst_277 [1] : vector<16x16xf32> to vector<16xf32>
    %647 = vector.shape_cast %646 : vector<16xf32> to vector<16x1xf32>
    %648 = vector.broadcast %647 : vector<16x1xf32> to vector<16x16xf32>
    %649 = arith.subf %645, %648 : vector<16x16xf32>
    %650 = math.exp %649 : vector<16x16xf32>
    %cst_278 = arith.constant dense<0.000000e+00> : vector<16xf32>
    %651 = vector.multi_reduction <add>, %650, %cst_278 [1] : vector<16x16xf32> to vector<16xf32>
    %652 = vector.shape_cast %651 : vector<16xf32> to vector<16x1xf32>
    %653 = tpu.reciprocal %652 {approx = true} : vector<16x1xf32> -> vector<16x1xf32>
    %654 = vector.broadcast %653 : vector<16x1xf32> to vector<16x16xf32>
    %655 = arith.mulf %650, %654 : vector<16x16xf32>
    %656 = arith.truncf %655 : vector<16x16xf32> to vector<16x16xbf16>
    %cst_279 = arith.constant dense<0.000000e+00> : vector<16x8xf32>
    %657 = tpu.matmul %656, %641, %cst_279 {dimension_numbers = #tpu.dot_dimension_numbers<[1], [0], [0], [1], [0, 0, 1, 1], [], []>} : vector<16x16xbf16>, vector<16x8xbf16>, vector<16x8xf32> -> vector<16x8xf32>
    %c0_280 = arith.constant 0 : index
    %c8_281 = arith.constant 8 : index
    %658 = vector.load %arg37[%c0_280, %c8_281] : memref<16x32xf32, #tpu.memory_space<vmem>>, vector<16x8xf32>
    tpu.vector_store %arg37[%c0_280, %c8_281], %657 {strides = array<i32>} : memref<16x32xf32, #tpu.memory_space<vmem>>, vector<16x8xf32>,
    %659 = vector.extract_strided_slice %605 {offsets = [0, 16], sizes = [16, 8], strides = [1, 1]} : vector<16x32xf32> to vector<16x8xf32>
    %660 = arith.truncf %659 : vector<16x8xf32> to vector<16x8xbf16>
    %661 = vector.extract_strided_slice %612 {offsets = [16, 0], sizes = [8, 16], strides = [1, 1]} : vector<32x16xf32> to vector<8x16xf32>
    %662 = arith.truncf %661 : vector<8x16xf32> to vector<8x16xbf16>
    %663 = vector.extract_strided_slice %607 {offsets = [0, 16], sizes = [16, 8], strides = [1, 1]} : vector<16x32xf32> to vector<16x8xf32>
    %664 = arith.truncf %663 : vector<16x8xf32> to vector<16x8xbf16>
    %cst_282 = arith.constant dense<0.000000e+00> : vector<16x16xf32>
    %665 = tpu.matmul %660, %662, %cst_282 {dimension_numbers = #tpu.dot_dimension_numbers<[1], [0], [0], [1], [0, 0, 1, 1], [], []>} : vector<16x8xbf16>, vector<8x16xbf16>, vector<16x16xf32> -> vector<16x16xf32>
    %cst_283 = arith.constant 0.353553385 : f32
    %666 = vector.broadcast %cst_283 : f32 to vector<16x16xf32>
    %667 = arith.mulf %665, %666 : vector<16x16xf32>
    %668 = arith.addf %667, %35 : vector<16x16xf32>
    %cst_284 = arith.constant dense<0xFF800000> : vector<16xf32>
    %669 = vector.multi_reduction <maximumf>, %668, %cst_284 [1] : vector<16x16xf32> to vector<16xf32>
    %670 = vector.shape_cast %669 : vector<16xf32> to vector<16x1xf32>
    %671 = vector.broadcast %670 : vector<16x1xf32> to vector<16x16xf32>
    %672 = arith.subf %668, %671 : vector<16x16xf32>
    %673 = math.exp %672 : vector<16x16xf32>
    %cst_285 = arith.constant dense<0.000000e+00> : vector<16xf32>
    %674 = vector.multi_reduction <add>, %673, %cst_285 [1] : vector<16x16xf32> to vector<16xf32>
    %675 = vector.shape_cast %674 : vector<16xf32> to vector<16x1xf32>
    %676 = tpu.reciprocal %675 {approx = true} : vector<16x1xf32> -> vector<16x1xf32>
    %677 = vector.broadcast %676 : vector<16x1xf32> to vector<16x16xf32>
    %678 = arith.mulf %673, %677 : vector<16x16xf32>
    %679 = arith.truncf %678 : vector<16x16xf32> to vector<16x16xbf16>
    %cst_286 = arith.constant dense<0.000000e+00> : vector<16x8xf32>
    %680 = tpu.matmul %679, %664, %cst_286 {dimension_numbers = #tpu.dot_dimension_numbers<[1], [0], [0], [1], [0, 0, 1, 1], [], []>} : vector<16x16xbf16>, vector<16x8xbf16>, vector<16x8xf32> -> vector<16x8xf32>
    %c0_287 = arith.constant 0 : index
    %c16_288 = arith.constant 16 : index
    %681 = vector.load %arg37[%c0_287, %c16_288] : memref<16x32xf32, #tpu.memory_space<vmem>>, vector<16x8xf32>
    tpu.vector_store %arg37[%c0_287, %c16_288], %680 {strides = array<i32>} : memref<16x32xf32, #tpu.memory_space<vmem>>, vector<16x8xf32>,
    %682 = vector.extract_strided_slice %605 {offsets = [0, 24], sizes = [16, 8], strides = [1, 1]} : vector<16x32xf32> to vector<16x8xf32>
    %683 = arith.truncf %682 : vector<16x8xf32> to vector<16x8xbf16>
    %684 = vector.extract_strided_slice %612 {offsets = [24, 0], sizes = [8, 16], strides = [1, 1]} : vector<32x16xf32> to vector<8x16xf32>
    %685 = arith.truncf %684 : vector<8x16xf32> to vector<8x16xbf16>
    %686 = vector.extract_strided_slice %607 {offsets = [0, 24], sizes = [16, 8], strides = [1, 1]} : vector<16x32xf32> to vector<16x8xf32>
    %687 = arith.truncf %686 : vector<16x8xf32> to vector<16x8xbf16>
    %cst_289 = arith.constant dense<0.000000e+00> : vector<16x16xf32>
    %688 = tpu.matmul %683, %685, %cst_289 {dimension_numbers = #tpu.dot_dimension_numbers<[1], [0], [0], [1], [0, 0, 1, 1], [], []>} : vector<16x8xbf16>, vector<8x16xbf16>, vector<16x16xf32> -> vector<16x16xf32>
    %cst_290 = arith.constant 0.353553385 : f32
    %689 = vector.broadcast %cst_290 : f32 to vector<16x16xf32>
    %690 = arith.mulf %688, %689 : vector<16x16xf32>
    %691 = arith.addf %690, %35 : vector<16x16xf32>
    %cst_291 = arith.constant dense<0xFF800000> : vector<16xf32>
    %692 = vector.multi_reduction <maximumf>, %691, %cst_291 [1] : vector<16x16xf32> to vector<16xf32>
    %693 = vector.shape_cast %692 : vector<16xf32> to vector<16x1xf32>
    %694 = vector.broadcast %693 : vector<16x1xf32> to vector<16x16xf32>
    %695 = arith.subf %691, %694 : vector<16x16xf32>
    %696 = math.exp %695 : vector<16x16xf32>
    %cst_292 = arith.constant dense<0.000000e+00> : vector<16xf32>
    %697 = vector.multi_reduction <add>, %696, %cst_292 [1] : vector<16x16xf32> to vector<16xf32>
    %698 = vector.shape_cast %697 : vector<16xf32> to vector<16x1xf32>
    %699 = tpu.reciprocal %698 {approx = true} : vector<16x1xf32> -> vector<16x1xf32>
    %700 = vector.broadcast %699 : vector<16x1xf32> to vector<16x16xf32>
    %701 = arith.mulf %696, %700 : vector<16x16xf32>
    %702 = arith.truncf %701 : vector<16x16xf32> to vector<16x16xbf16>
    %cst_293 = arith.constant dense<0.000000e+00> : vector<16x8xf32>
    %703 = tpu.matmul %702, %687, %cst_293 {dimension_numbers = #tpu.dot_dimension_numbers<[1], [0], [0], [1], [0, 0, 1, 1], [], []>} : vector<16x16xbf16>, vector<16x8xbf16>, vector<16x8xf32> -> vector<16x8xf32>
    %c0_294 = arith.constant 0 : index
    %c24_295 = arith.constant 24 : index
    %704 = vector.load %arg37[%c0_294, %c24_295] : memref<16x32xf32, #tpu.memory_space<vmem>>, vector<16x8xf32>
    tpu.vector_store %arg37[%c0_294, %c24_295], %703 {strides = array<i32>} : memref<16x32xf32, #tpu.memory_space<vmem>>, vector<16x8xf32>,
    %c0_296 = arith.constant 0 : index
    %c0_297 = arith.constant 0 : index
    %705 = vector.load %arg37[%c0_296, %c0_297] : memref<16x32xf32, #tpu.memory_space<vmem>>, vector<16x32xf32>
    %706 = arith.truncf %705 : vector<16x32xf32> to vector<16x32xbf16>
    %cst_298 = arith.constant dense<0.000000e+00> : vector<16x32xf32>
    %707 = tpu.matmul %706, %609, %cst_298 {dimension_numbers = #tpu.dot_dimension_numbers<[1], [0], [0], [1], [0, 0, 1, 1], [], []>} : vector<16x32xbf16>, vector<32x32xbf16>, vector<16x32xf32> -> vector<16x32xf32>
    %708 = vector.broadcast %611 : vector<1x32xf32> to vector<16x32xf32>
    %709 = arith.addf %707, %708 : vector<16x32xf32>
    %710 = arith.addf %596, %709 : vector<16x32xf32>
    %c1_299 = arith.constant 1 : index
    %c0_300 = arith.constant 0 : index
    %c0_301 = arith.constant 0 : index
    %711 = vector.load %arg18[%c1_299, %c0_300, %c0_301] : memref<2x1x32xf32, #tpu.memory_space<vmem>>, vector<1x1x32xf32>
    %712 = vector.shape_cast %711 : vector<1x1x32xf32> to vector<1x32xf32>
    %c1_302 = arith.constant 1 : index
    %c0_303 = arith.constant 0 : index
    %c0_304 = arith.constant 0 : index
    %713 = vector.load %arg19[%c1_302, %c0_303, %c0_304] : memref<2x1x32xf32, #tpu.memory_space<vmem>>, vector<1x1x32xf32>
    %714 = vector.shape_cast %713 : vector<1x1x32xf32> to vector<1x32xf32>
    %cst_305 = arith.constant dense<0.000000e+00> : vector<16xf32>
    %715 = vector.multi_reduction <add>, %710, %cst_305 [1] : vector<16x32xf32> to vector<16xf32>
    %716 = vector.shape_cast %715 : vector<16xf32> to vector<16x1xf32>
    %cst_306 = arith.constant 3.200000e+01 : f32
    %717 = vector.broadcast %cst_306 : f32 to vector<16x1xf32>
    %718 = arith.divf %716, %717 : vector<16x1xf32>
    %719 = vector.broadcast %718 : vector<16x1xf32> to vector<16x32xf32>
    %720 = arith.subf %710, %719 : vector<16x32xf32>
    %721 = arith.mulf %720, %720 : vector<16x32xf32>
    %cst_307 = arith.constant dense<0.000000e+00> : vector<16xf32>
    %722 = vector.multi_reduction <add>, %721, %cst_307 [1] : vector<16x32xf32> to vector<16xf32>
    %723 = vector.shape_cast %722 : vector<16xf32> to vector<16x1xf32>
    %cst_308 = arith.constant 3.200000e+01 : f32
    %724 = vector.broadcast %cst_308 : f32 to vector<16x1xf32>
    %725 = arith.divf %723, %724 : vector<16x1xf32>
    %726 = vector.broadcast %718 : vector<16x1xf32> to vector<16x32xf32>
    %727 = arith.subf %710, %726 : vector<16x32xf32>
    %cst_309 = arith.constant 9.99999974E-6 : f32
    %728 = vector.broadcast %cst_309 : f32 to vector<16x1xf32>
    %729 = arith.addf %725, %728 : vector<16x1xf32>
    %730 = math.rsqrt %729 : vector<16x1xf32>
    %731 = vector.broadcast %730 : vector<16x1xf32> to vector<16x32xf32>
    %732 = arith.mulf %727, %731 : vector<16x32xf32>
    %733 = vector.broadcast %712 : vector<1x32xf32> to vector<16x32xf32>
    %734 = arith.mulf %732, %733 : vector<16x32xf32>
    %735 = vector.broadcast %714 : vector<1x32xf32> to vector<16x32xf32>
    %736 = arith.addf %734, %735 : vector<16x32xf32>
    %c1_310 = arith.constant 1 : index
    %c0_311 = arith.constant 0 : index
    %c0_312 = arith.constant 0 : index
    %737 = vector.load %arg20[%c1_310, %c0_311, %c0_312] : memref<2x32x64xbf16, #tpu.memory_space<vmem>>, vector<1x32x64xbf16>
    %738 = vector.shape_cast %737 : vector<1x32x64xbf16> to vector<32x64xbf16>
    %739 = arith.truncf %736 : vector<16x32xf32> to vector<16x32xbf16>
    %cst_313 = arith.constant dense<0.000000e+00> : vector<16x64xf32>
    %740 = tpu.matmul %739, %738, %cst_313 {dimension_numbers = #tpu.dot_dimension_numbers<[1], [0], [0], [1], [0, 0, 1, 1], [], []>} : vector<16x32xbf16>, vector<32x64xbf16>, vector<16x64xf32> -> vector<16x64xf32>
    %c1_314 = arith.constant 1 : index
    %c0_315 = arith.constant 0 : index
    %c0_316 = arith.constant 0 : index
    %741 = vector.load %arg21[%c1_314, %c0_315, %c0_316] : memref<2x1x64xf32, #tpu.memory_space<vmem>>, vector<1x1x64xf32>
    %742 = vector.shape_cast %741 : vector<1x1x64xf32> to vector<1x64xf32>
    %743 = vector.broadcast %742 : vector<1x64xf32> to vector<16x64xf32>
    %744 = arith.addf %740, %743 : vector<16x64xf32>
    %cst_317 = arith.constant 0.000000e+00 : f32
    %745 = vector.broadcast %cst_317 : f32 to vector<16x64xf32>
    %746 = arith.maximumf %744, %745 : vector<16x64xf32>
    %c1_318 = arith.constant 1 : index
    %c0_319 = arith.constant 0 : index
    %c0_320 = arith.constant 0 : index
    %747 = vector.load %arg22[%c1_318, %c0_319, %c0_320] : memref<2x64x32xbf16, #tpu.memory_space<vmem>>, vector<1x64x32xbf16>
    %748 = vector.shape_cast %747 : vector<1x64x32xbf16> to vector<64x32xbf16>
    %749 = arith.truncf %746 : vector<16x64xf32> to vector<16x64xbf16>
    %cst_321 = arith.constant dense<0.000000e+00> : vector<16x32xf32>
    %750 = tpu.matmul %749, %748, %cst_321 {dimension_numbers = #tpu.dot_dimension_numbers<[1], [0], [0], [1], [0, 0, 1, 1], [], []>} : vector<16x64xbf16>, vector<64x32xbf16>, vector<16x32xf32> -> vector<16x32xf32>
    %c1_322 = arith.constant 1 : index
    %c0_323 = arith.constant 0 : index
    %c0_324 = arith.constant 0 : index
    %751 = vector.load %arg23[%c1_322, %c0_323, %c0_324] : memref<2x1x32xf32, #tpu.memory_space<vmem>>, vector<1x1x32xf32>
    %752 = vector.shape_cast %751 : vector<1x1x32xf32> to vector<1x32xf32>
    %753 = vector.broadcast %752 : vector<1x32xf32> to vector<16x32xf32>
    %754 = arith.addf %750, %753 : vector<16x32xf32>
    %755 = arith.addf %736, %754 : vector<16x32xf32>
    %c1_325 = arith.constant 1 : index
    %c0_326 = arith.constant 0 : index
    %c0_327 = arith.constant 0 : index
    %756 = vector.load %arg24[%c1_325, %c0_326, %c0_327] : memref<2x1x32xf32, #tpu.memory_space<vmem>>, vector<1x1x32xf32>
    %757 = vector.shape_cast %756 : vector<1x1x32xf32> to vector<1x32xf32>
    %c1_328 = arith.constant 1 : index
    %c0_329 = arith.constant 0 : index
    %c0_330 = arith.constant 0 : index
    %758 = vector.load %arg25[%c1_328, %c0_329, %c0_330] : memref<2x1x32xf32, #tpu.memory_space<vmem>>, vector<1x1x32xf32>
    %759 = vector.shape_cast %758 : vector<1x1x32xf32> to vector<1x32xf32>
    %cst_331 = arith.constant dense<0.000000e+00> : vector<16xf32>
    %760 = vector.multi_reduction <add>, %755, %cst_331 [1] : vector<16x32xf32> to vector<16xf32>
    %761 = vector.shape_cast %760 : vector<16xf32> to vector<16x1xf32>
    %cst_332 = arith.constant 3.200000e+01 : f32
    %762 = vector.broadcast %cst_332 : f32 to vector<16x1xf32>
    %763 = arith.divf %761, %762 : vector<16x1xf32>
    %764 = vector.broadcast %763 : vector<16x1xf32> to vector<16x32xf32>
    %765 = arith.subf %755, %764 : vector<16x32xf32>
    %766 = arith.mulf %765, %765 : vector<16x32xf32>
    %cst_333 = arith.constant dense<0.000000e+00> : vector<16xf32>
    %767 = vector.multi_reduction <add>, %766, %cst_333 [1] : vector<16x32xf32> to vector<16xf32>
    %768 = vector.shape_cast %767 : vector<16xf32> to vector<16x1xf32>
    %cst_334 = arith.constant 3.200000e+01 : f32
    %769 = vector.broadcast %cst_334 : f32 to vector<16x1xf32>
    %770 = arith.divf %768, %769 : vector<16x1xf32>
    %771 = vector.broadcast %763 : vector<16x1xf32> to vector<16x32xf32>
    %772 = arith.subf %755, %771 : vector<16x32xf32>
    %cst_335 = arith.constant 9.99999974E-6 : f32
    %773 = vector.broadcast %cst_335 : f32 to vector<16x1xf32>
    %774 = arith.addf %770, %773 : vector<16x1xf32>
    %775 = math.rsqrt %774 : vector<16x1xf32>
    %776 = vector.broadcast %775 : vector<16x1xf32> to vector<16x32xf32>
    %777 = arith.mulf %772, %776 : vector<16x32xf32>
    %778 = vector.broadcast %757 : vector<1x32xf32> to vector<16x32xf32>
    %779 = arith.mulf %777, %778 : vector<16x32xf32>
    %780 = vector.broadcast %759 : vector<1x32xf32> to vector<16x32xf32>
    %781 = arith.addf %779, %780 : vector<16x32xf32>
    %c0_336 = arith.constant 0 : index
    %c0_337 = arith.constant 0 : index
    %782 = vector.load %arg28[%c0_336, %c0_337] : memref<32x32xbf16, #tpu.memory_space<vmem>>, vector<32x32xbf16>
    %783 = arith.truncf %781 : vector<16x32xf32> to vector<16x32xbf16>
    %cst_338 = arith.constant dense<0.000000e+00> : vector<16x32xf32>
    %784 = tpu.matmul %783, %782, %cst_338 {dimension_numbers = #tpu.dot_dimension_numbers<[1], [0], [0], [1], [0, 0, 1, 1], [], []>} : vector<16x32xbf16>, vector<32x32xbf16>, vector<16x32xf32> -> vector<16x32xf32>
    %c0_339 = arith.constant 0 : index
    %c0_340 = arith.constant 0 : index
    %785 = vector.load %arg29[%c0_339, %c0_340] : memref<1x32xf32, #tpu.memory_space<vmem>>, vector<1x32xf32>
    %786 = vector.broadcast %785 : vector<1x32xf32> to vector<16x32xf32>
    %787 = arith.addf %784, %786 : vector<16x32xf32>
    %c0_341 = arith.constant 0 : index
    %c0_342 = arith.constant 0 : index
    %788 = vector.load %arg30[%c0_341, %c0_342] : memref<32x64xbf16, #tpu.memory_space<vmem>>, vector<32x64xbf16>
    %789 = arith.truncf %411 : vector<16x32xf32> to vector<16x32xbf16>
    %cst_343 = arith.constant dense<0.000000e+00> : vector<16x64xf32>
    %790 = tpu.matmul %789, %788, %cst_343 {dimension_numbers = #tpu.dot_dimension_numbers<[1], [0], [0], [1], [0, 0, 1, 1], [], []>} : vector<16x32xbf16>, vector<32x64xbf16>, vector<16x64xf32> -> vector<16x64xf32>
    %c0_344 = arith.constant 0 : index
    %c0_345 = arith.constant 0 : index
    %791 = vector.load %arg31[%c0_344, %c0_345] : memref<1x64xf32, #tpu.memory_space<vmem>>, vector<1x64xf32>
    %792 = vector.broadcast %791 : vector<1x64xf32> to vector<16x64xf32>
    %793 = arith.addf %790, %792 : vector<16x64xf32>
    %794 = vector.extract_strided_slice %793 {offsets = [0, 0], sizes = [16, 32], strides = [1, 1]} : vector<16x64xf32> to vector<16x32xf32>
    %795 = vector.extract_strided_slice %793 {offsets = [0, 32], sizes = [16, 32], strides = [1, 1]} : vector<16x64xf32> to vector<16x32xf32>
    %c0_346 = arith.constant 0 : index
    %c0_347 = arith.constant 0 : index
    %796 = vector.load %arg32[%c0_346, %c0_347] : memref<32x32xbf16, #tpu.memory_space<vmem>>, vector<32x32xbf16>
    %c0_348 = arith.constant 0 : index
    %c0_349 = arith.constant 0 : index
    %797 = vector.load %arg33[%c0_348, %c0_349] : memref<1x32xf32, #tpu.memory_space<vmem>>, vector<1x32xf32>
    %798 = tpu.transpose %794, [1, 0] : vector<16x32xf32> -> vector<32x16xf32>
    %799 = vector.extract_strided_slice %787 {offsets = [0, 0], sizes = [16, 8], strides = [1, 1]} : vector<16x32xf32> to vector<16x8xf32>
    %800 = arith.truncf %799 : vector<16x8xf32> to vector<16x8xbf16>
    %801 = vector.extract_strided_slice %798 {offsets = [0, 0], sizes = [8, 16], strides = [1, 1]} : vector<32x16xf32> to vector<8x16xf32>
    %802 = arith.truncf %801 : vector<8x16xf32> to vector<8x16xbf16>
    %803 = vector.extract_strided_slice %795 {offsets = [0, 0], sizes = [16, 8], strides = [1, 1]} : vector<16x32xf32> to vector<16x8xf32>
    %804 = arith.truncf %803 : vector<16x8xf32> to vector<16x8xbf16>
    %cst_350 = arith.constant dense<0.000000e+00> : vector<16x16xf32>
    %805 = tpu.matmul %800, %802, %cst_350 {dimension_numbers = #tpu.dot_dimension_numbers<[1], [0], [0], [1], [0, 0, 1, 1], [], []>} : vector<16x8xbf16>, vector<8x16xbf16>, vector<16x16xf32> -> vector<16x16xf32>
    %cst_351 = arith.constant 0.353553385 : f32
    %806 = vector.broadcast %cst_351 : f32 to vector<16x16xf32>
    %807 = arith.mulf %805, %806 : vector<16x16xf32>
    %808 = arith.addf %807, %30 : vector<16x16xf32>
    %cst_352 = arith.constant dense<0xFF800000> : vector<16xf32>
    %809 = vector.multi_reduction <maximumf>, %808, %cst_352 [1] : vector<16x16xf32> to vector<16xf32>
    %810 = vector.shape_cast %809 : vector<16xf32> to vector<16x1xf32>
    %811 = vector.broadcast %810 : vector<16x1xf32> to vector<16x16xf32>
    %812 = arith.subf %808, %811 : vector<16x16xf32>
    %813 = math.exp %812 : vector<16x16xf32>
    %cst_353 = arith.constant dense<0.000000e+00> : vector<16xf32>
    %814 = vector.multi_reduction <add>, %813, %cst_353 [1] : vector<16x16xf32> to vector<16xf32>
    %815 = vector.shape_cast %814 : vector<16xf32> to vector<16x1xf32>
    %816 = tpu.reciprocal %815 {approx = true} : vector<16x1xf32> -> vector<16x1xf32>
    %817 = vector.broadcast %816 : vector<16x1xf32> to vector<16x16xf32>
    %818 = arith.mulf %813, %817 : vector<16x16xf32>
    %819 = arith.truncf %818 : vector<16x16xf32> to vector<16x16xbf16>
    %cst_354 = arith.constant dense<0.000000e+00> : vector<16x8xf32>
    %820 = tpu.matmul %819, %804, %cst_354 {dimension_numbers = #tpu.dot_dimension_numbers<[1], [0], [0], [1], [0, 0, 1, 1], [], []>} : vector<16x16xbf16>, vector<16x8xbf16>, vector<16x8xf32> -> vector<16x8xf32>
    %c0_355 = arith.constant 0 : index
    %c0_356 = arith.constant 0 : index
    %821 = vector.load %arg37[%c0_355, %c0_356] : memref<16x32xf32, #tpu.memory_space<vmem>>, vector<16x8xf32>
    tpu.vector_store %arg37[%c0_355, %c0_356], %820 {strides = array<i32>} : memref<16x32xf32, #tpu.memory_space<vmem>>, vector<16x8xf32>,
    %822 = vector.extract_strided_slice %787 {offsets = [0, 8], sizes = [16, 8], strides = [1, 1]} : vector<16x32xf32> to vector<16x8xf32>
    %823 = arith.truncf %822 : vector<16x8xf32> to vector<16x8xbf16>
    %824 = vector.extract_strided_slice %798 {offsets = [8, 0], sizes = [8, 16], strides = [1, 1]} : vector<32x16xf32> to vector<8x16xf32>
    %825 = arith.truncf %824 : vector<8x16xf32> to vector<8x16xbf16>
    %826 = vector.extract_strided_slice %795 {offsets = [0, 8], sizes = [16, 8], strides = [1, 1]} : vector<16x32xf32> to vector<16x8xf32>
    %827 = arith.truncf %826 : vector<16x8xf32> to vector<16x8xbf16>
    %cst_357 = arith.constant dense<0.000000e+00> : vector<16x16xf32>
    %828 = tpu.matmul %823, %825, %cst_357 {dimension_numbers = #tpu.dot_dimension_numbers<[1], [0], [0], [1], [0, 0, 1, 1], [], []>} : vector<16x8xbf16>, vector<8x16xbf16>, vector<16x16xf32> -> vector<16x16xf32>
    %cst_358 = arith.constant 0.353553385 : f32
    %829 = vector.broadcast %cst_358 : f32 to vector<16x16xf32>
    %830 = arith.mulf %828, %829 : vector<16x16xf32>
    %831 = arith.addf %830, %30 : vector<16x16xf32>
    %cst_359 = arith.constant dense<0xFF800000> : vector<16xf32>
    %832 = vector.multi_reduction <maximumf>, %831, %cst_359 [1] : vector<16x16xf32> to vector<16xf32>
    %833 = vector.shape_cast %832 : vector<16xf32> to vector<16x1xf32>
    %834 = vector.broadcast %833 : vector<16x1xf32> to vector<16x16xf32>
    %835 = arith.subf %831, %834 : vector<16x16xf32>
    %836 = math.exp %835 : vector<16x16xf32>
    %cst_360 = arith.constant dense<0.000000e+00> : vector<16xf32>
    %837 = vector.multi_reduction <add>, %836, %cst_360 [1] : vector<16x16xf32> to vector<16xf32>
    %838 = vector.shape_cast %837 : vector<16xf32> to vector<16x1xf32>
    %839 = tpu.reciprocal %838 {approx = true} : vector<16x1xf32> -> vector<16x1xf32>
    %840 = vector.broadcast %839 : vector<16x1xf32> to vector<16x16xf32>
    %841 = arith.mulf %836, %840 : vector<16x16xf32>
    %842 = arith.truncf %841 : vector<16x16xf32> to vector<16x16xbf16>
    %cst_361 = arith.constant dense<0.000000e+00> : vector<16x8xf32>
    %843 = tpu.matmul %842, %827, %cst_361 {dimension_numbers = #tpu.dot_dimension_numbers<[1], [0], [0], [1], [0, 0, 1, 1], [], []>} : vector<16x16xbf16>, vector<16x8xbf16>, vector<16x8xf32> -> vector<16x8xf32>
    %c0_362 = arith.constant 0 : index
    %c8_363 = arith.constant 8 : index
    %844 = vector.load %arg37[%c0_362, %c8_363] : memref<16x32xf32, #tpu.memory_space<vmem>>, vector<16x8xf32>
    tpu.vector_store %arg37[%c0_362, %c8_363], %843 {strides = array<i32>} : memref<16x32xf32, #tpu.memory_space<vmem>>, vector<16x8xf32>,
    %845 = vector.extract_strided_slice %787 {offsets = [0, 16], sizes = [16, 8], strides = [1, 1]} : vector<16x32xf32> to vector<16x8xf32>
    %846 = arith.truncf %845 : vector<16x8xf32> to vector<16x8xbf16>
    %847 = vector.extract_strided_slice %798 {offsets = [16, 0], sizes = [8, 16], strides = [1, 1]} : vector<32x16xf32> to vector<8x16xf32>
    %848 = arith.truncf %847 : vector<8x16xf32> to vector<8x16xbf16>
    %849 = vector.extract_strided_slice %795 {offsets = [0, 16], sizes = [16, 8], strides = [1, 1]} : vector<16x32xf32> to vector<16x8xf32>
    %850 = arith.truncf %849 : vector<16x8xf32> to vector<16x8xbf16>
    %cst_364 = arith.constant dense<0.000000e+00> : vector<16x16xf32>
    %851 = tpu.matmul %846, %848, %cst_364 {dimension_numbers = #tpu.dot_dimension_numbers<[1], [0], [0], [1], [0, 0, 1, 1], [], []>} : vector<16x8xbf16>, vector<8x16xbf16>, vector<16x16xf32> -> vector<16x16xf32>
    %cst_365 = arith.constant 0.353553385 : f32
    %852 = vector.broadcast %cst_365 : f32 to vector<16x16xf32>
    %853 = arith.mulf %851, %852 : vector<16x16xf32>
    %854 = arith.addf %853, %30 : vector<16x16xf32>
    %cst_366 = arith.constant dense<0xFF800000> : vector<16xf32>
    %855 = vector.multi_reduction <maximumf>, %854, %cst_366 [1] : vector<16x16xf32> to vector<16xf32>
    %856 = vector.shape_cast %855 : vector<16xf32> to vector<16x1xf32>
    %857 = vector.broadcast %856 : vector<16x1xf32> to vector<16x16xf32>
    %858 = arith.subf %854, %857 : vector<16x16xf32>
    %859 = math.exp %858 : vector<16x16xf32>
    %cst_367 = arith.constant dense<0.000000e+00> : vector<16xf32>
    %860 = vector.multi_reduction <add>, %859, %cst_367 [1] : vector<16x16xf32> to vector<16xf32>
    %861 = vector.shape_cast %860 : vector<16xf32> to vector<16x1xf32>
    %862 = tpu.reciprocal %861 {approx = true} : vector<16x1xf32> -> vector<16x1xf32>
    %863 = vector.broadcast %862 : vector<16x1xf32> to vector<16x16xf32>
    %864 = arith.mulf %859, %863 : vector<16x16xf32>
    %865 = arith.truncf %864 : vector<16x16xf32> to vector<16x16xbf16>
    %cst_368 = arith.constant dense<0.000000e+00> : vector<16x8xf32>
    %866 = tpu.matmul %865, %850, %cst_368 {dimension_numbers = #tpu.dot_dimension_numbers<[1], [0], [0], [1], [0, 0, 1, 1], [], []>} : vector<16x16xbf16>, vector<16x8xbf16>, vector<16x8xf32> -> vector<16x8xf32>
    %c0_369 = arith.constant 0 : index
    %c16_370 = arith.constant 16 : index
    %867 = vector.load %arg37[%c0_369, %c16_370] : memref<16x32xf32, #tpu.memory_space<vmem>>, vector<16x8xf32>
    tpu.vector_store %arg37[%c0_369, %c16_370], %866 {strides = array<i32>} : memref<16x32xf32, #tpu.memory_space<vmem>>, vector<16x8xf32>,
    %868 = vector.extract_strided_slice %787 {offsets = [0, 24], sizes = [16, 8], strides = [1, 1]} : vector<16x32xf32> to vector<16x8xf32>
    %869 = arith.truncf %868 : vector<16x8xf32> to vector<16x8xbf16>
    %870 = vector.extract_strided_slice %798 {offsets = [24, 0], sizes = [8, 16], strides = [1, 1]} : vector<32x16xf32> to vector<8x16xf32>
    %871 = arith.truncf %870 : vector<8x16xf32> to vector<8x16xbf16>
    %872 = vector.extract_strided_slice %795 {offsets = [0, 24], sizes = [16, 8], strides = [1, 1]} : vector<16x32xf32> to vector<16x8xf32>
    %873 = arith.truncf %872 : vector<16x8xf32> to vector<16x8xbf16>
    %cst_371 = arith.constant dense<0.000000e+00> : vector<16x16xf32>
    %874 = tpu.matmul %869, %871, %cst_371 {dimension_numbers = #tpu.dot_dimension_numbers<[1], [0], [0], [1], [0, 0, 1, 1], [], []>} : vector<16x8xbf16>, vector<8x16xbf16>, vector<16x16xf32> -> vector<16x16xf32>
    %cst_372 = arith.constant 0.353553385 : f32
    %875 = vector.broadcast %cst_372 : f32 to vector<16x16xf32>
    %876 = arith.mulf %874, %875 : vector<16x16xf32>
    %877 = arith.addf %876, %30 : vector<16x16xf32>
    %cst_373 = arith.constant dense<0xFF800000> : vector<16xf32>
    %878 = vector.multi_reduction <maximumf>, %877, %cst_373 [1] : vector<16x16xf32> to vector<16xf32>
    %879 = vector.shape_cast %878 : vector<16xf32> to vector<16x1xf32>
    %880 = vector.broadcast %879 : vector<16x1xf32> to vector<16x16xf32>
    %881 = arith.subf %877, %880 : vector<16x16xf32>
    %882 = math.exp %881 : vector<16x16xf32>
    %cst_374 = arith.constant dense<0.000000e+00> : vector<16xf32>
    %883 = vector.multi_reduction <add>, %882, %cst_374 [1] : vector<16x16xf32> to vector<16xf32>
    %884 = vector.shape_cast %883 : vector<16xf32> to vector<16x1xf32>
    %885 = tpu.reciprocal %884 {approx = true} : vector<16x1xf32> -> vector<16x1xf32>
    %886 = vector.broadcast %885 : vector<16x1xf32> to vector<16x16xf32>
    %887 = arith.mulf %882, %886 : vector<16x16xf32>
    %888 = arith.truncf %887 : vector<16x16xf32> to vector<16x16xbf16>
    %cst_375 = arith.constant dense<0.000000e+00> : vector<16x8xf32>
    %889 = tpu.matmul %888, %873, %cst_375 {dimension_numbers = #tpu.dot_dimension_numbers<[1], [0], [0], [1], [0, 0, 1, 1], [], []>} : vector<16x16xbf16>, vector<16x8xbf16>, vector<16x8xf32> -> vector<16x8xf32>
    %c0_376 = arith.constant 0 : index
    %c24_377 = arith.constant 24 : index
    %890 = vector.load %arg37[%c0_376, %c24_377] : memref<16x32xf32, #tpu.memory_space<vmem>>, vector<16x8xf32>
    tpu.vector_store %arg37[%c0_376, %c24_377], %889 {strides = array<i32>} : memref<16x32xf32, #tpu.memory_space<vmem>>, vector<16x8xf32>,
    %c0_378 = arith.constant 0 : index
    %c0_379 = arith.constant 0 : index
    %891 = vector.load %arg37[%c0_378, %c0_379] : memref<16x32xf32, #tpu.memory_space<vmem>>, vector<16x32xf32>
    %892 = arith.truncf %891 : vector<16x32xf32> to vector<16x32xbf16>
    %cst_380 = arith.constant dense<0.000000e+00> : vector<16x32xf32>
    %893 = tpu.matmul %892, %796, %cst_380 {dimension_numbers = #tpu.dot_dimension_numbers<[1], [0], [0], [1], [0, 0, 1, 1], [], []>} : vector<16x32xbf16>, vector<32x32xbf16>, vector<16x32xf32> -> vector<16x32xf32>
    %894 = vector.broadcast %797 : vector<1x32xf32> to vector<16x32xf32>
    %895 = arith.addf %893, %894 : vector<16x32xf32>
    %896 = arith.addf %895, %781 : vector<16x32xf32>
    %c0_381 = arith.constant 0 : index
    %c0_382 = arith.constant 0 : index
    %897 = vector.load %arg34[%c0_381, %c0_382] : memref<32x32xbf16, #tpu.memory_space<vmem>>, vector<32x32xbf16>
    %898 = arith.truncf %896 : vector<16x32xf32> to vector<16x32xbf16>
    %cst_383 = arith.constant dense<0.000000e+00> : vector<16x32xf32>
    %899 = tpu.matmul %898, %897, %cst_383 {dimension_numbers = #tpu.dot_dimension_numbers<[1], [0], [0], [1], [0, 0, 1, 1], [], []>} : vector<16x32xbf16>, vector<32x32xbf16>, vector<16x32xf32> -> vector<16x32xf32>
    %c0_384 = arith.constant 0 : index
    %c0_385 = arith.constant 0 : index
    %900 = vector.load %arg35[%c0_384, %c0_385] : memref<1x32xf32, #tpu.memory_space<vmem>>, vector<1x32xf32>
    %901 = vector.broadcast %900 : vector<1x32xf32> to vector<16x32xf32>
    %902 = arith.addf %899, %901 : vector<16x32xf32>
    %c0_386 = arith.constant 0 : index
    %c0_387 = arith.constant 0 : index
    %903 = vector.load %arg36[%c0_386, %c0_387] : memref<16x32xf32, #tpu.memory_space<vmem>>, vector<16x32xf32>
    tpu.vector_store %arg36[%c0_386, %c0_387], %902 {strides = array<i32>} : memref<16x32xf32, #tpu.memory_space<vmem>>, vector<16x32xf32>,
    return
  }
}

</mosaic_0001>

<bundles_post_ra>
// kernel: tpu_custom_call.1
= control target key start
LH: loop header
LB: loop body
LE: loop exit
PB: predicated region body
PF: predicated region fallthrough
CT: control target
= control target key end

     0   :  { %s4911_s6 = smov 1   ;;  %s4912_s10 = smov 2   ;;  %s5943_s0 = inlined_call_operand.smem [shape: u32[37], index: -1, kind: input, shape index: {}] }
   0x1   :  { %s4995_s5 = sld [smem:[%s5943_s0]]   ;;  %s4913_s14 = smov 3  }
   0x2   :  { %s5000_s9 = sld [smem:[%s5943_s0 + %s4911_s6]]   ;;  %s4914_s18 = smov 4  }
   0x3   :  { %s5005_s13 = sld [smem:[%s5943_s0 + %s4912_s10]]   ;;  %s4915_s22 = smov 5  }
   0x4   :  { %s5010_s17 = sld [smem:[%s5943_s0 + %s4913_s14]]   ;;  %s4916_s26 = smov 6  }
   0x5   :  { %s5015_s21 = sld [smem:[%s5943_s0 + %s4914_s18]]   ;;  %s4917_s30 = smov 7  }
   0x6   :  { %s5020_s25 = sld [smem:[%s5943_s0 + %s4915_s22]]   ;;  %s4918_s4 = smov 8  }
   0x7   :  { %s5025_s29 = sld [smem:[%s5943_s0 + %s4916_s26]]   ;;  %s4919_s10 = smov 9  }
   0x8   :  { %s5030_s3 = sld [smem:[%s5943_s0 + %s4917_s30]]   ;;  %s4920_s15 = smov 10  }
   0x9   :  { %5960 = sst [smem:[#allocation48_spill]] %s5005_s13  ;;  %s4921_s20 = smov 11  }
   0xa   :  { %s5035_s8 = sld [smem:[%s5943_s0 + %s4918_s4]]   ;;  %s4922_s26 = smov 12  }
   0xb   :  { %5961 = sst [smem:[#allocation49_spill]] %s5015_s21  ;;  %s4923_s1 = smov 13  }
   0xc   :  { %s5040_s14 = sld [smem:[%s5943_s0 + %s4919_s10]]   ;;  %s4924_s7 = smov 14  }
   0xd   :  { %s5045_s19 = sld [smem:[%s5943_s0 + %s4920_s15]]   ;;  %s4925_s15 = smov 15  }
   0xe   :  { %s5050_s24 = sld [smem:[%s5943_s0 + %s4921_s20]]   ;;  %s4926_s22 = smov 16  }
   0xf   :  { %s5055_s30 = sld [smem:[%s5943_s0 + %s4922_s26]]   ;;  %s4927_s28 = smov 17  }
  0x10   :  { %5962 = sst [smem:[#allocation50_spill]] %s5035_s8 }
  0x11   :  { %s5060_s6 = sld [smem:[%s5943_s0 + %s4923_s1]]  }
  0x12   :  { %s5065_s12 = sld [smem:[%s5943_s0 + %s4924_s7]]   ;;  %s4928_s7 = smov 18  }
  0x13   :  { %5963 = sst [smem:[#allocation51_spill]] %s5045_s19 }
  0x14   :  { %s5070_s20 = sld [smem:[%s5943_s0 + %s4925_s15]]   ;;  %s4929_s15 = smov 19  }
  0x15   :  { %s5075_s27 = sld [smem:[%s5943_s0 + %s4926_s22]]   ;;  %s4930_s22 = smov 20  }
  0x16   :  { %s5080_s4 = sld [smem:[%s5943_s0 + %s4927_s28]]   ;;  %s4931_s28 = smov 21  }
  0x17   :  { %s5090_s19 = sld [smem:[%s5943_s0 + %s4929_s15]]   ;;  %s4933_s15 = smov 23  }
  0x18   :  { %5964 = sst [smem:[#allocation52_spill]] %s5065_s12 }
  0x19   :  { %s5085_s12 = sld [smem:[%s5943_s0 + %s4928_s7]]   ;;  %s4932_s7 = smov 22  }
  0x1a   :  { %5965 = sst [smem:[#allocation53_spill]] %s5070_s20 }
  0x1b   :  { %5966 = sst [smem:[#allocation54_spill]] %s5075_s27 }
  0x1c   :  { %s5095_s27 = sld [smem:[%s5943_s0 + %s4930_s22]]   ;;  %s4934_s22 = smov 24  }
  0x1d   :  { %s5100_s8 = sld [smem:[%s5943_s0 + %s4931_s28]]   ;;  %s4935_s28 = smov 25  }
  0x1e   :  { %s5105_s21 = sld [smem:[%s5943_s0 + %s4932_s7]]   ;;  %s4936_s7 = smov 26  }
  0x1f   :  { %5967 = sst [smem:[#allocation55_spill]] %s5085_s12 }
  0x20   :  { %s5110_s13 = sld [smem:[%s5943_s0 + %s4933_s15]]   ;;  %s4937_s15 = smov 27  }
  0x22   :  { %5968 = sst [smem:[#allocation56_spill]] %s5095_s27 }
  0x23   :  { %5969 = sst [smem:[#allocation57_spill]] %s5100_s8 }
  0x24   :  { %5970 = sst [smem:[#allocation58_spill]] %s5105_s21 }
  0x25   :  { %s5115_s27 = sld [smem:[%s5943_s0 + %s4934_s22]]   ;;  %s4938_s22 = smov 28  }
  0x26   :  { %5971 = sst [smem:[#allocation59_spill]] %s5110_s13 }
  0x27   :  { %s5120_s8 = sld [smem:[%s5943_s0 + %s4935_s28]]   ;;  %s4939_s28 = smov 29  }
  0x28   :  { %s5125_s21 = sld [smem:[%s5943_s0 + %s4936_s7]]   ;;  %s4940_s7 = smov 30  }
  0x29   :  { %s5130_s13 = sld [smem:[%s5943_s0 + %s4937_s15]]   ;;  %s4941_s15 = smov 31  }
  0x2a   :  { %s5140_s12 = sld [smem:[%s5943_s0 + %s4939_s28]]   ;;  %s4943_s28 = smov 33  }
  0x2b   :  { %5972 = sst [smem:[#allocation60_spill]] %s5115_s27 }
  0x2c   :  { %s5135_s27 = sld [smem:[%s5943_s0 + %s4938_s22]]   ;;  %s4942_s22 = smov 32  }
  0x2e   :  { %5973 = sst [smem:[#allocation61_spill]] %s5125_s21 }
  0x2f   :  { %5974 = sst [smem:[#allocation62_spill]] %s5130_s13 }
  0x30   :  { %5976 = sst [smem:[#allocation64_spill]] %s5140_s12 }
  0x31   :  { %s5145_s21 = sld [smem:[%s5943_s0 + %s4940_s7]]   ;;  %s4944_s7 = smov 34  }
  0x32   :  { %5975 = sst [smem:[#allocation63_spill]] %s5135_s27 }
  0x33   :  { %s5150_s13 = sld [smem:[%s5943_s0 + %s4941_s15]]   ;;  %s4945_s15 = smov 35  }
  0x34   :  { %s5155_s27 = sld [smem:[%s5943_s0 + %s4942_s22]]   ;;  %s4946_s22 = smov 36  }
  0x35   :  { %s5160_s12 = sld [smem:[%s5943_s0 + %s4943_s28]]  }
  0x36   :  { %s5165_s20 = sld [smem:[%s5943_s0 + %s4944_s7]]  }
  0x39   :  { %5977 = sst [smem:[#allocation65_spill]] %s5150_s13 }
  0x3a   :  { %5978 = sst [smem:[#allocation66_spill]] %s5155_s27 }
  0x3b   :  { %s5170_s13 = sld [smem:[%s5943_s0 + %s4945_s15]]  }
  0x3c   :  { %s5175_s27 = sld [smem:[%s5943_s0 + %s4946_s22]]  }
  0x3d   :  { %78 = vsyncpa [#allocation4], 0 }
  0x3e   :  { %79 = vsyncpa [#allocation7], 0 }
  0x3f   :  { %80 = vsyncpa [#allocation10], 0 }
  0x40   :  { %81 = vsyncpa [#allocation13], 0 }
  0x41   :  { %82 = vsyncpa [#allocation16], 0 }
  0x42   :  { %83 = vsyncpa [#allocation19], 0 }
  0x43   :  { %84 = vsyncpa [#allocation22], 0 }
  0x44   :  { %85 = vsyncpa [#allocation25], 0 }
  0x45   :  { %86 = vsyncpa [#allocation28], 0 }
  0x46   :  { %87 = vsyncpa [#allocation31], 0 }
  0x47   :  { %88 = vsyncpa [#allocation34], 0 }
  0x48   :  { %89 = vsyncpa [#allocation5], 0  ;;  %s107_s28 = sshll.u32 %s5000_s9, 4  ;;  %s4947_s1 = smov [#allocation6]   ;;  %s108_s28 = int_to_ptr.hbm [resolvable:$true] %s107_s28 }
  0x49   :  { %s109_s0 = sshll.u32 %s4947_s1, 4  ;;  %s4383_s2 = sshra.s32 %s108_s28, 4  ;;  %s110_s0 = int_to_ptr.vmem [resolvable:$true] %s109_s0  ;;  %s4384_s2 = int_to_ptr.hbm [resolvable:$true] %s4383_s2 }
  0x4a   :  { %s4385_s7 = scalar_lea.hbm %s4384_s2, 16  ;;  %s4387_s10 = scalar_lea.hbm %s5000_s9, 16 }
  0x4b   :  { %p4386_p0 = scmp.ne.s32.totalorder %s4384_s2, %s4385_s7  ;;  %p4388_p1 = scmp.lt.s32.totalorder %s4384_s2, %s5000_s9 }
  0x4c   :  { %p4389_p2 = scmp.lt.s32.totalorder %s4387_s10, %s4385_s7 }
  0x4e   :  { %p4390_p3 = por %p4389_p2, %p4388_p1 }
  0x50   :  { %p4391_p4 = pnand %p4390_p3, %p4386_p0 }
  0x52   :  { %4394 = shalt.err (!%p4391_p4)
}
  0x53   :  { %s4948_s11 = smov 128   ;;  %s4949_s15 = smov 8  }
  0x54   :  { %115 = dma.hbm_to_vmem [thread:$0]  %s108_s28, 256, %s110_s0, [#allocation7], %s4948_s11, %s4948_s11, %s4949_s15  }
  0x55   :  { %s137_s16 = sshll.u32 %s5020_s25, 4  ;;  %s4950_s18 = smov [#allocation9]   ;;  %s138_s16 = int_to_ptr.hbm [resolvable:$true] %s137_s16 }
  0x56   :  { %s139_s22 = sshll.u32 %s4950_s18, 4  ;;  %s163_s23 = sshll.u32 %s5030_s3, 4  ;;  %s140_s22 = int_to_ptr.vmem [resolvable:$true] %s139_s22  ;;  %s5185_s23 = int_to_ptr.hbm [resolvable:$true] %s163_s23 }
  0x57   :  { %s4407_s9 = sshra.s32 %s138_s16, 4  ;;  %s4411_s1 = scalar_lea.hbm %s5020_s25, 2  ;;  %s4408_s9 = int_to_ptr.hbm [resolvable:$true] %s4407_s9 }
  0x58   :  { %s4409_s26 = scalar_lea.hbm %s4408_s9, 2  ;;  %p4412_p6 = scmp.lt.s32.totalorder %s4408_s9, %s5020_s25 }
  0x59   :  { %p4410_p5 = scmp.ne.s32.totalorder %s4408_s9, %s4409_s26  ;;  %p4413_p7 = scmp.lt.s32.totalorder %s4411_s1, %s4409_s26 }
  0x5b   :  { %p4414_p8 = por %p4413_p7, %p4412_p6 }
  0x5d   :  { %p4415_p9 = pnand %p4414_p8, %p4410_p5 }
  0x5f   :  { %4418 = shalt.err (!%p4415_p9)
}
  0x60   :  { %s4951_s2 = smov 16   ;;  %s4952_s28 = smov 1  }
  0x61   :  { %145 = dma.hbm_to_vmem [thread:$0]  %s138_s16, 32, %s140_s22, [#allocation10], %s4951_s2, %s4951_s2, %s4952_s28  }
  0x62   :  { %s193_s0 = sshll.u32 %s5050_s24, 4  ;;  %s4953_s7 = smov [#allocation12]   ;;  %s5193_s0 = int_to_ptr.hbm [resolvable:$true] %s193_s0 }
  0x63   :  { %s165_s10 = sshll.u32 %s4953_s7, 4  ;;  %s4431_s25 = sshra.s32 %s5185_s23, 4  ;;  %s166_s10 = int_to_ptr.vmem [resolvable:$true] %s165_s10  ;;  %s4432_s25 = int_to_ptr.hbm [resolvable:$true] %s4431_s25 }
  0x64   :  { %s4433_s18 = scalar_lea.hbm %s4432_s25, 2  ;;  %s4435_s9 = scalar_lea.hbm %s5030_s3, 2 }
  0x65   :  { %p4434_p10 = scmp.ne.s32.totalorder %s4432_s25, %s4433_s18  ;;  %p4436_p11 = scmp.lt.s32.totalorder %s4432_s25, %s5030_s3 }
  0x66   :  { %p4437_p12 = scmp.lt.s32.totalorder %s4435_s9, %s4433_s18 }
  0x68   :  { %p4438_p13 = por %p4437_p12, %p4436_p11 }
  0x6a   :  { %p4439_p0 = pnand %p4438_p13, %p4434_p10 }
  0x6c   :  { %4442 = shalt.err (!%p4439_p0)
}
  0x6d   :  { %171 = dma.hbm_to_vmem [thread:$0]  %s5185_s23, 32, %s166_s10, [#allocation13], %s4951_s2, %s4951_s2, %s4952_s28  }
  0x6e   :  { %s4954_s16 = smov [#allocation15]   ;;  %s219_s26 = sshll.u32 %s5060_s6, 4  ;;  %s5203_s26 = int_to_ptr.hbm [resolvable:$true] %s219_s26 }
  0x6f   :  { %s195_s22 = sshll.u32 %s4954_s16, 4  ;;  %s4455_s3 = sshra.s32 %s5193_s0, 4  ;;  %s196_s22 = int_to_ptr.vmem [resolvable:$true] %s195_s22  ;;  %s4456_s3 = int_to_ptr.hbm [resolvable:$true] %s4455_s3 }
  0x70   :  { %s4457_s1 = scalar_lea.hbm %s4456_s3, 2  ;;  %s4459_s7 = scalar_lea.hbm %s5050_s24, 2 }
  0x71   :  { %p4458_p1 = scmp.ne.s32.totalorder %s4456_s3, %s4457_s1  ;;  %p4460_p2 = scmp.lt.s32.totalorder %s4456_s3, %s5050_s24 }
  0x72   :  { %p4461_p3 = scmp.lt.s32.totalorder %s4459_s7, %s4457_s1 }
  0x74   :  { %p4462_p4 = por %p4461_p3, %p4460_p2 }
  0x76   :  { %p4463_p5 = pnand %p4462_p4, %p4458_p1 }
  0x78   :  { %4466 = shalt.err (!%p4463_p5)
}
  0x79   :  { %201 = dma.hbm_to_vmem [thread:$0]  %s5193_s0, 32, %s196_s22, [#allocation16], %s4951_s2, %s4951_s2, %s4952_s28  }
  0x7a   :  { %s249_s23 = sshll.u32 %s5080_s4, 4  ;;  %s4955_s10 = smov [#allocation18]   ;;  %s5213_s23 = int_to_ptr.hbm [resolvable:$true] %s249_s23 }
  0x7b   :  { %s221_s25 = sshll.u32 %s4955_s10, 4  ;;  %s4479_s24 = sshra.s32 %s5203_s26, 4  ;;  %s222_s25 = int_to_ptr.vmem [resolvable:$true] %s221_s25  ;;  %s4480_s24 = int_to_ptr.hbm [resolvable:$true] %s4479_s24 }
  0x7c   :  { %s4481_s18 = scalar_lea.hbm %s4480_s24, 2  ;;  %s4483_s9 = scalar_lea.hbm %s5060_s6, 2 }
  0x7d   :  { %p4482_p6 = scmp.ne.s32.totalorder %s4480_s24, %s4481_s18  ;;  %p4484_p7 = scmp.lt.s32.totalorder %s4480_s24, %s5060_s6 }
  0x7e   :  { %p4485_p8 = scmp.lt.s32.totalorder %s4483_s9, %s4481_s18 }
  0x80   :  { %p4486_p9 = por %p4485_p8, %p4484_p7 }
  0x82   :  { %p4487_p10 = pnand %p4486_p9, %p4482_p6 }
  0x84   :  { %4490 = shalt.err (!%p4487_p10)
}
  0x85   :  { %227 = dma.hbm_to_vmem [thread:$0]  %s5203_s26, 32, %s222_s25, [#allocation19], %s4951_s2, %s4951_s2, %s4952_s28  }
  0x86   :  { %s4956_s0 = smov [#allocation21]   ;;  %s275_s22 = sshll.u32 %s5090_s19, 4  ;;  %s5223_s22 = int_to_ptr.hbm [resolvable:$true] %s275_s22 }
  0x87   :  { %s251_s16 = sshll.u32 %s4956_s0, 4  ;;  %s4503_s6 = sshra.s32 %s5213_s23, 4  ;;  %s252_s16 = int_to_ptr.vmem [resolvable:$true] %s251_s16  ;;  %s4504_s6 = int_to_ptr.hbm [resolvable:$true] %s4503_s6 }
  0x88   :  { %s4505_s3 = scalar_lea.hbm %s4504_s6, 2  ;;  %s4507_s1 = scalar_lea.hbm %s5080_s4, 2 }
  0x89   :  { %p4506_p11 = scmp.ne.s32.totalorder %s4504_s6, %s4505_s3  ;;  %p4508_p12 = scmp.lt.s32.totalorder %s4504_s6, %s5080_s4 }
  0x8a   :  { %p4509_p13 = scmp.lt.s32.totalorder %s4507_s1, %s4505_s3 }
  0x8c   :  { %p4510_p0 = por %p4509_p13, %p4508_p12 }
  0x8e   :  { %p4511_p1 = pnand %p4510_p0, %p4506_p11 }
  0x90   :  { %4514 = shalt.err (!%p4511_p1)
}
  0x91   :  { %257 = dma.hbm_to_vmem [thread:$0]  %s5213_s23, 32, %s252_s16, [#allocation22], %s4951_s2, %s4951_s2, %s4952_s28  }
  0x92   :  { %s309_s26 = sshll.u32 %s5120_s8, 4  ;;  %s4957_s7 = smov [#allocation24]   ;;  %s5233_s26 = int_to_ptr.hbm [resolvable:$true] %s309_s26 }
  0x93   :  { %s277_s10 = sshll.u32 %s4957_s7, 4  ;;  %s4527_s4 = sshra.s32 %s5223_s22, 4  ;;  %s278_s10 = int_to_ptr.vmem [resolvable:$true] %s277_s10  ;;  %s4528_s4 = int_to_ptr.hbm [resolvable:$true] %s4527_s4 }
  0x94   :  { %s4529_s25 = scalar_lea.hbm %s4528_s4, 2  ;;  %s4531_s24 = scalar_lea.hbm %s5090_s19, 2 }
  0x95   :  { %p4530_p2 = scmp.ne.s32.totalorder %s4528_s4, %s4529_s25  ;;  %p4532_p3 = scmp.lt.s32.totalorder %s4528_s4, %s5090_s19 }
  0x96   :  { %p4533_p4 = scmp.lt.s32.totalorder %s4531_s24, %s4529_s25 }
  0x98   :  { %p4534_p5 = por %p4533_p4, %p4532_p3 }
  0x9a   :  { %p4535_p6 = pnand %p4534_p5, %p4530_p2 }
  0x9c   :  { %4538 = shalt.err (!%p4535_p6)
}
  0x9d   :  { %283 = dma.hbm_to_vmem [thread:$0]  %s5223_s22, 32, %s278_s10, [#allocation25], %s4951_s2, %s4951_s2, %s4952_s28  }
  0x9e   :  { %s4958_s23 = smov [#allocation27]   ;;  %s4551_s9 = sshra.s32 %s5233_s26, 4  ;;  %s4552_s9 = int_to_ptr.hbm [resolvable:$true] %s4551_s9 }
  0x9f   :  { %s311_s18 = sshll.u32 %s4958_s23, 4  ;;  %s4553_s0 = scalar_lea.hbm %s4552_s9, 2  ;;  %s312_s18 = int_to_ptr.vmem [resolvable:$true] %s311_s18 }
  0xa0   :  { %p4554_p7 = scmp.ne.s32.totalorder %s4552_s9, %s4553_s0  ;;  %s4555_s19 = scalar_lea.hbm %s5120_s8, 2 }
  0xa1   :  { %p4556_p8 = scmp.lt.s32.totalorder %s4552_s9, %s5120_s8  ;;  %p4557_p9 = scmp.lt.s32.totalorder %s4555_s19, %s4553_s0 }
  0xa3   :  { %p4558_p10 = por %p4557_p9, %p4556_p8 }
  0xa5   :  { %p4559_p11 = pnand %p4558_p10, %p4554_p7 }
  0xa7   :  { %4562 = shalt.err (!%p4559_p11)
}
  0xa8   :  { %317 = dma.hbm_to_vmem [thread:$0]  %s5233_s26, 32, %s312_s18, [#allocation28], %s4951_s2, %s4951_s2, %s4952_s28  }
  0xa9   :  { %s341_s16 = sshll.u32 %s5145_s21, 4  ;;  %s4959_s22 = smov [#allocation30]   ;;  %s342_s16 = int_to_ptr.hbm [resolvable:$true] %s341_s16 }
  0xaa   :  { %s343_s6 = sshll.u32 %s4959_s22, 4  ;;  %s94_s3 = sshll.u32 %s4995_s5, 4  ;;  %s344_s6 = int_to_ptr.vmem [resolvable:$true] %s343_s6  ;;  %s95_s3 = int_to_ptr.hbm [resolvable:$true] %s94_s3 }
  0xab   :  { %s4575_s8 = sshra.s32 %s342_s16, 4  ;;  %s4579_s7 = scalar_lea.hbm %s5145_s21, 16  ;;  %s4576_s8 = int_to_ptr.hbm [resolvable:$true] %s4575_s8 }
  0xac   :  { %s4577_s1 = scalar_lea.hbm %s4576_s8, 16  ;;  %p4580_p13 = scmp.lt.s32.totalorder %s4576_s8, %s5145_s21 }
  0xad   :  { %p4578_p12 = scmp.ne.s32.totalorder %s4576_s8, %s4577_s1  ;;  %p4581_p0 = scmp.lt.s32.totalorder %s4579_s7, %s4577_s1 }
  0xaf   :  { %p4582_p1 = por %p4581_p0, %p4580_p13 }
  0xb1   :  { %p4583_p2 = pnand %p4582_p1, %p4578_p12 }
  0xb3   :  { %4586 = shalt.err (!%p4583_p2)
}
  0xb4   :  { %s4960_s10 = smov 64   ;;  %s4961_s26 = smov 4  }
  0xb5   :  { %349 = dma.hbm_to_vmem [thread:$0]  %s342_s16, 256, %s344_s6, [#allocation31], %s4960_s10, %s4960_s10, %s4961_s26  }
  0xb6   :  { %s4962_s4 = smov [#allocation3]   ;;  %s122_s24 = sshll.u32 %s5010_s17, 4  ;;  %s5257_s24 = int_to_ptr.hbm [resolvable:$true] %s122_s24 }
  0xb7   :  { %s96_s25 = sshll.u32 %s4962_s4, 4  ;;  %s4599_s21 = sshra.s32 %s95_s3, 4  ;;  %s97_s25 = int_to_ptr.vmem [resolvable:$true] %s96_s25  ;;  %s4600_s21 = int_to_ptr.hbm [resolvable:$true] %s4599_s21 }
  0xb8   :  { %s4601_s23 = scalar_lea.hbm %s4600_s21, 16  ;;  %s4603_s18 = scalar_lea.hbm %s4995_s5, 16 }
  0xb9   :  { %p4602_p3 = scmp.ne.s32.totalorder %s4600_s21, %s4601_s23  ;;  %p4604_p4 = scmp.lt.s32.totalorder %s4600_s21, %s4995_s5 }
  0xba   :  { %p4605_p5 = scmp.lt.s32.totalorder %s4603_s18, %s4601_s23 }
  0xbc   :  { %p4606_p6 = por %p4605_p5, %p4604_p4 }
  0xbe   :  { %p4607_p7 = pnand %p4606_p6, %p4602_p3 }
  0xc0   :  { %4610 = shalt.err (!%p4607_p7)
}
  0xc1   :  { %102 = dma.hbm_to_vmem [thread:$0]  %s95_s3, 256, %s97_s25, [#allocation4], %s4948_s11, %s4948_s11, %s4949_s15  }
  0xc2   :  { %s150_s9 = sshll.u32 %s5025_s29, 4  ;;  %s4963_s0 = smov [#allocation8]   ;;  %s5265_s9 = int_to_ptr.hbm [resolvable:$true] %s150_s9 }
  0xc3   :  { %s124_s19 = sshll.u32 %s4963_s0, 4  ;;  %s4623_s16 = sshra.s32 %s5257_s24, 4  ;;  %s125_s19 = int_to_ptr.vmem [resolvable:$true] %s124_s19  ;;  %s4624_s16 = int_to_ptr.hbm [resolvable:$true] %s4623_s16 }
  0xc4   :  { %s4625_s5 = scalar_lea.hbm %s4624_s16, 2  ;;  %s4627_s22 = scalar_lea.hbm %s5010_s17, 2 }
  0xc5   :  { %p4626_p8 = scmp.ne.s32.totalorder %s4624_s16, %s4625_s5  ;;  %p4628_p9 = scmp.lt.s32.totalorder %s4624_s16, %s5010_s17 }
  0xc6   :  { %p4629_p10 = scmp.lt.s32.totalorder %s4627_s22, %s4625_s5 }
  0xc8   :  { %p4630_p11 = por %p4629_p10, %p4628_p9 }
  0xca   :  { %p4631_p12 = pnand %p4630_p11, %p4626_p8 }
  0xcc   :  { %4634 = shalt.err (!%p4631_p12)
}
  0xcd   :  { %130 = dma.hbm_to_vmem [thread:$0]  %s5257_s24, 32, %s125_s19, [#allocation7], %s4951_s2, %s4951_s2, %s4952_s28  }
  0xce   :  { %s4964_s6 = smov [#allocation11]   ;;  %s178_s8 = sshll.u32 %s5040_s14, 4  ;;  %s5275_s8 = int_to_ptr.hbm [resolvable:$true] %s178_s8 }
  0xcf   :  { %s152_s3 = sshll.u32 %s4964_s6, 4  ;;  %s4647_s17 = sshra.s32 %s5265_s9, 4  ;;  %s153_s3 = int_to_ptr.vmem [resolvable:$true] %s152_s3  ;;  %s4648_s17 = int_to_ptr.hbm [resolvable:$true] %s4647_s17 }
  0xd0   :  { %s4649_s1 = scalar_lea.hbm %s4648_s17, 2  ;;  %s4651_s7 = scalar_lea.hbm %s5025_s29, 2 }
  0xd1   :  { %p4650_p13 = scmp.ne.s32.totalorder %s4648_s17, %s4649_s1  ;;  %p4652_p0 = scmp.lt.s32.totalorder %s4648_s17, %s5025_s29 }
  0xd2   :  { %p4653_p1 = scmp.lt.s32.totalorder %s4651_s7, %s4649_s1 }
  0xd4   :  { %p4654_p2 = por %p4653_p1, %p4652_p0 }
  0xd6   :  { %p4655_p3 = pnand %p4654_p2, %p4650_p13 }
  0xd8   :  { %4658 = shalt.err (!%p4655_p3)
}
  0xd9   :  { %158 = dma.hbm_to_vmem [thread:$0]  %s5265_s9, 32, %s153_s3, [#allocation10], %s4951_s2, %s4951_s2, %s4952_s28  }
  0xda   :  { %s206_s4 = sshll.u32 %s5055_s30, 4  ;;  %s4965_s25 = smov [#allocation14]   ;;  %s5285_s4 = int_to_ptr.hbm [resolvable:$true] %s206_s4 }
  0xdb   :  { %s180_s24 = sshll.u32 %s4965_s25, 4  ;;  %s4671_s29 = sshra.s32 %s5275_s8, 4  ;;  %s181_s24 = int_to_ptr.vmem [resolvable:$true] %s180_s24  ;;  %s4672_s29 = int_to_ptr.hbm [resolvable:$true] %s4671_s29 }
  0xdc   :  { %s4673_s21 = scalar_lea.hbm %s4672_s29, 2  ;;  %s4675_s23 = scalar_lea.hbm %s5040_s14, 2 }
  0xdd   :  { %p4674_p4 = scmp.ne.s32.totalorder %s4672_s29, %s4673_s21  ;;  %p4676_p5 = scmp.lt.s32.totalorder %s4672_s29, %s5040_s14 }
  0xde   :  { %p4677_p6 = scmp.lt.s32.totalorder %s4675_s23, %s4673_s21 }
  0xe0   :  { %p4678_p7 = por %p4677_p6, %p4676_p5 }
  0xe2   :  { %p4679_p8 = pnand %p4678_p7, %p4674_p4 }
  0xe4   :  { %4682 = shalt.err (!%p4679_p8)
}
  0xe5   :  { %s5979_s18 = sld [smem:[#allocation53_spill]]  ;;  %s4966_s9 = smov [#allocation17]  }
  0xe6   :  { %186 = dma.hbm_to_vmem [thread:$0]  %s5275_s8, 32, %s181_s24, [#allocation13], %s4951_s2, %s4951_s2, %s4952_s28  }
  0xe7   :  { %s208_s0 = sshll.u32 %s4966_s9, 4  ;;  %s4695_s14 = sshra.s32 %s5285_s4, 4  ;;  %s209_s0 = int_to_ptr.vmem [resolvable:$true] %s208_s0  ;;  %s4696_s14 = int_to_ptr.hbm [resolvable:$true] %s4695_s14 }
  0xe8   :  { %s4697_s16 = scalar_lea.hbm %s4696_s14, 2  ;;  %s4699_s5 = scalar_lea.hbm %s5055_s30, 2 }
  0xe9   :  { %p4698_p9 = scmp.ne.s32.totalorder %s4696_s14, %s4697_s16  ;;  %p4700_p10 = scmp.lt.s32.totalorder %s4696_s14, %s5055_s30 }
  0xea   :  { %p4701_p11 = scmp.lt.s32.totalorder %s4699_s5, %s4697_s16 }
  0xeb   :  { %s234_s19 = sshll.u32 %s5979_s18, 4  ;;  %s5295_s19 = int_to_ptr.hbm [resolvable:$true] %s234_s19 }
  0xec   :  { %p4702_p12 = por %p4701_p11, %p4700_p10 }
  0xee   :  { %p4703_p13 = pnand %p4702_p12, %p4698_p9 }
  0xf0   :  { %4706 = shalt.err (!%p4703_p13)
}
  0xf1   :  { %s5980_s22 = sld [smem:[#allocation55_spill]]  ;;  %s4967_s3 = smov [#allocation20]  }
  0xf2   :  { %214 = dma.hbm_to_vmem [thread:$0]  %s5285_s4, 32, %s209_s0, [#allocation16], %s4951_s2, %s4951_s2, %s4952_s28  }
  0xf3   :  { %s236_s8 = sshll.u32 %s4967_s3, 4  ;;  %s4719_s30 = sshra.s32 %s5295_s19, 4  ;;  %s237_s8 = int_to_ptr.vmem [resolvable:$true] %s236_s8  ;;  %s4720_s30 = int_to_ptr.hbm [resolvable:$true] %s4719_s30 }
  0xf4   :  { %s4721_s17 = scalar_lea.hbm %s4720_s30, 2  ;;  %s4723_s1 = scalar_lea.hbm %s5979_s18, 2 }
  0xf5   :  { %p4722_p0 = scmp.ne.s32.totalorder %s4720_s30, %s4721_s17  ;;  %p4724_p1 = scmp.lt.s32.totalorder %s4720_s30, %s5979_s18 }
  0xf6   :  { %p4725_p2 = scmp.lt.s32.totalorder %s4723_s1, %s4721_s17 }
  0xf7   :  { %s262_s6 = sshll.u32 %s5980_s22, 4  ;;  %s5305_s6 = int_to_ptr.hbm [resolvable:$true] %s262_s6 }
  0xf8   :  { %p4726_p3 = por %p4725_p2, %p4724_p1 }
  0xfa   :  { %p4727_p4 = pnand %p4726_p3, %p4722_p0 }
  0xfc   :  { %4730 = shalt.err (!%p4727_p4)
}
  0xfd   :  { %s5981_s7 = sld [smem:[#allocation56_spill]]  ;;  %s4968_s4 = smov [#allocation23]  }
  0xfe   :  { %242 = dma.hbm_to_vmem [thread:$0]  %s5295_s19, 32, %s237_s8, [#allocation19], %s4951_s2, %s4951_s2, %s4952_s28  }
  0xff   :  { %s264_s25 = sshll.u32 %s4968_s4, 4  ;;  %s4743_s29 = sshra.s32 %s5305_s6, 4  ;;  %s265_s25 = int_to_ptr.vmem [resolvable:$true] %s264_s25  ;;  %s4744_s29 = int_to_ptr.hbm [resolvable:$true] %s4743_s29 }
 0x100   :  { %s4745_s21 = scalar_lea.hbm %s4744_s29, 2  ;;  %s4747_s23 = scalar_lea.hbm %s5980_s22, 2 }
 0x101   :  { %p4746_p5 = scmp.ne.s32.totalorder %s4744_s29, %s4745_s21  ;;  %p4748_p6 = scmp.lt.s32.totalorder %s4744_s29, %s5980_s22 }
 0x102   :  { %p4749_p7 = scmp.lt.s32.totalorder %s4747_s23, %s4745_s21 }
 0x103   :  { %s288_s24 = sshll.u32 %s5981_s7, 4  ;;  %s5315_s24 = int_to_ptr.hbm [resolvable:$true] %s288_s24 }
 0x104   :  { %p4750_p8 = por %p4749_p7, %p4748_p6 }
 0x106   :  { %p4751_p9 = pnand %p4750_p8, %p4746_p5 }
 0x108   :  { %4754 = shalt.err (!%p4751_p9)
}
 0x109   :  { %s5982_s18 = sld [smem:[#allocation63_spill]]  ;;  %s4969_s0 = smov [#allocation26]  }
 0x10a   :  { %270 = dma.hbm_to_vmem [thread:$0]  %s5305_s6, 32, %s265_s25, [#allocation22], %s4951_s2, %s4951_s2, %s4952_s28  }
 0x10b   :  { %s290_s19 = sshll.u32 %s4969_s0, 4  ;;  %s4767_s14 = sshra.s32 %s5315_s24, 4  ;;  %s291_s19 = int_to_ptr.vmem [resolvable:$true] %s290_s19  ;;  %s4768_s14 = int_to_ptr.hbm [resolvable:$true] %s4767_s14 }
 0x10c   :  { %s4769_s16 = scalar_lea.hbm %s4768_s14, 32  ;;  %s4771_s5 = scalar_lea.hbm %s5981_s7, 32 }
 0x10d   :  { %p4770_p10 = scmp.ne.s32.totalorder %s4768_s14, %s4769_s16  ;;  %p4772_p11 = scmp.lt.s32.totalorder %s4768_s14, %s5981_s7 }
 0x10e   :  { %p4773_p12 = scmp.lt.s32.totalorder %s4771_s5, %s4769_s16 }
 0x10f   :  { %s326_s9 = sshll.u32 %s5982_s18, 4  ;;  %s5325_s9 = int_to_ptr.hbm [resolvable:$true] %s326_s9 }
 0x110   :  { %p4774_p13 = por %p4773_p12, %p4772_p11 }
 0x112   :  { %p4775_p0 = pnand %p4774_p13, %p4770_p10 }
 0x114   :  { %4778 = shalt.err (!%p4775_p0)
}
 0x115   :  { %s5983_s28 = sld [smem:[#allocation66_spill]]  ;;  %s4970_s22 = smov [#allocation29]  }
 0x116   :  { %296 = dma.hbm_to_vmem [thread:$0]  %s5315_s24, 512, %s291_s19, [#allocation25], %s4960_s10, %s4960_s10, %s4961_s26  }
 0x117   :  { %s328_s6 = sshll.u32 %s4970_s22, 4  ;;  %s4791_s8 = sshra.s32 %s5325_s9, 4  ;;  %s329_s6 = int_to_ptr.vmem [resolvable:$true] %s328_s6  ;;  %s4792_s8 = int_to_ptr.hbm [resolvable:$true] %s4791_s8 }
 0x118   :  { %s4793_s30 = scalar_lea.hbm %s4792_s8, 16  ;;  %s4795_s17 = scalar_lea.hbm %s5982_s18, 16 }
 0x119   :  { %p4794_p1 = scmp.ne.s32.totalorder %s4792_s8, %s4793_s30  ;;  %p4796_p2 = scmp.lt.s32.totalorder %s4792_s8, %s5982_s18 }
 0x11a   :  { %p4797_p3 = scmp.lt.s32.totalorder %s4795_s17, %s4793_s30 }
 0x11b   :  { %s356_s3 = sshll.u32 %s5983_s28, 4  ;;  %s5335_s3 = int_to_ptr.hbm [resolvable:$true] %s356_s3 }
 0x11c   :  { %p4798_p4 = por %p4797_p3, %p4796_p2 }
 0x11e   :  { %p4799_p5 = pnand %p4798_p4, %p4794_p1 }
 0x120   :  { %4802 = shalt.err (!%p4799_p5)
}
 0x121   :  { %334 = dma.hbm_to_vmem [thread:$0]  %s5325_s9, 256, %s329_s6, [#allocation28], %s4960_s10, %s4960_s10, %s4961_s26  }
 0x122   :  { %s371_s1 = sshll.u32 %s5165_s20, 4  ;;  %s4971_s7 = smov [#allocation32]   ;;  %s5345_s1 = int_to_ptr.hbm [resolvable:$true] %s371_s1 }
 0x123   :  { %s358_s4 = sshll.u32 %s4971_s7, 4  ;;  %s4815_s25 = sshra.s32 %s5335_s3, 4  ;;  %s359_s4 = int_to_ptr.vmem [resolvable:$true] %s358_s4  ;;  %s4816_s25 = int_to_ptr.hbm [resolvable:$true] %s4815_s25 }
 0x124   :  { %s4817_s24 = scalar_lea.hbm %s4816_s25, 16  ;;  %s4819_s29 = scalar_lea.hbm %s5983_s28, 16 }
 0x125   :  { %p4818_p6 = scmp.ne.s32.totalorder %s4816_s25, %s4817_s24  ;;  %p4820_p7 = scmp.lt.s32.totalorder %s4816_s25, %s5983_s28 }
 0x126   :  { %p4821_p8 = scmp.lt.s32.totalorder %s4819_s29, %s4817_s24 }
 0x128   :  { %p4822_p9 = por %p4821_p8, %p4820_p7 }
 0x12a   :  { %p4823_p10 = pnand %p4822_p9, %p4818_p6 }
 0x12c   :  { %4826 = shalt.err (!%p4823_p10)
}
 0x12d   :  { %364 = dma.hbm_to_vmem [thread:$0]  %s5335_s3, 256, %s359_s4, [#allocation31], %s4960_s10, %s4960_s10, %s4961_s26  }
 0x12e   :  { %s4972_s21 = smov [#allocation33]   ;;  %s4839_s18 = sshra.s32 %s5345_s1, 4  ;;  %s4840_s18 = int_to_ptr.hbm [resolvable:$true] %s4839_s18 }
 0x12f   :  { %s373_s23 = sshll.u32 %s4972_s21, 4  ;;  %s4841_s9 = scalar_lea.hbm %s4840_s18, 16  ;;  %s374_s23 = int_to_ptr.vmem [resolvable:$true] %s373_s23 }
 0x130   :  { %p4842_p11 = scmp.ne.s32.totalorder %s4840_s18, %s4841_s9  ;;  %s4843_s0 = scalar_lea.hbm %s5165_s20, 16 }
 0x131   :  { %p4844_p12 = scmp.lt.s32.totalorder %s4840_s18, %s5165_s20  ;;  %p4845_p13 = scmp.lt.s32.totalorder %s4843_s0, %s4841_s9 }
 0x133   :  { %p4846_p0 = por %p4845_p13, %p4844_p12 }
 0x135   :  { %p4847_p1 = pnand %p4846_p0, %p4842_p11 }
 0x137   :  { %4850 = shalt.err (!%p4847_p1)
}
 0x138   :  { %379 = dma.hbm_to_vmem [thread:$0]  %s5345_s1, 256, %s374_s23, [#allocation34], %s4960_s10, %s4960_s10, %s4961_s26  }
 0x139   :  { %4887 = dma.done.wait [#allocation4], 256  }
 0x13a   :  { %4888 = vsyncadd [#allocation4], 4294967040 }
 0x13b   :  { %4889 = dma.done.wait [#allocation7], 288  }
 0x13c   :  { %4890 = vsyncadd [#allocation7], 4294967008 }
 0x13d   :  { %4891 = dma.done.wait [#allocation10], 64  }
 0x13e   :  { %4892 = vsyncadd [#allocation10], 4294967232 }
 0x13f   :  { %4893 = dma.done.wait [#allocation13], 64  }
 0x140   :  { %4894 = vsyncadd [#allocation13], 4294967232 }
 0x141   :  { %4895 = dma.done.wait [#allocation16], 64  }
 0x142   :  { %4896 = vsyncadd [#allocation16], 4294967232 }
 0x143   :  { %4897 = dma.done.wait [#allocation19], 64  }
 0x144   :  { %4898 = vsyncadd [#allocation19], 4294967232 }
 0x145   :  { %4899 = dma.done.wait [#allocation22], 64  }
 0x146   :  { %4900 = vsyncadd [#allocation22], 4294967232 }
 0x147   :  { %4901 = dma.done.wait [#allocation25], 544  }
 0x148   :  { %4902 = vsyncadd [#allocation25], 4294966752 }
 0x149   :  { %4903 = dma.done.wait [#allocation28], 288  }
 0x14a   :  { %4904 = vsyncadd [#allocation28], 4294967008 }
 0x14b   :  { %4905 = dma.done.wait [#allocation31], 512  }
 0x14c   :  { %4906 = vsyncadd [#allocation31], 4294966784 }
 0x14d   :  { %4907 = dma.done.wait [#allocation34], 256  }
 0x14e   :  { %4908 = vsyncadd [#allocation34], 4294967040  ;;  %s5984_s20 = sld [smem:[#allocation48_spill]]  ;;  %v463_v1 = vld [vmem:[#allocation3] sm:$0xff]  ;;  %v464_v2 = vld [vmem:[#allocation3 + $0x8] sm:$0xff]  ;;  %vm529_vm0 = vcmask 261120   ;;  %v469_v20 = vlaneseq }
 0x14f   :  { %v465_v3 = vld [vmem:[#allocation6] sm:$0xff]  ;;  %v466_v4 = vld [vmem:[#allocation6 + $0x8] sm:$0xff]  ;;  %v4152_v9 = vld [vmem:[#allocation8] ss:$0 sm:$0xff]  ;;  %s4973_s26 = smov 96   ;;  %vm598_vm1 = vcmask 1043456  }
 0x150   :  { %v5363_v6 = vadd.f32 %v465_v3, %v463_v1  ;;  %v5365_v7 = vadd.f32 %v466_v4, %v464_v2  ;;  %vm594_vm2 = vcmask 64512   ;;  %v5381_v21 = vand.u32 127, %v469_v20  ;;  %s4975_s19 = smov 120   ;;  %s4976_s14 = smov 112  }
 0x151   :  { %v4974_v23 = vmov -1e+09   ;;  %vm620_vm4 = vcmask 130048   ;;  %s4977_s16 = smov 104   ;;  %s4978_s5 = smov 56   ;;  %vm745_vm8 = vcmask 130112  }
 0x152   :  { %v5369_v8 = vpack.c.bf16 %v5365_v7, %v5363_v6  ;;  %vm483_vm3 = vcmp.lt.s32.totalorder %v5381_v21, 8  ;;  %vm492_vm5 = vcmp.ge.s32.totalorder %v5381_v21, 8  ;;  %vm495_vm6 = vcmp.lt.s32.totalorder %v5381_v21, 16  ;;  %s4979_s28 = smov 40   ;;  %s4980_s22 = smov 48  }
 0x153   :  { %v5387_v24 = vsel %vm483_vm3, 0.0, %v4974_v23  ;;  %vm5393_vm7 = vmand %vm492_vm5, %vm495_vm6  ;;  %s4981_s6 = smov 24   ;;  %s5987_s3 = sld [smem:[#allocation49_spill]]  ;;  %vm826_vm9 = vcmask 195712   ;;  %vm907_vm10 = vcmask 261312  }
 0x154   :  { %v4011_v0 = vld [vmem:[%s5984_s20 + $0x8] sm:$0xff]  ;;  %v4010_v5 = vld [vmem:[%s5984_s20] sm:$0xff]  ;;  %v5400_v30 = vsel %vm5393_vm7, 0.0, %v4974_v23  ;;  %s5988_s8 = sld [smem:[#allocation50_spill]]  ;;  %s4983_s18 = smov 80  }
 0x155   :  { %539 = vmatpush.bf16.msra.mxu0 %v4011_v0  ;;  %s5989_s30 = sld [smem:[#allocation51_spill]]  ;;  %s4984_s9 = smov 88  }
 0x156   :  { %s5990_s17 = sld [smem:[#allocation52_spill]]  ;;  %s4985_s0 = smov 72  }
 0x157   :  { %s5991_s1 = sld [smem:[#allocation61_spill]] }
 0x158   :  { %s5992_s7 = sld [smem:[#allocation54_spill]] }
 0x159   :  { %540 = vmatpush.bf16.msra.mxu0 %v4010_v5  ;;  %s5993_s4 = sld [smem:[#allocation58_spill]] }
 0x15a   :  { %s5994_s25 = sld [smem:[#allocation57_spill]] }
 0x15b   :  { %s5995_s24 = sld [smem:[#allocation59_spill]] }
 0x15c   :  { %3718 = vmatmul.msk.bf16.vlgmr.msra.gmra.mxu0 %vm529_vm0, %v5369_v8  ;;  %s5996_s29 = sld [smem:[#allocation60_spill]] }
 0x15d   :  { %s5998_s21 = sld [smem:[#allocation65_spill]] }
 0x15e   :  { %s5999_s23 = sld [smem:[#allocation64_spill]] }
 0x1d9   :  { %v542_v10 = vpop.f32.mrf.mxu0 }
 0x1da   :  { %v543_v11 = vadd.f32 %v4152_v9, %v542_v10 }
 0x1dc   :  { %554 = vrot.lane.b32.xlu0 %v543_v11, %s4973_s26 }
 0x1e1   :  { %v544_v12 = vpop.f32.mrf.mxu0 }
 0x1e2   :  { %v545_v13 = vadd.f32 %v4152_v9, %v544_v12 }
 0x1e4   :  { %v5374_v14 = vpack.c.bf16 %v545_v13, %v543_v11  ;;  %556 = vrot.lane.b32.xlu0 %v545_v13, %s4973_s26 }
 0x24e   :  { %v555_v15 = vpop.permute.xlu0 %554 }
 0x24f   :  { %560 = vxpose.xlu1.b32.start [1/2] (short) (narrow) %v555_v15, 32 }
 0x256   :  { %v557_v16 = vpop.permute.xlu0 %556 }
 0x257   :  { %561 = vxpose.xlu1.b32.end [2/2] (short) (narrow) %v557_v16, 32 }
 0x2f3   :  { %v576_v17 = vpop.trf.xlu1 }
 0x2f4   :  { %v593_v18 = vpack.c.bf16 %v576_v17, %v576_v17 }
 0x2f6   :  { %v600_v19 = vsel %vm598_vm1, %v593_v18, 0 }
 0x2f7   :  { %609 = vmatpush.bf16.msra.mxu1 %v600_v19 }
 0x2fa   :  { %3719 = vmatmul.msk.bf16.vlgmr.msra.gmra.mxu1 %vm594_vm2, %v5374_v14 }
 0x2fb   :  { %v577_v34 = vpop.trf.xlu1 }
 0x2fc   :  { %v667_v35 = vpack.c.bf16 %v577_v34, %v577_v34 }
 0x2fe   :  { %v674_v36 = vsel %vm598_vm1, %v667_v35, 0 }
 0x2ff   :  { %683 = vmatpush.bf16.msra.mxu3 %v674_v36 }
 0x303   :  { %v578_v37 = vpop.trf.xlu1 }
 0x304   :  { %v748_v48 = vpack.c.bf16 %v578_v37, %v578_v37 }
 0x306   :  { %v755_v50 = vsel %vm598_vm1, %v748_v48, 0 }
 0x30b   :  { %v579_v40 = vpop.trf.xlu1 }
 0x30c   :  { %v829_v41 = vpack.c.bf16 %v579_v40, %v579_v40 }
 0x30e   :  { %v836_v43 = vsel %vm598_vm1, %v829_v41, 0 }
 0x30f   :  { %845 = vmatpush.bf16.msrb.mxu0 %v836_v43 }
 0x377   :  { %v611_v22 = vpop.f32.mrf.mxu1 }
 0x378   :  { %v616_v25 = vmul.f32 0.35355338, %v611_v22 }
 0x37a   :  { %v618_v26 = vadd.f32 %v616_v25, %v5387_v24 }
 0x37c   :  { %v621_v27 = vsel %vm620_vm4, %v618_v26, -inf }
 0x37d   :  { %622 = vmax.xlane.f32.xlu2 %v621_v27 }
 0x37f   :  { %v613_v29 = vpop.f32.mrf.mxu1 }
 0x380   :  { %v617_v31 = vmul.f32 0.35355338, %v613_v29 }
 0x382   :  { %v619_v32 = vadd.f32 %v617_v31, %v5400_v30 }
 0x384   :  { %v624_v33 = vsel %vm620_vm4, %v619_v32, -inf }
 0x385   :  { %625 = vmax.xlane.f32.xlu2 %v624_v33 }
 0x39d   :  { %645 = vrot.lane.b32.xlu2 %v5374_v14, %s4960_s10 }
 0x3a5   :  { %668 = vrot.lane.b32.xlu2 %v5374_v14, %s4975_s19 }
 0x3ad   :  { %749 = vrot.lane.b32.xlu2 %v5374_v14, %s4976_s14 }
 0x3b5   :  { %830 = vrot.lane.b32.xlu2 %v5374_v14, %s4977_s16 }
 0x3f0   :  { %v623_v38 = vpop.xlane.xlu2 %622 }
 0x3f1   :  { %v627_v39 = vsub.f32 %v618_v26, %v623_v38 }
 0x3f3   :  { %v629_v42 = vmul.f32 1.442695, %v627_v39 }
 0x3f5   :  { %4189 = vpow2.f32 %v629_v42 }
 0x3f8   :  { %v626_v44 = vpop.xlane.xlu2 %625 }
 0x3f9   :  { %v628_v45 = vsub.f32 %v619_v32, %v626_v44 }
 0x3fb   :  { %v4190_v46 = vpop.eup %4189  ;;  %v631_v47 = vmul.f32 1.442695, %v628_v45 }
 0x3fc   :  { %v633_v49 = vsel %vm620_vm4, %v4190_v46, 0.0 }
 0x3fd   :  { %4191 = vpow2.f32 %v631_v47  ;;  %634 = vadd.xlane.f32.xlu0 %v633_v49 }
 0x400   :  { %v646_v51 = vpop.permute.xlu2 %645 }
 0x401   :  { %658 = vmatpush.bf16.msra.mxu2 %v646_v51 }
 0x403   :  { %v4192_v52 = vpop.eup %4191 }
 0x404   :  { %v636_v53 = vsel %vm620_vm4, %v4192_v52, 0.0 }
 0x405   :  { %764 = vmatpush.bf16.msrb.mxu2 %v755_v50  ;;  %637 = vadd.xlane.f32.xlu1 %v636_v53 }
 0x408   :  { %v669_v54 = vpop.permute.xlu2 %668 }
 0x409   :  { %3721 = vmatmul.msk.bf16.vlgmr.msra.gmra.mxu3 %vm594_vm2, %v669_v54 }
 0x410   :  { %v750_v55 = vpop.permute.xlu2 %749 }
 0x418   :  { %v831_v56 = vpop.permute.xlu2 %830 }
 0x419   :  { %3725 = vmatmul.msk.bf16.vlgmr.msrb.gmra.mxu0 %vm594_vm2, %v831_v56 }
 0x470   :  { %v635_v57 = vpop.xlane.xlu0 %634 }
 0x471   :  { %4193 = vrcp.f32 %v635_v57 }
 0x477   :  { %v4194_v59 = vpop.eup %4193 }
 0x478   :  { %v638_v58 = vpop.xlane.xlu1 %637  ;;  %v641_v61 = vmul.f32 %v4194_v59, %v4190_v46 }
 0x479   :  { %4195 = vrcp.f32 %v638_v58 }
 0x47f   :  { %v4196_v60 = vpop.eup %4195 }
 0x480   :  { %v642_v62 = vmul.f32 %v4196_v60, %v4192_v52 }
 0x482   :  { %v643_v63 = vpack.c.bf16 %v642_v62, %v641_v61 }
 0x484   :  { %3720 = vmatmul.msk.bf16.vlgmr.msra.gmra.mxu2 %vm620_vm4, %v643_v63 }
 0x48c   :  { %v685_v0 = vpop.f32.mrf.mxu3 }
 0x48d   :  { %v690_v1 = vmul.f32 0.35355338, %v685_v0 }
 0x48f   :  { %v692_v2 = vadd.f32 %v690_v1, %v5387_v24 }
 0x491   :  { %v694_v3 = vsel %vm620_vm4, %v692_v2, -inf }
 0x492   :  { %695 = vmax.xlane.f32.xlu0 %v694_v3 }
 0x494   :  { %v687_v4 = vpop.f32.mrf.mxu3  ;;  %3723 = vmatmul.msk.bf16.vlgmr.msrb.gmra.mxu2 %vm594_vm2, %v750_v55 }
 0x495   :  { %v691_v5 = vmul.f32 0.35355338, %v687_v4 }
 0x496   :  { %v847_v9 = vpop.f32.mrf.mxu0 }
 0x497   :  { %v852_v10 = vmul.f32 0.35355338, %v847_v9  ;;  %v693_v11 = vadd.f32 %v691_v5, %v5400_v30 }
 0x499   :  { %v697_v12 = vsel %vm620_vm4, %v693_v11, -inf  ;;  %v854_v13 = vadd.f32 %v852_v10, %v5387_v24 }
 0x49a   :  { %698 = vmax.xlane.f32.xlu2 %v697_v12 }
 0x49b   :  { %v856_v15 = vsel %vm620_vm4, %v854_v13, -inf }
 0x49c   :  { %857 = vmax.xlane.f32.xlu0 %v856_v15 }
 0x49e   :  { %v849_v16 = vpop.f32.mrf.mxu0 }
 0x49f   :  { %v853_v17 = vmul.f32 0.35355338, %v849_v16 }
 0x4a1   :  { %v855_v18 = vadd.f32 %v853_v17, %v5400_v30 }
 0x4a3   :  { %v859_v19 = vsel %vm620_vm4, %v855_v18, -inf }
 0x4a4   :  { %860 = vmax.xlane.f32.xlu0 %v859_v19 }
 0x505   :  { %v696_v22 = vpop.xlane.xlu0 %695 }
 0x506   :  { %v700_v25 = vsub.f32 %v692_v2, %v696_v22 }
 0x507   :  { %v660_v26 = vpop.f32.mrf.mxu2 }
 0x508   :  { %v702_v27 = vmul.f32 1.442695, %v700_v25  ;;  %665 = vst.msk [vmem:[#allocation2] sm:$0xff] %vm594_vm2, %v660_v26 }
 0x50a   :  { %4197 = vpow2.f32 %v702_v27 }
 0x50d   :  { %v699_v29 = vpop.xlane.xlu2 %698 }
 0x50e   :  { %v701_v31 = vsub.f32 %v693_v11, %v699_v29 }
 0x50f   :  { %v662_v32 = vpop.f32.mrf.mxu2  ;;  %v858_v33 = vpop.xlane.xlu0 %857 }
 0x510   :  { %v4198_v34 = vpop.eup %4197  ;;  %v704_v35 = vmul.f32 1.442695, %v701_v31  ;;  %666 = vst.msk [vmem:[#allocation2 + $0x8] sm:$0xff] %vm594_vm2, %v662_v32  ;;  %v862_v52 = vsub.f32 %v854_v13, %v858_v33 }
 0x511   :  { %v706_v36 = vsel %vm620_vm4, %v4198_v34, 0.0 }
 0x512   :  { %4199 = vpow2.f32 %v704_v35  ;;  %707 = vadd.xlane.f32.xlu0 %v706_v36  ;;  %v864_v53 = vmul.f32 1.442695, %v862_v52  ;;  %v4153_v52 = vld [vmem:[#allocation9] ss:$0 sm:$0xff] }
 0x517   :  { %v766_v37 = vpop.f32.mrf.mxu2  ;;  %v861_v38 = vpop.xlane.xlu0 %860 }
 0x518   :  { %v4200_v39 = vpop.eup %4199  ;;  %v771_v40 = vmul.f32 0.35355338, %v766_v37  ;;  %v863_v41 = vsub.f32 %v855_v18, %v861_v38 }
 0x519   :  { %v709_v42 = vsel %vm620_vm4, %v4200_v39, 0.0 }
 0x51a   :  { %v866_v43 = vmul.f32 1.442695, %v863_v41  ;;  %710 = vadd.xlane.f32.xlu2 %v709_v42  ;;  %v773_v44 = vadd.f32 %v771_v40, %v5387_v24 }
 0x51c   :  { %4201 = vpow2.f32 %v866_v43  ;;  %v775_v45 = vsel %vm620_vm4, %v773_v44, -inf }
 0x51d   :  { %776 = vmax.xlane.f32.xlu0 %v775_v45  ;;  %4203 = vpow2.f32 %v864_v53  ;;  %v4013_v45 = vld [vmem:[%s5987_s3 + $0x8] sm:$0xff] }
 0x51e   :  { %937 = vmatpush.bf16.msra.mxu2 %v4013_v45 }
 0x51f   :  { %v768_v46 = vpop.f32.mrf.mxu2 }
 0x520   :  { %v772_v47 = vmul.f32 0.35355338, %v768_v46  ;;  %v4012_v46 = vld [vmem:[%s5987_s3] sm:$0xff] }
 0x522   :  { %v4202_v48 = vpop.eup %4201  ;;  %v774_v49 = vadd.f32 %v772_v47, %v5400_v30  ;;  %938 = vmatpush.bf16.msra.mxu2 %v4012_v46 }
 0x523   :  { %v871_v50 = vsel %vm620_vm4, %v4202_v48, 0.0  ;;  %v4204_v54 = vpop.eup %4203 }
 0x524   :  { %872 = vadd.xlane.f32.xlu1 %v871_v50  ;;  %v778_v51 = vsel %vm620_vm4, %v774_v49, -inf  ;;  %v868_v55 = vsel %vm620_vm4, %v4204_v54, 0.0 }
 0x525   :  { %779 = vmax.xlane.f32.xlu0 %v778_v51 }
 0x539   :  { %717 = vrot.lane.b32.xlu0 %v5374_v14, %s4978_s5 }
 0x53d   :  { %879 = vrot.lane.b32.xlu1 %v5374_v14, %s4979_s28 }
 0x563   :  { %869 = vadd.xlane.f32.xlu0 %v868_v55 }
 0x585   :  { %v708_v56 = vpop.xlane.xlu0 %707 }
 0x58d   :  { %v711_v1 = vpop.xlane.xlu2 %710 }
 0x590   :  { %v777_v57 = vpop.xlane.xlu0 %776 }
 0x591   :  { %v781_v58 = vsub.f32 %v773_v44, %v777_v57 }
 0x593   :  { %v783_v59 = vmul.f32 1.442695, %v781_v58 }
 0x595   :  { %4205 = vpow2.f32 %v783_v59 }
 0x597   :  { %v873_v5 = vpop.xlane.xlu1 %872 }
 0x598   :  { %v780_v60 = vpop.xlane.xlu0 %779 }
 0x599   :  { %v782_v61 = vsub.f32 %v774_v49, %v780_v60 }
 0x59b   :  { %v4206_v62 = vpop.eup %4205  ;;  %v785_v63 = vmul.f32 1.442695, %v782_v61  ;;  %v4982_v61 = vmov 32.0  }
 0x59c   :  { %v787_v0 = vsel %vm620_vm4, %v4206_v62, 0.0 }
 0x59d   :  { %4207 = vpow2.f32 %v785_v63  ;;  %788 = vadd.xlane.f32.xlu2 %v787_v0 }
 0x59e   :  { %4209 = vrcp.f32 %v711_v1 }
 0x59f   :  { %4211 = vrcp.f32 %v708_v56 }
 0x5a0   :  { %4213 = vrcp.f32 %v873_v5 }
 0x5a3   :  { %v4208_v2 = vpop.eup %4207 }
 0x5a4   :  { %v790_v3 = vsel %vm620_vm4, %v4208_v2, 0.0  ;;  %v4210_v4 = vpop.eup %4209 }
 0x5a5   :  { %791 = vadd.xlane.f32.xlu2 %v790_v3  ;;  %v4212_v9 = vpop.eup %4211  ;;  %v715_v10 = vmul.f32 %v4210_v4, %v4200_v39 }
 0x5a6   :  { %v714_v11 = vmul.f32 %v4212_v9, %v4198_v34  ;;  %v4214_v17 = vpop.eup %4213 }
 0x5a7   :  { %v877_v19 = vmul.f32 %v4214_v17, %v4202_v48 }
 0x5a8   :  { %v716_v13 = vpack.c.bf16 %v715_v10, %v714_v11 }
 0x5ab   :  { %v718_v12 = vpop.permute.xlu0 %717 }
 0x5ac   :  { %730 = vmatpush.bf16.msrb.mxu1 %v718_v12 }
 0x5af   :  { %v880_v15 = vpop.permute.xlu1 %879  ;;  %3722 = vmatmul.msk.bf16.vlgmr.msrb.gmra.mxu1 %vm620_vm4, %v716_v13 }
 0x5b0   :  { %892 = vmatpush.bf16.msra.mxu1 %v880_v15 }
 0x5bd   :  { %798 = vrot.lane.b32.xlu2 %v5374_v14, %s4980_s22 }
 0x5d6   :  { %v870_v16 = vpop.xlane.xlu0 %869 }
 0x5d7   :  { %4215 = vrcp.f32 %v870_v16 }
 0x5dd   :  { %v4216_v18 = vpop.eup %4215 }
 0x5de   :  { %v876_v22 = vmul.f32 %v4216_v18, %v4204_v54  ;;  %v4015_v18 = vld [vmem:[%s5988_s8 + $0x8] sm:$0xff] }
 0x5e0   :  { %v878_v25 = vpack.c.bf16 %v877_v19, %v876_v22 }
 0x5e2   :  { %3726 = vmatmul.msk.bf16.vlgmr.msra.gmra.mxu1 %vm620_vm4, %v878_v25  ;;  %v4014_v25 = vld [vmem:[%s5988_s8] sm:$0xff] }
 0x610   :  { %v789_v26 = vpop.xlane.xlu2 %788 }
 0x611   :  { %4217 = vrcp.f32 %v789_v26 }
 0x617   :  { %v4218_v29 = vpop.eup %4217 }
 0x618   :  { %v792_v27 = vpop.xlane.xlu2 %791  ;;  %v795_v32 = vmul.f32 %v4218_v29, %v4206_v62 }
 0x619   :  { %4219 = vrcp.f32 %v792_v27 }
 0x61a   :  { %4221 = vrcp.f32 %v4982_v61 }
 0x61f   :  { %v4220_v31 = vpop.eup %4219 }
 0x620   :  { %v796_v33 = vmul.f32 %v4220_v31, %v4208_v2  ;;  %v799_v34 = vpop.permute.xlu2 %798  ;;  %v4222_v62 = vpop.eup %4221 }
 0x621   :  { %811 = vmatpush.bf16.msrb.mxu3 %v799_v34  ;;  %v956_v63 = vmul.f32 32.0, %v4222_v62  ;;  %vm960_vm11 = vweird.f32 %v4222_v62 }
 0x622   :  { %v797_v14 = vpack.c.bf16 %v796_v33, %v795_v32 }
 0x623   :  { %v957_v0 = vsub.f32 1.0, %v956_v63 }
 0x624   :  { %3724 = vmatmul.msk.bf16.vlgmr.msrb.gmra.mxu3 %vm620_vm4, %v797_v14 }
 0x625   :  { %v958_v1 = vmul.f32 %v4222_v62, %v957_v0  ;;  %1040 = vmatpush.bf16.msra.mxu3 %v4015_v18 }
 0x627   :  { %v959_v2 = vadd.f32 %v4222_v62, %v958_v1 }
 0x629   :  { %v5469_v3 = vsel %vm960_vm11, %v4222_v62, %v959_v2  ;;  %1041 = vmatpush.bf16.msra.mxu3 %v4014_v25  ;;  %vm1087_vm11 = vcmask 523264   ;;  %v4157_v2 = vld [vmem:[#allocation15] ss:$0 sm:$0xff] }
 0x62c   :  { %v732_v35 = vpop.f32.mrf.mxu1 }
 0x62d   :  { %739 = vrot.lane.b32.xlu2 %v732_v35, %s4949_s15 }
 0x634   :  { %v734_v36 = vpop.f32.mrf.mxu1 }
 0x635   :  { %741 = vrot.lane.b32.xlu1 %v734_v36, %s4949_s15 }
 0x65f   :  { %v894_v37 = vpop.f32.mrf.mxu1 }
 0x660   :  { %901 = vrot.lane.b32.xlu1 %v894_v37, %s4981_s6 }
 0x667   :  { %v896_v41 = vpop.f32.mrf.mxu1 }
 0x687   :  { %v740_v38 = vpop.permute.xlu2 %739 }
 0x688   :  { %746 = vst.msk [vmem:[#allocation2] sm:$0xff] %vm745_vm8, %v740_v38 }
 0x6a7   :  { %v742_v39 = vpop.permute.xlu1 %741  ;;  %v813_v40 = vpop.f32.mrf.mxu3 }
 0x6a8   :  { %747 = vst.msk [vmem:[#allocation2 + $0x8] sm:$0xff] %vm745_vm8, %v742_v39  ;;  %820 = vrot.lane.b32.xlu2 %v813_v40, %s4951_s2 }
 0x6af   :  { %v815_v42 = vpop.f32.mrf.mxu3 }
 0x6b0   :  { %903 = vrot.lane.b32.xlu2 %v896_v41, %s4981_s6  ;;  %822 = vrot.lane.b32.xlu0 %v815_v42, %s4951_s2 }
 0x6d2   :  { %v902_v44 = vpop.permute.xlu1 %901 }
 0x702   :  { %v821_v43 = vpop.permute.xlu2 %820 }
 0x703   :  { %827 = vst.msk [vmem:[#allocation2] sm:$0xff] %vm826_vm9, %v821_v43  ;;  %v4154_v43 = vld [vmem:[#allocation11] ss:$0 sm:$0xff] }
 0x704   :  { %908 = vst.msk [vmem:[#allocation2] sm:$0xff] %vm907_vm10, %v902_v44 }
 0x70a   :  { %v904_v48 = vpop.permute.xlu2 %903 }
 0x70b   :  { %v910_v49 = vld [vmem:[#allocation2] sm:$0xff] }
 0x722   :  { %v823_v47 = vpop.permute.xlu0 %822 }
 0x723   :  { %828 = vst.msk [vmem:[#allocation2 + $0x8] sm:$0xff] %vm826_vm9, %v823_v47  ;;  %v4155_v47 = vld [vmem:[#allocation12] ss:$0 sm:$0xff] }
 0x724   :  { %909 = vst.msk [vmem:[#allocation2 + $0x8] sm:$0xff] %vm907_vm10, %v904_v48 }
 0x72b   :  { %v911_v50 = vld [vmem:[#allocation2 + $0x8] sm:$0xff] }
 0x72c   :  { %v912_v51 = vpack.c.bf16 %v911_v50, %v910_v49 }
 0x72e   :  { %3735 = vmatmul.msk.bf16.vlgmr.msra.gmra.mxu2 %vm529_vm0, %v912_v51 }
 0x7b1   :  { %v940_v53 = vpop.f32.mrf.mxu2 }
 0x7b2   :  { %v941_v54 = vadd.f32 %v4153_v52, %v940_v53 }
 0x7b4   :  { %v945_v55 = vadd.f32 %v941_v54, %v5363_v6  ;;  %v4019_v54 = vld [vmem:[%s5989_s30 + $0x18] sm:$0xff] }
 0x7b5   :  { %1095 = vmatpush.bf16.msra.mxu0 %v4019_v54 }
 0x7b6   :  { %v949_v56 = vsel %vm529_vm0, %v945_v55, 0.0 }
 0x7b7   :  { %950 = vadd.xlane.f32.xlu1 %v949_v56  ;;  %v4017_v56 = vld [vmem:[%s5989_s30 + $0x8] sm:$0xff] }
 0x7b9   :  { %v942_v57 = vpop.f32.mrf.mxu2 }
 0x7ba   :  { %v943_v58 = vadd.f32 %v4153_v52, %v942_v57  ;;  %v4016_v57 = vld [vmem:[%s5989_s30] sm:$0xff] }
 0x7bc   :  { %v946_v59 = vadd.f32 %v943_v58, %v5365_v7 }
 0x7be   :  { %v952_v60 = vsel %vm529_vm0, %v946_v59, 0.0 }
 0x7bf   :  { %953 = vadd.xlane.f32.xlu2 %v952_v60 }
 0x82a   :  { %v951_v4 = vpop.xlane.xlu1 %950 }
 0x82b   :  { %v962_v5 = vmul.f32 %v5469_v3, %v951_v4 }
 0x82d   :  { %v964_v9 = vsub.f32 %v945_v55, %v962_v5  ;;  %v4018_v55 = vld [vmem:[%s5989_s30 + $0x10] sm:$0xff] }
 0x82e   :  { %1096 = vmatpush.bf16.msra.mxu0 %v4018_v55 }
 0x82f   :  { %v966_v10 = vmul.f32 %v964_v9, %v964_v9 }
 0x831   :  { %v968_v11 = vsel %vm529_vm0, %v966_v10, 0.0 }
 0x832   :  { %v954_v12 = vpop.xlane.xlu2 %953  ;;  %969 = vadd.xlane.f32.xlu0 %v968_v11  ;;  %1097 = vmatpush.bf16.msra.mxu0 %v4017_v56  ;;  %v4159_v56 = vld [vmem:[#allocation18] ss:$0 sm:$0xff] }
 0x833   :  { %v963_v13 = vmul.f32 %v5469_v3, %v954_v12 }
 0x835   :  { %v965_v15 = vsub.f32 %v946_v59, %v963_v13  ;;  %v4156_v59 = vld [vmem:[#allocation14] ss:$0 sm:$0xff] }
 0x836   :  { %1098 = vmatpush.bf16.msra.mxu0 %v4016_v57 }
 0x837   :  { %v967_v16 = vmul.f32 %v965_v15, %v965_v15 }
 0x839   :  { %v971_v17 = vsel %vm529_vm0, %v967_v16, 0.0 }
 0x83a   :  { %972 = vadd.xlane.f32.xlu2 %v971_v17 }
 0x8a5   :  { %v970_v19 = vpop.xlane.xlu0 %969 }
 0x8a6   :  { %v974_v22 = vmul.f32 %v970_v19, %v5469_v3 }
 0x8a8   :  { %v976_v26 = vadd.f32 1e-05, %v974_v22 }
 0x8aa   :  { %4223 = vrsqrt.f32 %v976_v26  ;;  %vm984_vm13 = vweird.f32 %v976_v26 }
 0x8ad   :  { %v973_v27 = vpop.xlane.xlu2 %972 }
 0x8ae   :  { %v975_v29 = vmul.f32 %v973_v27, %v5469_v3 }
 0x8b0   :  { %v4224_v31 = vpop.eup %4223  ;;  %v977_v32 = vadd.f32 1e-05, %v975_v29 }
 0x8b1   :  { %v979_v33 = vmul.f32 %v4224_v31, %v976_v26  ;;  %vm985_vm12 = vweird.f32 %v4224_v31 }
 0x8b2   :  { %4225 = vrsqrt.f32 %v977_v32  ;;  %vm986_vm14 = vmor %vm984_vm13, %vm985_vm12  ;;  %vm994_vm5 = vweird.f32 %v977_v32 }
 0x8b3   :  { %v980_v34 = vmul.f32 %v4224_v31, %v979_v33 }
 0x8b5   :  { %v981_v14 = vmul.f32 0.5, %v980_v34 }
 0x8b7   :  { %v982_v35 = vsub.f32 1.5, %v981_v14  ;;  %v4020_v14 = vld [vmem:[%s5984_s20 + $0x10] sm:$0xff] }
 0x8b8   :  { %v4226_v36 = vpop.eup %4225 }
 0x8b9   :  { %v983_v37 = vmul.f32 %v4224_v31, %v982_v35  ;;  %v989_v38 = vmul.f32 %v4226_v36, %v977_v32  ;;  %vm995_vm15 = vweird.f32 %v4226_v36  ;;  %v4021_v32 = vld [vmem:[%s5984_s20 + $0x18] sm:$0xff] }
 0x8ba   :  { %vm996_vm6 = vmor %vm994_vm5, %vm995_vm15  ;;  %1195 = vmatpush.bf16.msrb.mxu1 %v4021_v32 }
 0x8bb   :  { %v990_v39 = vmul.f32 %v4226_v36, %v989_v38  ;;  %v987_v40 = vsel %vm986_vm14, %v4224_v31, %v983_v37 }
 0x8bc   :  { %v998_v44 = vmul.f32 %v987_v40, %v964_v9 }
 0x8bd   :  { %v991_v41 = vmul.f32 0.5, %v990_v39 }
 0x8be   :  { %v1003_v48 = vmul.f32 %v4154_v43, %v998_v44  ;;  %1196 = vmatpush.bf16.msrb.mxu1 %v4020_v14 }
 0x8bf   :  { %v992_v42 = vsub.f32 1.5, %v991_v41 }
 0x8c0   :  { %v1008_v51 = vadd.f32 %v4155_v47, %v1003_v48 }
 0x8c1   :  { %v993_v45 = vmul.f32 %v4226_v36, %v992_v42 }
 0x8c3   :  { %v997_v46 = vsel %vm996_vm6, %v4226_v36, %v993_v45 }
 0x8c4   :  { %v999_v49 = vmul.f32 %v997_v46, %v965_v15 }
 0x8c6   :  { %v1004_v50 = vmul.f32 %v4154_v43, %v999_v49 }
 0x8c8   :  { %v1009_v52 = vadd.f32 %v4155_v47, %v1004_v50 }
 0x8ca   :  { %v1014_v53 = vpack.c.bf16 %v1009_v52, %v1008_v51 }
 0x8cc   :  { %3744 = vmatmul.msk.bf16.vlgmr.msra.gmra.mxu3 %vm529_vm0, %v1014_v53 }
 0x94f   :  { %v1043_v58 = vpop.f32.mrf.mxu3 }
 0x950   :  { %v1044_v60 = vadd.f32 %v4156_v59, %v1043_v58 }
 0x952   :  { %v1048_v63 = vmax.f32 %v1044_v60, 0.0 }
 0x957   :  { %v1045_v61 = vpop.f32.mrf.mxu3 }
 0x958   :  { %v1046_v62 = vadd.f32 %v4156_v59, %v1045_v61 }
 0x95a   :  { %v1049_v0 = vmax.f32 %v1046_v62, 0.0 }
 0x95c   :  { %v1058_v1 = vpack.c.bf16 %v1049_v0, %v1048_v63  ;;  %v4160_v63 = vld [vmem:[#allocation8 + $0x1] ss:$0 sm:$0xff] }
 0x95e   :  { %3761 = vmatmul.msk.bf16.vlgmr.msra.gmra.mxu0 %vm1087_vm11, %v1058_v1 }
 0x9db   :  { %v1100_v4 = vpop.f32.mrf.mxu0 }
 0x9dc   :  { %v1101_v5 = vadd.f32 %v4157_v2, %v1100_v4 }
 0x9de   :  { %v1105_v9 = vadd.f32 %v1101_v5, %v1008_v51  ;;  %v4158_v51 = vld [vmem:[#allocation17] ss:$0 sm:$0xff] }
 0x9e0   :  { %v1109_v10 = vsel %vm529_vm0, %v1105_v9, 0.0 }
 0x9e1   :  { %1110 = vadd.xlane.f32.xlu1 %v1109_v10 }
 0x9e3   :  { %v1102_v11 = vpop.f32.mrf.mxu0 }
 0x9e4   :  { %v1103_v12 = vadd.f32 %v4157_v2, %v1102_v11 }
 0x9e6   :  { %v1106_v13 = vadd.f32 %v1103_v12, %v1009_v52 }
 0x9e8   :  { %v1112_v15 = vsel %vm529_vm0, %v1106_v13, 0.0 }
 0x9e9   :  { %1113 = vadd.xlane.f32.xlu2 %v1112_v15 }
 0xa54   :  { %v1111_v16 = vpop.xlane.xlu1 %1110 }
 0xa55   :  { %v1115_v17 = vmul.f32 %v1111_v16, %v5469_v3 }
 0xa57   :  { %v1117_v18 = vsub.f32 %v1105_v9, %v1115_v17 }
 0xa59   :  { %v1119_v19 = vmul.f32 %v1117_v18, %v1117_v18 }
 0xa5b   :  { %v1121_v22 = vsel %vm529_vm0, %v1119_v19, 0.0 }
 0xa5c   :  { %v1114_v25 = vpop.xlane.xlu2 %1113  ;;  %1122 = vadd.xlane.f32.xlu1 %v1121_v22 }
 0xa5d   :  { %v1116_v26 = vmul.f32 %v1114_v25, %v5469_v3 }
 0xa5f   :  { %v1118_v27 = vsub.f32 %v1106_v13, %v1116_v26 }
 0xa61   :  { %v1120_v29 = vmul.f32 %v1118_v27, %v1118_v27 }
 0xa63   :  { %v1124_v31 = vsel %vm529_vm0, %v1120_v29, 0.0 }
 0xa64   :  { %1125 = vadd.xlane.f32.xlu0 %v1124_v31 }
 0xacf   :  { %v1123_v33 = vpop.xlane.xlu1 %1122 }
 0xad0   :  { %v1127_v34 = vmul.f32 %v1123_v33, %v5469_v3 }
 0xad2   :  { %v1129_v35 = vadd.f32 1e-05, %v1127_v34 }
 0xad4   :  { %4227 = vrsqrt.f32 %v1129_v35  ;;  %vm1137_vm13 = vweird.f32 %v1129_v35 }
 0xad7   :  { %v1126_v36 = vpop.xlane.xlu0 %1125 }
 0xad8   :  { %v1128_v37 = vmul.f32 %v1126_v36, %v5469_v3 }
 0xada   :  { %v4228_v38 = vpop.eup %4227  ;;  %v1130_v39 = vadd.f32 1e-05, %v1128_v37 }
 0xadb   :  { %v1132_v40 = vmul.f32 %v4228_v38, %v1129_v35  ;;  %vm1138_vm12 = vweird.f32 %v4228_v38 }
 0xadc   :  { %4229 = vrsqrt.f32 %v1130_v39  ;;  %vm1139_vm14 = vmor %vm1137_vm13, %vm1138_vm12  ;;  %vm1147_vm5 = vweird.f32 %v1130_v39 }
 0xadd   :  { %v1133_v41 = vmul.f32 %v4228_v38, %v1132_v40 }
 0xadf   :  { %v1134_v42 = vmul.f32 0.5, %v1133_v41 }
 0xae1   :  { %v1135_v43 = vsub.f32 1.5, %v1134_v42 }
 0xae2   :  { %v4230_v44 = vpop.eup %4229 }
 0xae3   :  { %v1136_v45 = vmul.f32 %v4228_v38, %v1135_v43  ;;  %v1142_v46 = vmul.f32 %v4230_v44, %v1130_v39  ;;  %vm1148_vm15 = vweird.f32 %v4230_v44 }
 0xae4   :  { %vm1149_vm6 = vmor %vm1147_vm5, %vm1148_vm15 }
 0xae5   :  { %v1143_v47 = vmul.f32 %v4230_v44, %v1142_v46  ;;  %v1140_v48 = vsel %vm1139_vm14, %v4228_v38, %v1136_v45 }
 0xae6   :  { %v1151_v52 = vmul.f32 %v1140_v48, %v1117_v18 }
 0xae7   :  { %v1144_v49 = vmul.f32 0.5, %v1143_v47 }
 0xae8   :  { %v1156_v55 = vmul.f32 %v4158_v51, %v1151_v52 }
 0xae9   :  { %v1145_v50 = vsub.f32 1.5, %v1144_v49 }
 0xaea   :  { %v5497_v60 = vadd.f32 %v4159_v56, %v1156_v55 }
 0xaeb   :  { %v1146_v53 = vmul.f32 %v4230_v44, %v1145_v50 }
 0xaed   :  { %v1150_v54 = vsel %vm1149_vm6, %v4230_v44, %v1146_v53 }
 0xaee   :  { %v1152_v57 = vmul.f32 %v1150_v54, %v1118_v27 }
 0xaf0   :  { %v1157_v58 = vmul.f32 %v4158_v51, %v1152_v57 }
 0xaf2   :  { %v5495_v59 = vadd.f32 %v4159_v56, %v1157_v58 }
 0xaf4   :  { %v1168_v61 = vpack.c.bf16 %v5495_v59, %v5497_v60 }
 0xaf6   :  { %3774 = vmatmul.msk.bf16.vlgmr.msrb.gmra.mxu1 %vm529_vm0, %v1168_v61 }
 0xb73   :  { %v1198_v62 = vpop.f32.mrf.mxu1 }
 0xb74   :  { %v1199_v1 = vadd.f32 %v4160_v63, %v1198_v62 }
 0xb7b   :  { %v1200_v0 = vpop.f32.mrf.mxu1 }
 0xb7c   :  { %v1201_v2 = vadd.f32 %v4160_v63, %v1200_v0 }
 0xb7e   :  { %v4137_v4 = vpack.i.bf16 %v1201_v2, %v1199_v1  ;;  %v5502_v5 = vpack.c.bf16 %v1201_v2, %v1199_v1 }
 0xb80   :  { %4138 = vrot.lane.b32.xlu2 %v4137_v4, %s4973_s26  ;;  %1403 = vrot.lane.b32.xlu0 %v5502_v5, %s4976_s14 }
 0xb81   :  { %1323 = vrot.lane.b32.xlu1 %v5502_v5, %s4975_s19 }
 0xb88   :  { %1483 = vrot.lane.b32.xlu2 %v5502_v5, %s4977_s16 }
 0xb90   :  { %1300 = vrot.lane.b32.xlu2 %v5502_v5, %s4960_s10 }
 0xbda   :  { %v4139_v9 = vpop.permute.xlu2 %4138 }
 0xbdb   :  { %v4140_v10 = vunpack.i.l.bf16 %v4139_v9  ;;  %v4141_v12 = vunpack.i.h.bf16 %v4139_v9 }
 0xbdd   :  { %1218 = vxpose.xlu0.b32.start [1/2] (short) (narrow) %v4140_v10, 32 }
 0xbe2   :  { %v1484_v11 = vpop.permute.xlu2 %1483 }
 0xbe5   :  { %1219 = vxpose.xlu0.b32.end [2/2] (short) (narrow) %v4141_v12, 32 }
 0xbea   :  { %v1301_v13 = vpop.permute.xlu2 %1300 }
 0xbeb   :  { %1313 = vmatpush.bf16.msrb.mxu3 %v1301_v13 }
 0xbf2   :  { %v1404_v15 = vpop.permute.xlu0 %1403 }
 0xbf3   :  { %v1324_v26 = vpop.permute.xlu1 %1323 }
 0xc81   :  { %v1234_v16 = vpop.trf.xlu0 }
 0xc82   :  { %v1251_v17 = vpack.c.bf16 %v1234_v16, %v1234_v16 }
 0xc84   :  { %v1256_v18 = vsel %vm598_vm1, %v1251_v17, 0 }
 0xc85   :  { %1265 = vmatpush.bf16.msrb.mxu2 %v1256_v18 }
 0xc88   :  { %3779 = vmatmul.msk.bf16.vlgmr.msrb.gmra.mxu2 %vm594_vm2, %v5502_v5 }
 0xc89   :  { %v1235_v19 = vpop.trf.xlu0 }
 0xc8a   :  { %v1322_v22 = vpack.c.bf16 %v1235_v19, %v1235_v19 }
 0xc8c   :  { %v1329_v25 = vsel %vm598_vm1, %v1322_v22, 0 }
 0xc8d   :  { %1338 = vmatpush.bf16.msrb.mxu0 %v1329_v25 }
 0xc90   :  { %3781 = vmatmul.msk.bf16.vlgmr.msrb.gmra.mxu0 %vm594_vm2, %v1324_v26 }
 0xc91   :  { %v1236_v27 = vpop.trf.xlu0 }
 0xc92   :  { %v1402_v29 = vpack.c.bf16 %v1236_v27, %v1236_v27 }
 0xc94   :  { %v1409_v31 = vsel %vm598_vm1, %v1402_v29, 0 }
 0xc95   :  { %1418 = vmatpush.bf16.msra.mxu2 %v1409_v31 }
 0xc98   :  { %3783 = vmatmul.msk.bf16.vlgmr.msra.gmra.mxu2 %vm594_vm2, %v1404_v15 }
 0xc99   :  { %v1237_v32 = vpop.trf.xlu0 }
 0xc9a   :  { %v1482_v33 = vpack.c.bf16 %v1237_v32, %v1237_v32 }
 0xc9c   :  { %v1489_v34 = vsel %vm598_vm1, %v1482_v33, 0 }
 0xc9d   :  { %1498 = vmatpush.bf16.msra.mxu0 %v1489_v34 }
 0xca0   :  { %3785 = vmatmul.msk.bf16.vlgmr.msra.gmra.mxu0 %vm594_vm2, %v1484_v11 }
 0xd0b   :  { %v1267_v14 = vpop.f32.mrf.mxu2 }
 0xd0c   :  { %v1272_v35 = vmul.f32 0.35355338, %v1267_v14 }
 0xd0d   :  { %v1340_v36 = vpop.f32.mrf.mxu0 }
 0xd0e   :  { %v1345_v37 = vmul.f32 0.35355338, %v1340_v36  ;;  %v1274_v38 = vadd.f32 %v1272_v35, %v5387_v24 }
 0xd10   :  { %v1276_v39 = vsel %vm620_vm4, %v1274_v38, -inf  ;;  %v1347_v40 = vadd.f32 %v1345_v37, %v5387_v24 }
 0xd11   :  { %1277 = vmax.xlane.f32.xlu1 %v1276_v39 }
 0xd12   :  { %v1349_v41 = vsel %vm620_vm4, %v1347_v40, -inf }
 0xd13   :  { %v1269_v42 = vpop.f32.mrf.mxu2  ;;  %1350 = vmax.xlane.f32.xlu0 %v1349_v41 }
 0xd14   :  { %v1273_v43 = vmul.f32 0.35355338, %v1269_v42 }
 0xd15   :  { %v1342_v44 = vpop.f32.mrf.mxu0 }
 0xd16   :  { %v1275_v45 = vadd.f32 %v1273_v43, %v5400_v30  ;;  %v1346_v55 = vmul.f32 0.35355338, %v1342_v44 }
 0xd18   :  { %v1279_v46 = vsel %vm620_vm4, %v1275_v45, -inf  ;;  %v1348_v56 = vadd.f32 %v1346_v55, %v5400_v30 }
 0xd19   :  { %1280 = vmax.xlane.f32.xlu2 %v1279_v46 }
 0xd1a   :  { %v1352_v61 = vsel %vm620_vm4, %v1348_v56, -inf }
 0xd1b   :  { %v1420_v47 = vpop.f32.mrf.mxu2 }
 0xd1c   :  { %v1425_v48 = vmul.f32 0.35355338, %v1420_v47 }
 0xd1d   :  { %v1500_v49 = vpop.f32.mrf.mxu0 }
 0xd1e   :  { %v1427_v50 = vadd.f32 %v1425_v48, %v5387_v24  ;;  %v1505_v51 = vmul.f32 0.35355338, %v1500_v49 }
 0xd20   :  { %v1429_v52 = vsel %vm620_vm4, %v1427_v50, -inf  ;;  %v1507_v53 = vadd.f32 %v1505_v51, %v5387_v24 }
 0xd21   :  { %1430 = vmax.xlane.f32.xlu2 %v1429_v52 }
 0xd22   :  { %v1509_v54 = vsel %vm620_vm4, %v1507_v53, -inf }
 0xd23   :  { %v1422_v57 = vpop.f32.mrf.mxu2 }
 0xd24   :  { %v1426_v58 = vmul.f32 0.35355338, %v1422_v57 }
 0xd25   :  { %v1502_v63 = vpop.f32.mrf.mxu0 }
 0xd26   :  { %v1428_v62 = vadd.f32 %v1426_v58, %v5400_v30  ;;  %v1506_v0 = vmul.f32 0.35355338, %v1502_v63 }
 0xd28   :  { %v1432_v1 = vsel %vm620_vm4, %v1428_v62, -inf  ;;  %v1508_v2 = vadd.f32 %v1506_v0, %v5400_v30 }
 0xd29   :  { %1510 = vmax.xlane.f32.xlu2 %v1509_v54 }
 0xd2a   :  { %1372 = vrot.lane.b32.xlu1 %v5502_v5, %s4978_s5  ;;  %v1512_v4 = vsel %vm620_vm4, %v1508_v2, -inf }
 0xd54   :  { %1353 = vmax.xlane.f32.xlu1 %v1352_v61 }
 0xd5c   :  { %1433 = vmax.xlane.f32.xlu1 %v1432_v1 }
 0xd64   :  { %1513 = vmax.xlane.f32.xlu1 %v1512_v4 }
 0xd84   :  { %v1278_v9 = vpop.xlane.xlu1 %1277 }
 0xd85   :  { %v1282_v10 = vsub.f32 %v1274_v38, %v1278_v9 }
 0xd86   :  { %v1351_v11 = vpop.xlane.xlu0 %1350 }
 0xd87   :  { %v1284_v12 = vmul.f32 1.442695, %v1282_v10  ;;  %v1355_v13 = vsub.f32 %v1347_v40, %v1351_v11 }
 0xd89   :  { %4231 = vpow2.f32 %v1284_v12  ;;  %v1357_v15 = vmul.f32 1.442695, %v1355_v13 }
 0xd8b   :  { %4233 = vpow2.f32 %v1357_v15 }
 0xd8c   :  { %v1281_v16 = vpop.xlane.xlu2 %1280 }
 0xd8d   :  { %v1283_v17 = vsub.f32 %v1275_v45, %v1281_v16 }
 0xd8f   :  { %v4232_v18 = vpop.eup %4231  ;;  %v1286_v19 = vmul.f32 1.442695, %v1283_v17 }
 0xd90   :  { %v1288_v22 = vsel %vm620_vm4, %v4232_v18, 0.0 }
 0xd91   :  { %4235 = vpow2.f32 %v1286_v19  ;;  %1289 = vadd.xlane.f32.xlu2 %v1288_v22  ;;  %v5541_v26 = vpop.eup %4233 }
 0xd92   :  { %v1361_v33 = vsel %vm620_vm4, %v5541_v26, 0.0 }
 0xd94   :  { %v1431_v25 = vpop.xlane.xlu2 %1430 }
 0xd95   :  { %v1435_v27 = vsub.f32 %v1427_v50, %v1431_v25 }
 0xd97   :  { %v4236_v29 = vpop.eup %4235  ;;  %v1437_v31 = vmul.f32 1.442695, %v1435_v27 }
 0xd98   :  { %v1291_v32 = vsel %vm620_vm4, %v4236_v29, 0.0 }
 0xd99   :  { %4237 = vpow2.f32 %v1437_v31  ;;  %1292 = vadd.xlane.f32.xlu1 %v1291_v32  ;;  %1362 = vadd.xlane.f32.xlu2 %v1361_v33 }
 0xd9c   :  { %v1511_v34 = vpop.xlane.xlu2 %1510  ;;  %v1373_v14 = vpop.permute.xlu1 %1372 }
 0xd9d   :  { %v1515_v35 = vsub.f32 %v1507_v53, %v1511_v34  ;;  %1385 = vmatpush.bf16.msra.mxu1 %v1373_v14 }
 0xd9f   :  { %v4238_v36 = vpop.eup %4237  ;;  %v1517_v37 = vmul.f32 1.442695, %v1515_v35 }
 0xda0   :  { %v1441_v38 = vsel %vm620_vm4, %v4238_v36, 0.0 }
 0xda1   :  { %4239 = vpow2.f32 %v1517_v37  ;;  %1442 = vadd.xlane.f32.xlu2 %v1441_v38 }
 0xda7   :  { %v5547_v39 = vpop.eup %4239 }
 0xda8   :  { %v1521_v40 = vsel %vm620_vm4, %v5547_v39, 0.0 }
 0xda9   :  { %1522 = vadd.xlane.f32.xlu2 %v1521_v40 }
 0xdc1   :  { %1452 = vrot.lane.b32.xlu2 %v5502_v5, %s4980_s22 }
 0xdc7   :  { %v1354_v41 = vpop.xlane.xlu1 %1353 }
 0xdc8   :  { %v1356_v42 = vsub.f32 %v1348_v56, %v1354_v41 }
 0xdca   :  { %v1359_v43 = vmul.f32 1.442695, %v1356_v42 }
 0xdcc   :  { %4241 = vpow2.f32 %v1359_v43 }
 0xdcf   :  { %v1434_v44 = vpop.xlane.xlu1 %1433 }
 0xdd0   :  { %v1436_v45 = vsub.f32 %v1428_v62, %v1434_v44 }
 0xdd2   :  { %v4242_v46 = vpop.eup %4241  ;;  %v1439_v47 = vmul.f32 1.442695, %v1436_v45  ;;  %v4023_v45 = vld [vmem:[%s5987_s3 + $0x18] sm:$0xff] }
 0xdd3   :  { %v1364_v48 = vsel %vm620_vm4, %v4242_v46, 0.0  ;;  %1589 = vmatpush.bf16.msrb.mxu2 %v4023_v45 }
 0xdd4   :  { %4243 = vpow2.f32 %v1439_v47  ;;  %1365 = vadd.xlane.f32.xlu1 %v1364_v48 }
 0xdd7   :  { %v1514_v49 = vpop.xlane.xlu1 %1513 }
 0xdd8   :  { %v1516_v50 = vsub.f32 %v1508_v2, %v1514_v49 }
 0xdda   :  { %v4244_v51 = vpop.eup %4243  ;;  %v1519_v52 = vmul.f32 1.442695, %v1516_v50 }
 0xddb   :  { %v1444_v53 = vsel %vm620_vm4, %v4244_v51, 0.0 }
 0xddc   :  { %4245 = vpow2.f32 %v1519_v52  ;;  %1445 = vadd.xlane.f32.xlu1 %v1444_v53  ;;  %v4161_v53 = vld [vmem:[#allocation9 + $0x1] ss:$0 sm:$0xff] }
 0xde2   :  { %v4246_v54 = vpop.eup %4245 }
 0xde3   :  { %v1524_v55 = vsel %vm620_vm4, %v4246_v54, 0.0 }
 0xde4   :  { %1525 = vadd.xlane.f32.xlu1 %v1524_v55 }
 0xdfd   :  { %1532 = vrot.lane.b32.xlu1 %v5502_v5, %s4979_s28 }
 0xe04   :  { %v1290_v56 = vpop.xlane.xlu2 %1289 }
 0xe05   :  { %4247 = vrcp.f32 %v1290_v56 }
 0xe0b   :  { %v4248_v61 = vpop.eup %4247 }
 0xe0c   :  { %v1363_v57 = vpop.xlane.xlu2 %1362  ;;  %v1293_v58 = vpop.xlane.xlu1 %1292  ;;  %v1296_v0 = vmul.f32 %v4248_v61, %v4232_v18 }
 0xe0d   :  { %4249 = vrcp.f32 %v1293_v58 }
 0xe0e   :  { %4251 = vrcp.f32 %v1363_v57 }
 0xe13   :  { %v4250_v62 = vpop.eup %4249 }
 0xe14   :  { %v1443_v63 = vpop.xlane.xlu2 %1442  ;;  %v1297_v1 = vmul.f32 %v4250_v62, %v4236_v29  ;;  %v4252_v5 = vpop.eup %4251 }
 0xe15   :  { %v1369_v12 = vmul.f32 %v4252_v5, %v5541_v26 }
 0xe16   :  { %v1298_v2 = vpack.c.bf16 %v1297_v1, %v1296_v0 }
 0xe18   :  { %3780 = vmatmul.msk.bf16.vlgmr.msrb.gmra.mxu3 %vm620_vm4, %v1298_v2 }
 0xe1c   :  { %v1523_v4 = vpop.xlane.xlu2 %1522 }
 0xe24   :  { %v1453_v9 = vpop.permute.xlu2 %1452 }
 0xe25   :  { %1465 = vmatpush.bf16.msra.mxu3 %v1453_v9 }
 0xe47   :  { %v1366_v10 = vpop.xlane.xlu1 %1365 }
 0xe48   :  { %4253 = vrcp.f32 %v1366_v10 }
 0xe49   :  { %4255 = vrcp.f32 %v1443_v63 }
 0xe4e   :  { %v4254_v11 = vpop.eup %4253 }
 0xe4f   :  { %v1370_v13 = vmul.f32 %v4254_v11, %v4242_v46  ;;  %v1446_v15 = vpop.xlane.xlu1 %1445  ;;  %v4256_v17 = vpop.eup %4255  ;;  %v4022_v46 = vld [vmem:[%s5987_s3 + $0x10] sm:$0xff] }
 0xe50   :  { %4257 = vrcp.f32 %v1446_v15  ;;  %v1449_v19 = vmul.f32 %v4256_v17, %v4238_v36  ;;  %1590 = vmatpush.bf16.msrb.mxu2 %v4022_v46  ;;  %v4024_v17 = vld [vmem:[%s5988_s8 + $0x10] sm:$0xff] }
 0xe51   :  { %v1371_v16 = vpack.c.bf16 %v1370_v13, %v1369_v12 }
 0xe53   :  { %3782 = vmatmul.msk.bf16.vlgmr.msra.gmra.mxu1 %vm620_vm4, %v1371_v16 }
 0xe56   :  { %v4258_v18 = vpop.eup %4257 }
 0xe57   :  { %v1450_v22 = vmul.f32 %v4258_v18, %v4244_v51  ;;  %v1526_v27 = vpop.xlane.xlu1 %1525 }
 0xe58   :  { %4259 = vrcp.f32 %v1526_v27 }
 0xe59   :  { %v1451_v25 = vpack.c.bf16 %v1450_v22, %v1449_v19  ;;  %4261 = vrcp.f32 %v1523_v4 }
 0xe5b   :  { %3784 = vmatmul.msk.bf16.vlgmr.msra.gmra.mxu3 %vm620_vm4, %v1451_v25 }
 0xe5e   :  { %v4260_v29 = vpop.eup %4259 }
 0xe5f   :  { %v4262_v31 = vpop.eup %4261  ;;  %v1530_v32 = vmul.f32 %v4260_v29, %v4246_v54 }
 0xe60   :  { %v1529_v26 = vmul.f32 %v4262_v31, %v5547_v39 }
 0xe62   :  { %v1531_v34 = vpack.c.bf16 %v1530_v32, %v1529_v26 }
 0xe6f   :  { %v1533_v33 = vpop.permute.xlu1 %1532 }
 0xe70   :  { %1545 = vmatpush.bf16.msrb.mxu1 %v1533_v33 }
 0xe73   :  { %3786 = vmatmul.msk.bf16.vlgmr.msrb.gmra.mxu1 %vm620_vm4, %v1531_v34 }
 0xe9b   :  { %v1315_v14 = vpop.f32.mrf.mxu3 }
 0xe9c   :  { %1320 = vst.msk [vmem:[#allocation2] sm:$0xff] %vm594_vm2, %v1315_v14 }
 0xea3   :  { %v1317_v35 = vpop.f32.mrf.mxu3 }
 0xea4   :  { %1321 = vst.msk [vmem:[#allocation2 + $0x8] sm:$0xff] %vm594_vm2, %v1317_v35 }
 0xed0   :  { %v1387_v36 = vpop.f32.mrf.mxu1 }
 0xed1   :  { %1394 = vrot.lane.b32.xlu0 %v1387_v36, %s4949_s15 }
 0xed8   :  { %v1389_v37 = vpop.f32.mrf.mxu1 }
 0xed9   :  { %1396 = vrot.lane.b32.xlu2 %v1389_v37, %s4949_s15 }
 0xede   :  { %v1467_v38 = vpop.f32.mrf.mxu3 }
 0xedf   :  { %1474 = vrot.lane.b32.xlu1 %v1467_v38, %s4951_s2  ;;  %v4162_v38 = vld [vmem:[#allocation11 + $0x1] ss:$0 sm:$0xff] }
 0xee6   :  { %v1469_v39 = vpop.f32.mrf.mxu3 }
 0xee7   :  { %1476 = vrot.lane.b32.xlu2 %v1469_v39, %s4951_s2 }
 0xef0   :  { %v1547_v40 = vpop.f32.mrf.mxu1 }
 0xef1   :  { %1554 = vrot.lane.b32.xlu0 %v1547_v40, %s4981_s6 }
 0xef8   :  { %v1549_v41 = vpop.f32.mrf.mxu1 }
 0xef9   :  { %1556 = vrot.lane.b32.xlu1 %v1549_v41, %s4981_s6 }
 0xf33   :  { %v1397_v42 = vpop.permute.xlu2 %1396 }
 0xf34   :  { %1401 = vst.msk [vmem:[#allocation2 + $0x8] sm:$0xff] %vm745_vm8, %v1397_v42  ;;  %v4163_v42 = vld [vmem:[#allocation12 + $0x1] ss:$0 sm:$0xff] }
 0xf41   :  { %v1477_v43 = vpop.permute.xlu2 %1476 }
 0xf42   :  { %1481 = vst.msk [vmem:[#allocation2 + $0x8] sm:$0xff] %vm826_vm9, %v1477_v43 }
 0xf43   :  { %v1395_v44 = vpop.permute.xlu0 %1394 }
 0xf44   :  { %1400 = vst.msk [vmem:[#allocation2] sm:$0xff] %vm745_vm8, %v1395_v44 }
 0xf51   :  { %v1475_v47 = vpop.permute.xlu1 %1474 }
 0xf52   :  { %1480 = vst.msk [vmem:[#allocation2] sm:$0xff] %vm826_vm9, %v1475_v47 }
 0xf63   :  { %v1555_v48 = vpop.permute.xlu0 %1554 }
 0xf64   :  { %1560 = vst.msk [vmem:[#allocation2] sm:$0xff] %vm907_vm10, %v1555_v48 }
 0xf6b   :  { %v1557_v49 = vpop.permute.xlu1 %1556  ;;  %v1562_v50 = vld [vmem:[#allocation2] sm:$0xff] }
 0xf6c   :  { %1561 = vst.msk [vmem:[#allocation2 + $0x8] sm:$0xff] %vm907_vm10, %v1557_v49  ;;  %v4029_v49 = vld [vmem:[%s5989_s30 + $0x38] sm:$0xff] }
 0xf6d   :  { %1745 = vmatpush.bf16.msrb.mxu0 %v4029_v49 }
 0xf73   :  { %v1563_v51 = vld [vmem:[#allocation2 + $0x8] sm:$0xff] }
 0xf74   :  { %v1564_v52 = vpack.c.bf16 %v1563_v51, %v1562_v50  ;;  %v4028_v50 = vld [vmem:[%s5989_s30 + $0x30] sm:$0xff]  ;;  %v4027_v51 = vld [vmem:[%s5989_s30 + $0x28] sm:$0xff] }
 0xf75   :  { %1746 = vmatpush.bf16.msrb.mxu0 %v4028_v50 }
 0xf76   :  { %3795 = vmatmul.msk.bf16.vlgmr.msrb.gmra.mxu2 %vm529_vm0, %v1564_v52  ;;  %v4026_v52 = vld [vmem:[%s5989_s30 + $0x20] sm:$0xff] }
 0xf79   :  { %1747 = vmatpush.bf16.msrb.mxu0 %v4027_v51 }
 0xf7d   :  { %1748 = vmatpush.bf16.msrb.mxu0 %v4026_v52 }
 0xff9   :  { %v1592_v54 = vpop.f32.mrf.mxu2 }
 0xffa   :  { %v1593_v55 = vadd.f32 %v4161_v53, %v1592_v54  ;;  %v4032_v54 = vld [vmem:[%s5990_s17] sm:$0xff] }
 0xffc   :  { %v1597_v56 = vadd.f32 %v1593_v55, %v5497_v60 }
 0xffe   :  { %v1603_v57 = vsel %vm529_vm0, %v1597_v56, 0.0 }
 0xfff   :  { %1604 = vadd.xlane.f32.xlu2 %v1603_v57 }
0x1001   :  { %v1594_v58 = vpop.f32.mrf.mxu2 }
0x1002   :  { %v1595_v61 = vadd.f32 %v4161_v53, %v1594_v58  ;;  %v4033_v53 = vld [vmem:[%s5990_s17 + $0x8] sm:$0xff] }
0x1003   :  { %1879 = vmatpush.bf16.msra.mxu2 %v4033_v53 }
0x1004   :  { %v1598_v62 = vadd.f32 %v1595_v61, %v5495_v59  ;;  %v4025_v59 = vld [vmem:[%s5988_s8 + $0x18] sm:$0xff] }
0x1005   :  { %1689 = vmatpush.bf16.msrb.mxu3 %v4025_v59  ;;  %v4166_v59 = vld [vmem:[#allocation20] ss:$0 sm:$0xff] }
0x1006   :  { %v1606_v63 = vsel %vm529_vm0, %v1598_v62, 0.0 }
0x1007   :  { %1607 = vadd.xlane.f32.xlu0 %v1606_v63  ;;  %1880 = vmatpush.bf16.msra.mxu2 %v4032_v54 }
0x1009   :  { %1690 = vmatpush.bf16.msrb.mxu3 %v4024_v17 }
0x100a   :  { %3851 = vmatmul.msk.bf16.vlgmr.msra.gmra.mxu2 %vm529_vm0, %v5369_v8 }
0x1072   :  { %v1605_v0 = vpop.xlane.xlu2 %1604 }
0x1073   :  { %v1609_v1 = vmul.f32 %v1605_v0, %v5469_v3 }
0x1075   :  { %v1611_v2 = vsub.f32 %v1597_v56, %v1609_v1  ;;  %v4164_v56 = vld [vmem:[#allocation14 + $0x1] ss:$0 sm:$0xff]  ;;  %v4165_v1 = vld [vmem:[#allocation15 + $0x1] ss:$0 sm:$0xff] }
0x1077   :  { %v1613_v4 = vmul.f32 %v1611_v2, %v1611_v2 }
0x1079   :  { %v1615_v9 = vsel %vm529_vm0, %v1613_v4, 0.0 }
0x107a   :  { %v1608_v60 = vpop.xlane.xlu0 %1607  ;;  %1616 = vadd.xlane.f32.xlu1 %v1615_v9 }
0x107b   :  { %v1610_v10 = vmul.f32 %v1608_v60, %v5469_v3 }
0x107d   :  { %v1612_v5 = vsub.f32 %v1598_v62, %v1610_v10 }
0x107f   :  { %v1614_v11 = vmul.f32 %v1612_v5, %v1612_v5 }
0x1081   :  { %v1618_v12 = vsel %vm529_vm0, %v1614_v11, 0.0 }
0x1082   :  { %1619 = vadd.xlane.f32.xlu2 %v1618_v12 }
0x108d   :  { %v1882_v12 = vpop.f32.mrf.mxu2 }
0x10ed   :  { %v1617_v13 = vpop.xlane.xlu1 %1616 }
0x10ee   :  { %v1621_v15 = vmul.f32 %v1617_v13, %v5469_v3  ;;  %v1884_v13 = vpop.f32.mrf.mxu2 }
0x10f0   :  { %v1623_v16 = vadd.f32 1e-05, %v1621_v15  ;;  %v1883_v15 = vadd.f32 %v4166_v59, %v1882_v12 }
0x10f2   :  { %4263 = vrsqrt.f32 %v1623_v16  ;;  %vm1631_vm13 = vweird.f32 %v1623_v16 }
0x10f5   :  { %v1620_v18 = vpop.xlane.xlu2 %1619 }
0x10f6   :  { %v1622_v19 = vmul.f32 %v1620_v18, %v5469_v3 }
0x10f8   :  { %v4264_v22 = vpop.eup %4263  ;;  %v1624_v25 = vadd.f32 1e-05, %v1622_v19 }
0x10f9   :  { %v1626_v27 = vmul.f32 %v4264_v22, %v1623_v16  ;;  %vm1632_vm12 = vweird.f32 %v4264_v22  ;;  %v1885_v16 = vadd.f32 %v4166_v59, %v1884_v13 }
0x10fa   :  { %4265 = vrsqrt.f32 %v1624_v25  ;;  %vm1633_vm14 = vmor %vm1631_vm13, %vm1632_vm12  ;;  %vm1641_vm5 = vweird.f32 %v1624_v25 }
0x10fb   :  { %v1627_v29 = vmul.f32 %v4264_v22, %v1626_v27  ;;  %v4142_v17 = vpack.i.bf16 %v1885_v16, %v1883_v15  ;;  %v5606_v18 = vpack.c.bf16 %v1885_v16, %v1883_v15 }
0x10fd   :  { %v1628_v31 = vmul.f32 0.5, %v1627_v29 }
0x10ff   :  { %v1629_v32 = vsub.f32 1.5, %v1628_v31 }
0x1100   :  { %v4266_v26 = vpop.eup %4265 }
0x1101   :  { %v1630_v33 = vmul.f32 %v4264_v22, %v1629_v32  ;;  %v1636_v34 = vmul.f32 %v4266_v26, %v1624_v25  ;;  %vm1642_vm15 = vweird.f32 %v4266_v26 }
0x1102   :  { %vm1643_vm6 = vmor %vm1641_vm5, %vm1642_vm15 }
0x1103   :  { %v1637_v14 = vmul.f32 %v4266_v26, %v1636_v34  ;;  %v1634_v35 = vsel %vm1633_vm14, %v4264_v22, %v1630_v33 }
0x1104   :  { %v1645_v39 = vmul.f32 %v1634_v35, %v1611_v2 }
0x1105   :  { %v1638_v36 = vmul.f32 0.5, %v1637_v14 }
0x1106   :  { %v1650_v43 = vmul.f32 %v4162_v38, %v1645_v39 }
0x1107   :  { %v1639_v37 = vsub.f32 1.5, %v1638_v36 }
0x1108   :  { %v1655_v46 = vadd.f32 %v4163_v42, %v1650_v43 }
0x1109   :  { %v1640_v40 = vmul.f32 %v4266_v26, %v1639_v37  ;;  %v4031_v37 = vld [vmem:[%s5991_s1 + $0x8] sm:$0xff] }
0x110a   :  { %1845 = vmatpush.bf16.msra.mxu1 %v4031_v37 }
0x110b   :  { %v1644_v41 = vsel %vm1643_vm6, %v4266_v26, %v1640_v40 }
0x110c   :  { %v1646_v44 = vmul.f32 %v1644_v41, %v1612_v5  ;;  %v4030_v41 = vld [vmem:[%s5991_s1] sm:$0xff] }
0x110e   :  { %v1651_v45 = vmul.f32 %v4162_v38, %v1646_v44  ;;  %1846 = vmatpush.bf16.msra.mxu1 %v4030_v41 }
0x1110   :  { %v1656_v47 = vadd.f32 %v4163_v42, %v1651_v45 }
0x1112   :  { %v1662_v48 = vpack.c.bf16 %v1656_v47, %v1655_v46 }
0x1114   :  { %3808 = vmatmul.msk.bf16.vlgmr.msrb.gmra.mxu3 %vm529_vm0, %v1662_v48 }
0x1197   :  { %v1692_v55 = vpop.f32.mrf.mxu3 }
0x1198   :  { %v1693_v57 = vadd.f32 %v4164_v56, %v1692_v55 }
0x119a   :  { %v1697_v62 = vmax.f32 %v1693_v57, 0.0  ;;  %v4167_v57 = vld [vmem:[#allocation17 + $0x1] ss:$0 sm:$0xff] }
0x119f   :  { %v1694_v58 = vpop.f32.mrf.mxu3 }
0x11a0   :  { %v1695_v61 = vadd.f32 %v4164_v56, %v1694_v58 }
0x11a2   :  { %v1698_v63 = vmax.f32 %v1695_v61, 0.0 }
0x11a4   :  { %v1708_v0 = vpack.c.bf16 %v1698_v63, %v1697_v62  ;;  %v4168_v63 = vld [vmem:[#allocation18 + $0x1] ss:$0 sm:$0xff] }
0x11a6   :  { %3833 = vmatmul.msk.bf16.vlgmr.msrb.gmra.mxu0 %vm1087_vm11, %v1708_v0 }
0x1223   :  { %v1750_v2 = vpop.f32.mrf.mxu0 }
0x1224   :  { %v1751_v4 = vadd.f32 %v4165_v1, %v1750_v2 }
0x1226   :  { %v1755_v9 = vadd.f32 %v1751_v4, %v1655_v46 }
0x1228   :  { %v1761_v60 = vsel %vm529_vm0, %v1755_v9, 0.0 }
0x1229   :  { %1762 = vadd.xlane.f32.xlu0 %v1761_v60 }
0x122b   :  { %v1752_v10 = vpop.f32.mrf.mxu0 }
0x122c   :  { %v1753_v5 = vadd.f32 %v4165_v1, %v1752_v10 }
0x122e   :  { %v1756_v8 = vadd.f32 %v1753_v5, %v1656_v47 }
0x1230   :  { %v1764_v11 = vsel %vm529_vm0, %v1756_v8, 0.0 }
0x1231   :  { %1765 = vadd.xlane.f32.xlu1 %v1764_v11 }
0x124a   :  { %4143 = vrot.lane.b32.xlu1 %v4142_v17, %s4973_s26 }
0x1252   :  { %2085 = vrot.lane.b32.xlu1 %v5606_v18, %s4976_s14 }
0x129c   :  { %v1763_v19 = vpop.xlane.xlu0 %1762 }
0x129d   :  { %v1767_v22 = vmul.f32 %v1763_v19, %v5469_v3 }
0x129f   :  { %v1769_v25 = vsub.f32 %v1755_v9, %v1767_v22 }
0x12a1   :  { %v1771_v27 = vmul.f32 %v1769_v25, %v1769_v25 }
0x12a3   :  { %v1773_v29 = vsel %vm529_vm0, %v1771_v27, 0.0 }
0x12a4   :  { %v1766_v31 = vpop.xlane.xlu1 %1765  ;;  %1774 = vadd.xlane.f32.xlu2 %v1773_v29 }
0x12a5   :  { %v1768_v32 = vmul.f32 %v1766_v31, %v5469_v3  ;;  %v470_v31 = vshrl.u32 %v469_v20, 7 }
0x12a7   :  { %v1770_v26 = vsub.f32 %v1756_v8, %v1768_v32  ;;  %v471_v32 = vadd.s32 8, %v470_v31 }
0x12a9   :  { %v1772_v33 = vmul.f32 %v1770_v26, %v1770_v26 }
0x12ab   :  { %v1776_v34 = vsel %vm529_vm0, %v1772_v33, 0.0 }
0x12ac   :  { %1777 = vadd.xlane.f32.xlu0 %v1776_v34 }
0x12bc   :  { %2005 = vrot.lane.b32.xlu2 %v5606_v18, %s4975_s19  ;;  %v4144_v14 = vpop.permute.xlu1 %4143 }
0x12bd   :  { %v4145_v35 = vunpack.i.l.bf16 %v4144_v14  ;;  %v4146_v36 = vunpack.i.h.bf16 %v4144_v14 }
0x12c4   :  { %2165 = vrot.lane.b32.xlu2 %v5606_v18, %s4977_s16  ;;  %v2086_v19 = vpop.permute.xlu1 %2085 }
0x12d5   :  { %1900 = vxpose.xlu0.b32.start [1/2] (short) (narrow) %v4145_v35, 32 }
0x12dd   :  { %1901 = vxpose.xlu0.b32.end [2/2] (short) (narrow) %v4146_v36, 32 }
0x1317   :  { %v1775_v38 = vpop.xlane.xlu2 %1774 }
0x1318   :  { %v1779_v39 = vmul.f32 %v1775_v38, %v5469_v3 }
0x131a   :  { %v1781_v40 = vadd.f32 1e-05, %v1779_v39 }
0x131c   :  { %4267 = vrsqrt.f32 %v1781_v40  ;;  %vm1789_vm13 = vweird.f32 %v1781_v40 }
0x131f   :  { %v1778_v42 = vpop.xlane.xlu0 %1777  ;;  %v2006_v13 = vpop.permute.xlu2 %2005 }
0x1320   :  { %v1780_v43 = vmul.f32 %v1778_v42, %v5469_v3 }
0x1322   :  { %v4268_v44 = vpop.eup %4267  ;;  %v1782_v45 = vadd.f32 1e-05, %v1780_v43 }
0x1323   :  { %v1784_v46 = vmul.f32 %v4268_v44, %v1781_v40  ;;  %vm1790_vm12 = vweird.f32 %v4268_v44 }
0x1324   :  { %4269 = vrsqrt.f32 %v1782_v45  ;;  %vm1791_vm14 = vmor %vm1789_vm13, %vm1790_vm12  ;;  %vm1799_vm5 = vweird.f32 %v1782_v45  ;;  %vm502_vm12 = vcmp.le.s32.totalorder %v5381_v21, %v470_v31 }
0x1325   :  { %v1785_v47 = vmul.f32 %v4268_v44, %v1784_v46  ;;  %vm504_vm13 = vmand %vm483_vm3, %vm502_vm12 }
0x1326   :  { %v5637_v33 = vsel %vm504_vm13, 0.0, %v4974_v23 }
0x1327   :  { %v1786_v48 = vmul.f32 0.5, %v1785_v47  ;;  %v2166_v29 = vpop.permute.xlu2 %2165 }
0x1329   :  { %v1787_v49 = vsub.f32 1.5, %v1786_v48 }
0x132a   :  { %v4270_v50 = vpop.eup %4269 }
0x132b   :  { %v1788_v51 = vmul.f32 %v4268_v44, %v1787_v49  ;;  %v1794_v52 = vmul.f32 %v4270_v50, %v1782_v45  ;;  %vm1800_vm15 = vweird.f32 %v4270_v50 }
0x132c   :  { %vm1801_vm6 = vmor %vm1799_vm5, %vm1800_vm15 }
0x132d   :  { %v1795_v53 = vmul.f32 %v4270_v50, %v1794_v52  ;;  %v1792_v54 = vsel %vm1791_vm14, %v4268_v44, %v1788_v51  ;;  %vm503_vm14 = vcmp.le.s32.totalorder %v5381_v21, %v471_v32 }
0x132e   :  { %v1803_v58 = vmul.f32 %v1792_v54, %v1769_v25  ;;  %vm505_vm15 = vmand %vm5393_vm7, %vm503_vm14 }
0x132f   :  { %v1796_v55 = vmul.f32 0.5, %v1795_v53  ;;  %v5645_v36 = vsel %vm505_vm15, 0.0, %v4974_v23 }
0x1330   :  { %v1808_v0 = vmul.f32 %v4167_v57, %v1803_v58 }
0x1331   :  { %v1797_v56 = vsub.f32 1.5, %v1796_v55 }
0x1332   :  { %v1813_v4 = vadd.f32 %v4168_v63, %v1808_v0 }
0x1333   :  { %v1798_v61 = vmul.f32 %v4270_v50, %v1797_v56 }
0x1335   :  { %v1802_v62 = vsel %vm1801_vm6, %v4270_v50, %v1798_v61 }
0x1336   :  { %v1804_v1 = vmul.f32 %v1802_v62, %v1770_v26 }
0x1338   :  { %v1809_v2 = vmul.f32 %v4167_v57, %v1804_v1 }
0x133a   :  { %v1814_v9 = vadd.f32 %v4168_v63, %v1809_v2 }
0x133c   :  { %v1819_v60 = vpack.c.bf16 %v1814_v9, %v1813_v4 }
0x133e   :  { %3842 = vmatmul.msk.bf16.vlgmr.msra.gmra.mxu1 %vm529_vm0, %v1819_v60 }
0x1379   :  { %v1916_v10 = vpop.trf.xlu0 }
0x137a   :  { %v1933_v5 = vpack.c.bf16 %v1916_v10, %v1916_v10 }
0x137c   :  { %v1938_v8 = vsel %vm598_vm1, %v1933_v5, 0 }
0x137d   :  { %1947 = vmatpush.bf16.msra.mxu3 %v1938_v8 }
0x1380   :  { %3852 = vmatmul.msk.bf16.vlgmr.msra.gmra.mxu3 %vm594_vm2, %v5606_v18 }
0x1381   :  { %v1917_v11 = vpop.trf.xlu0 }
0x1382   :  { %v2004_v12 = vpack.c.bf16 %v1917_v11, %v1917_v11 }
0x1384   :  { %v2011_v59 = vsel %vm598_vm1, %v2004_v12, 0 }
0x1385   :  { %2020 = vmatpush.bf16.msrb.mxu1 %v2011_v59 }
0x1388   :  { %3854 = vmatmul.msk.bf16.vlgmr.msrb.gmra.mxu1 %vm594_vm2, %v2006_v13 }
0x1389   :  { %v1918_v15 = vpop.trf.xlu0 }
0x138a   :  { %v2084_v16 = vpack.c.bf16 %v1918_v15, %v1918_v15 }
0x138c   :  { %v2091_v17 = vsel %vm598_vm1, %v2084_v16, 0 }
0x138d   :  { %2100 = vmatpush.bf16.msrb.mxu3 %v2091_v17 }
0x1390   :  { %3856 = vmatmul.msk.bf16.vlgmr.msrb.gmra.mxu3 %vm594_vm2, %v2086_v19 }
0x1391   :  { %v1919_v22 = vpop.trf.xlu0 }
0x1392   :  { %v2164_v25 = vpack.c.bf16 %v1919_v22, %v1919_v22 }
0x1394   :  { %v2171_v27 = vsel %vm598_vm1, %v2164_v25, 0 }
0x1395   :  { %2180 = vmatpush.bf16.msra.mxu1 %v2171_v27 }
0x1398   :  { %3858 = vmatmul.msk.bf16.vlgmr.msra.gmra.mxu1 %vm594_vm2, %v2166_v29 }
0x13bb   :  { %v5658_v45 = vpop.f32.mrf.mxu1 }
0x13c3   :  { %v5660_v46 = vpop.f32.mrf.mxu1 }
0x1403   :  { %v1949_v26 = vpop.f32.mrf.mxu3 }
0x1404   :  { %v1954_v34 = vmul.f32 0.35355338, %v1949_v26 }
0x1405   :  { %v2022_v47 = vpop.f32.mrf.mxu1 }
0x1406   :  { %v1956_v14 = vadd.f32 %v1954_v34, %v5637_v33  ;;  %v2027_v56 = vmul.f32 0.35355338, %v2022_v47 }
0x1408   :  { %v1958_v35 = vsel %vm620_vm4, %v1956_v14, -inf  ;;  %v2029_v61 = vadd.f32 %v2027_v56, %v5637_v33 }
0x1409   :  { %1959 = vmax.xlane.f32.xlu0 %v1958_v35 }
0x140a   :  { %v2031_v1 = vsel %vm620_vm4, %v2029_v61, -inf }
0x140b   :  { %v1951_v20 = vpop.f32.mrf.mxu3 }
0x140c   :  { %v1955_v37 = vmul.f32 0.35355338, %v1951_v20 }
0x140d   :  { %v2024_v51 = vpop.f32.mrf.mxu1 }
0x140e   :  { %v1957_v38 = vadd.f32 %v1955_v37, %v5645_v36  ;;  %v2028_v63 = vmul.f32 0.35355338, %v2024_v51 }
0x1410   :  { %v1961_v39 = vsel %vm620_vm4, %v1957_v38, -inf  ;;  %v2030_v2 = vadd.f32 %v2028_v63, %v5645_v36 }
0x1411   :  { %1962 = vmax.xlane.f32.xlu2 %v1961_v39 }
0x1412   :  { %v2034_v60 = vsel %vm620_vm4, %v2030_v2, -inf }
0x1413   :  { %v2102_v40 = vpop.f32.mrf.mxu3 }
0x1414   :  { %v2107_v21 = vmul.f32 0.35355338, %v2102_v40 }
0x1415   :  { %v2182_v58 = vpop.f32.mrf.mxu1 }
0x1416   :  { %v2109_v41 = vadd.f32 %v2107_v21, %v5637_v33  ;;  %v2187_v8 = vmul.f32 0.35355338, %v2182_v58 }
0x1418   :  { %v2111_v42 = vsel %vm620_vm4, %v2109_v41, -inf  ;;  %v2189_v11 = vadd.f32 %v2187_v8, %v5637_v33 }
0x1419   :  { %2112 = vmax.xlane.f32.xlu1 %v2111_v42 }
0x141a   :  { %v2191_v12 = vsel %vm620_vm4, %v2189_v11, -inf }
0x141b   :  { %v2104_v28 = vpop.f32.mrf.mxu3 }
0x141c   :  { %v2108_v43 = vmul.f32 0.35355338, %v2104_v28 }
0x141d   :  { %2134 = vrot.lane.b32.xlu0 %v5606_v18, %s4980_s22  ;;  %v2184_v4 = vpop.f32.mrf.mxu1 }
0x141e   :  { %v5654_v23 = vadd.f32 %v2108_v43, %v5645_v36  ;;  %v2188_v9 = vmul.f32 0.35355338, %v2184_v4 }
0x1420   :  { %v2114_v44 = vsel %vm620_vm4, %v5654_v23, -inf  ;;  %v2190_v10 = vadd.f32 %v2188_v9, %v5645_v36 }
0x1421   :  { %2115 = vmax.xlane.f32.xlu2 %v2114_v44 }
0x1422   :  { %v2194_v5 = vsel %vm620_vm4, %v2190_v10, -inf }
0x147c   :  { %v1960_v48 = vpop.xlane.xlu0 %1959 }
0x147d   :  { %v1964_v49 = vsub.f32 %v1956_v14, %v1960_v48 }
0x147f   :  { %v1966_v50 = vmul.f32 1.442695, %v1964_v49 }
0x1481   :  { %4271 = vpow2.f32 %v1966_v50 }
0x1484   :  { %v1963_v52 = vpop.xlane.xlu2 %1962 }
0x1485   :  { %v1965_v53 = vsub.f32 %v1957_v38, %v1963_v52 }
0x1487   :  { %v4272_v54 = vpop.eup %4271  ;;  %v1968_v55 = vmul.f32 1.442695, %v1965_v53 }
0x1488   :  { %v1970_v57 = vsel %vm620_vm4, %v4272_v54, 0.0 }
0x1489   :  { %4273 = vpow2.f32 %v1968_v55  ;;  %1971 = vadd.xlane.f32.xlu1 %v1970_v57 }
0x148c   :  { %v2113_v59 = vpop.xlane.xlu1 %2112 }
0x148d   :  { %v2117_v22 = vsub.f32 %v2109_v41, %v2113_v59 }
0x148f   :  { %v4274_v62 = vpop.eup %4273  ;;  %v2119_v31 = vmul.f32 1.442695, %v2117_v22 }
0x1490   :  { %v1973_v0 = vsel %vm620_vm4, %v4274_v62, 0.0 }
0x1491   :  { %1974 = vadd.xlane.f32.xlu2 %v1973_v0  ;;  %2032 = vmax.xlane.f32.xlu1 %v2031_v1 }
0x1494   :  { %v2116_v13 = vpop.xlane.xlu2 %2115 }
0x1495   :  { %v2118_v50 = vsub.f32 %v5654_v23, %v2116_v13 }
0x1497   :  { %v2121_v53 = vmul.f32 1.442695, %v2118_v50 }
0x1499   :  { %2035 = vmax.xlane.f32.xlu2 %v2034_v60 }
0x14a1   :  { %2195 = vmax.xlane.f32.xlu2 %v2194_v5 }
0x14aa   :  { %2054 = vrot.lane.b32.xlu1 %v5606_v18, %s4978_s5 }
0x14d4   :  { %2192 = vmax.xlane.f32.xlu1 %v2191_v12 }
0x14fc   :  { %v1972_v15 = vpop.xlane.xlu1 %1971 }
0x14fd   :  { %4275 = vrcp.f32 %v1972_v15 }
0x1503   :  { %v4276_v27 = vpop.eup %4275 }
0x1504   :  { %v1975_v16 = vpop.xlane.xlu2 %1974  ;;  %v2033_v17 = vpop.xlane.xlu1 %2032  ;;  %v1978_v32 = vmul.f32 %v4276_v27, %v4272_v54 }
0x1505   :  { %4277 = vrcp.f32 %v1975_v16  ;;  %v2037_v19 = vsub.f32 %v2029_v61, %v2033_v17 }
0x1507   :  { %v2039_v25 = vmul.f32 1.442695, %v2037_v19 }
0x1509   :  { %4279 = vpow2.f32 %v2039_v25 }
0x150a   :  { %4281 = vpow2.f32 %v2119_v31 }
0x150b   :  { %v4278_v29 = vpop.eup %4277 }
0x150c   :  { %v1979_v26 = vmul.f32 %v4278_v29, %v4274_v62  ;;  %v2036_v34 = vpop.xlane.xlu2 %2035 }
0x150d   :  { %v2038_v14 = vsub.f32 %v2030_v2, %v2036_v34  ;;  %v2135_v2 = vpop.permute.xlu0 %2134 }
0x150e   :  { %v1980_v35 = vpack.c.bf16 %v1979_v26, %v1978_v32 }
0x150f   :  { %v4280_v20 = vpop.eup %4279  ;;  %v2041_v37 = vmul.f32 1.442695, %v2038_v14 }
0x1510   :  { %v2043_v38 = vsel %vm620_vm4, %v4280_v20, 0.0  ;;  %v4282_v39 = vpop.eup %4281 }
0x1511   :  { %4283 = vpow2.f32 %v2041_v37  ;;  %2044 = vadd.xlane.f32.xlu1 %v2043_v38  ;;  %v2123_v41 = vsel %vm620_vm4, %v4282_v39, 0.0  ;;  %v4035_v38 = vld [vmem:[%s5992_s7 + $0x8] sm:$0xff] }
0x1512   :  { %2271 = vmatpush.bf16.msra.mxu3 %v4035_v38 }
0x1514   :  { %v2196_v28 = vpop.xlane.xlu2 %2195 }
0x1515   :  { %v2198_v44 = vsub.f32 %v2190_v10, %v2196_v28 }
0x1517   :  { %v4284_v40 = vpop.eup %4283  ;;  %v2201_v49 = vmul.f32 1.442695, %v2198_v44  ;;  %v4170_v44 = vld [vmem:[#allocation21] ss:$0 sm:$0xff] }
0x1518   :  { %v2046_v21 = vsel %vm620_vm4, %v4284_v40, 0.0 }
0x1519   :  { %2047 = vadd.xlane.f32.xlu2 %v2046_v21  ;;  %2124 = vadd.xlane.f32.xlu1 %v2123_v41 }
0x151c   :  { %v2055_v42 = vpop.permute.xlu1 %2054 }
0x151d   :  { %2067 = vmatpush.bf16.msrb.mxu2 %v2055_v42 }
0x1531   :  { %1982 = vrot.lane.b32.xlu2 %v5606_v18, %s4960_s10 }
0x1547   :  { %v2193_v43 = vpop.xlane.xlu1 %2192 }
0x1548   :  { %v2197_v47 = vsub.f32 %v2189_v11, %v2193_v43 }
0x154a   :  { %v2199_v48 = vmul.f32 1.442695, %v2197_v47 }
0x154c   :  { %4285 = vpow2.f32 %v2199_v48 }
0x154d   :  { %4287 = vpow2.f32 %v2201_v49 }
0x154e   :  { %4289 = vpow2.f32 %v2121_v53 }
0x1552   :  { %v4286_v51 = vpop.eup %4285 }
0x1553   :  { %v2203_v52 = vsel %vm620_vm4, %v4286_v51, 0.0  ;;  %v4288_v54 = vpop.eup %4287 }
0x1554   :  { %2204 = vadd.xlane.f32.xlu1 %v2203_v52  ;;  %v2206_v55 = vsel %vm620_vm4, %v4288_v54, 0.0  ;;  %v4290_v56 = vpop.eup %4289 }
0x1555   :  { %v2126_v57 = vsel %vm620_vm4, %v4290_v56, 0.0 }
0x155a   :  { %2207 = vadd.xlane.f32.xlu2 %v2206_v55 }
0x1562   :  { %2127 = vadd.xlane.f32.xlu2 %v2126_v57 }
0x156d   :  { %2214 = vrot.lane.b32.xlu1 %v5606_v18, %s4979_s28 }
0x1584   :  { %v2045_v58 = vpop.xlane.xlu1 %2044 }
0x1585   :  { %4291 = vrcp.f32 %v2045_v58 }
0x158b   :  { %v4292_v61 = vpop.eup %4291 }
0x158c   :  { %v2048_v23 = vpop.xlane.xlu2 %2047  ;;  %v2051_v63 = vmul.f32 %v4292_v61, %v4280_v20  ;;  %v2125_v9 = vpop.xlane.xlu1 %2124 }
0x158d   :  { %4293 = vrcp.f32 %v2048_v23 }
0x158e   :  { %4295 = vrcp.f32 %v2125_v9  ;;  %v4036_v9 = vld [vmem:[#allocation26] sm:$0xff] }
0x1593   :  { %v4294_v62 = vpop.eup %4293 }
0x1594   :  { %v2052_v0 = vmul.f32 %v4294_v62, %v4284_v40  ;;  %v1983_v1 = vpop.permute.xlu2 %1982  ;;  %v4296_v5 = vpop.eup %4295 }
0x1595   :  { %1995 = vmatpush.bf16.msra.mxu0 %v1983_v1  ;;  %v2131_v59 = vmul.f32 %v4296_v5, %v4282_v39  ;;  %v4034_v39 = vld [vmem:[%s5992_s7] sm:$0xff] }
0x1596   :  { %v2053_v4 = vpack.c.bf16 %v2052_v0, %v2051_v63  ;;  %2272 = vmatpush.bf16.msra.mxu3 %v4034_v39  ;;  %v4041_v39 = vld [vmem:[%s5993_s4 + $0x18] sm:$0xff] }
0x1597   :  { %2421 = vmatpush.bf16.msrb.mxu1 %v4041_v39 }
0x1598   :  { %3853 = vmatmul.msk.bf16.vlgmr.msra.gmra.mxu0 %vm620_vm4, %v1980_v35  ;;  %3855 = vmatmul.msk.bf16.vlgmr.msrb.gmra.mxu2 %vm620_vm4, %v2053_v4 }
0x1599   :  { %2147 = vmatpush.bf16.msrb.mxu0 %v2135_v2 }
0x15c7   :  { %v2205_v18 = vpop.xlane.xlu1 %2204 }
0x15cd   :  { %v2208_v60 = vpop.xlane.xlu2 %2207 }
0x15ce   :  { %4297 = vrcp.f32 %v2208_v60 }
0x15cf   :  { %4299 = vrcp.f32 %v2205_v18 }
0x15d4   :  { %v4298_v8 = vpop.eup %4297 }
0x15d5   :  { %v2128_v10 = vpop.xlane.xlu2 %2127  ;;  %v4300_v11 = vpop.eup %4299  ;;  %v2212_v13 = vmul.f32 %v4298_v8, %v4288_v54 }
0x15d6   :  { %4301 = vrcp.f32 %v2128_v10  ;;  %v2211_v16 = vmul.f32 %v4300_v11, %v4286_v51 }
0x15d8   :  { %v2213_v22 = vpack.c.bf16 %v2212_v13, %v2211_v16 }
0x15dc   :  { %v4302_v12 = vpop.eup %4301 }
0x15dd   :  { %v2132_v15 = vmul.f32 %v4302_v12, %v4290_v56 }
0x15df   :  { %v2133_v17 = vpack.c.bf16 %v2132_v15, %v2131_v59  ;;  %v2215_v19 = vpop.permute.xlu1 %2214 }
0x15e0   :  { %2227 = vmatpush.bf16.msra.mxu2 %v2215_v19 }
0x15e1   :  { %3857 = vmatmul.msk.bf16.vlgmr.msrb.gmra.mxu0 %vm620_vm4, %v2133_v17 }
0x15e3   :  { %3859 = vmatmul.msk.bf16.vlgmr.msra.gmra.mxu2 %vm620_vm4, %v2213_v22 }
0x1615   :  { %v1997_v25 = vpop.f32.mrf.mxu0 }
0x1616   :  { %2002 = vst.msk [vmem:[#allocation2] sm:$0xff] %vm594_vm2, %v1997_v25 }
0x161b   :  { %v2069_v27 = vpop.f32.mrf.mxu2 }
0x161c   :  { %2076 = vrot.lane.b32.xlu2 %v2069_v27, %s4949_s15  ;;  %v4171_v27 = vld [vmem:[#allocation23] ss:$0 sm:$0xff] }
0x161d   :  { %v1999_v29 = vpop.f32.mrf.mxu0 }
0x161e   :  { %2003 = vst.msk [vmem:[#allocation2 + $0x8] sm:$0xff] %vm594_vm2, %v1999_v29 }
0x1623   :  { %v2071_v31 = vpop.f32.mrf.mxu2 }
0x1624   :  { %2078 = vrot.lane.b32.xlu0 %v2071_v31, %s4949_s15 }
0x165e   :  { %v2149_v32 = vpop.f32.mrf.mxu0 }
0x165f   :  { %2156 = vrot.lane.b32.xlu1 %v2149_v32, %s4951_s2 }
0x1666   :  { %v2151_v26 = vpop.f32.mrf.mxu0  ;;  %v2229_v34 = vpop.f32.mrf.mxu2 }
0x1667   :  { %2236 = vrot.lane.b32.xlu0 %v2229_v34, %s4981_s6  ;;  %2158 = vrot.lane.b32.xlu2 %v2151_v26, %s4951_s2  ;;  %v4172_v26 = vld [vmem:[#allocation24] ss:$0 sm:$0xff] }
0x166e   :  { %v2231_v14 = vpop.f32.mrf.mxu2 }
0x166f   :  { %2238 = vrot.lane.b32.xlu1 %v2231_v14, %s4981_s6 }
0x1676   :  { %v2077_v35 = vpop.permute.xlu2 %2076 }
0x1677   :  { %2082 = vst.msk [vmem:[#allocation2] sm:$0xff] %vm745_vm8, %v2077_v35 }
0x1696   :  { %v2079_v20 = vpop.permute.xlu0 %2078 }
0x1697   :  { %2083 = vst.msk [vmem:[#allocation2 + $0x8] sm:$0xff] %vm745_vm8, %v2079_v20 }
0x16c1   :  { %v2159_v37 = vpop.permute.xlu2 %2158 }
0x16c2   :  { %2163 = vst.msk [vmem:[#allocation2 + $0x8] sm:$0xff] %vm826_vm9, %v2159_v37 }
0x16d1   :  { %v2157_v40 = vpop.permute.xlu1 %2156 }
0x16d2   :  { %2162 = vst.msk [vmem:[#allocation2] sm:$0xff] %vm826_vm9, %v2157_v40  ;;  %v4040_v40 = vld [vmem:[%s5993_s4 + $0x10] sm:$0xff] }
0x16d3   :  { %2422 = vmatpush.bf16.msrb.mxu1 %v4040_v40 }
0x16d9   :  { %v2237_v21 = vpop.permute.xlu0 %2236 }
0x16da   :  { %2242 = vst.msk [vmem:[#allocation2] sm:$0xff] %vm907_vm10, %v2237_v21  ;;  %v4039_v21 = vld [vmem:[%s5993_s4 + $0x8] sm:$0xff] }
0x16db   :  { %2423 = vmatpush.bf16.msrb.mxu1 %v4039_v21 }
0x16e1   :  { %v2239_v41 = vpop.permute.xlu1 %2238  ;;  %v2244_v42 = vld [vmem:[#allocation2] sm:$0xff] }
0x16e2   :  { %2243 = vst.msk [vmem:[#allocation2 + $0x8] sm:$0xff] %vm907_vm10, %v2239_v41  ;;  %v4038_v41 = vld [vmem:[%s5993_s4] sm:$0xff] }
0x16e3   :  { %2424 = vmatpush.bf16.msrb.mxu1 %v4038_v41 }
0x16e9   :  { %v2245_v28 = vld [vmem:[#allocation2 + $0x8] sm:$0xff] }
0x16ea   :  { %v2246_v43 = vpack.c.bf16 %v2245_v28, %v2244_v42  ;;  %v4173_v28 = vld [vmem:[%s5994_s25] ss:$0 sm:$0xff] }
0x16ec   :  { %3868 = vmatmul.msk.bf16.vlgmr.msra.gmra.mxu3 %vm529_vm0, %v2246_v43 }
0x176f   :  { %v2274_v47 = vpop.f32.mrf.mxu3 }
0x1770   :  { %v2275_v48 = vadd.f32 %v4170_v44, %v2274_v47 }
0x1772   :  { %v2279_v49 = vadd.f32 %v2275_v48, %v5363_v6 }
0x1774   :  { %v2283_v50 = vsel %vm529_vm0, %v2279_v49, 0.0 }
0x1775   :  { %2284 = vadd.xlane.f32.xlu2 %v2283_v50 }
0x1777   :  { %v2276_v51 = vpop.f32.mrf.mxu3 }
0x1778   :  { %v2277_v52 = vadd.f32 %v4170_v44, %v2276_v51  ;;  %v4174_v51 = vld [vmem:[%s5995_s24] ss:$0 sm:$0xff] }
0x177a   :  { %v2280_v53 = vadd.f32 %v2277_v52, %v5365_v7  ;;  %v4037_v7 = vld [vmem:[#allocation26 + $0x8] sm:$0xff] }
0x177b   :  { %2367 = vmatpush.bf16.msra.mxu0 %v4037_v7 }
0x177c   :  { %v2286_v54 = vsel %vm529_vm0, %v2280_v53, 0.0 }
0x177d   :  { %2287 = vadd.xlane.f32.xlu0 %v2286_v54 }
0x177f   :  { %2368 = vmatpush.bf16.msra.mxu0 %v4036_v9 }
0x17e8   :  { %v2285_v55 = vpop.xlane.xlu2 %2284 }
0x17e9   :  { %v2289_v56 = vmul.f32 %v2285_v55, %v5469_v3 }
0x17eb   :  { %v2291_v57 = vsub.f32 %v2279_v49, %v2289_v56 }
0x17ed   :  { %v2293_v58 = vmul.f32 %v2291_v57, %v2291_v57 }
0x17ef   :  { %v2295_v23 = vsel %vm529_vm0, %v2293_v58, 0.0 }
0x17f0   :  { %v2288_v61 = vpop.xlane.xlu0 %2287  ;;  %2296 = vadd.xlane.f32.xlu1 %v2295_v23 }
0x17f1   :  { %v2290_v6 = vmul.f32 %v2288_v61, %v5469_v3 }
0x17f3   :  { %v2292_v62 = vsub.f32 %v2280_v53, %v2290_v6 }
0x17f5   :  { %v2294_v63 = vmul.f32 %v2292_v62, %v2292_v62 }
0x17f7   :  { %v2298_v0 = vsel %vm529_vm0, %v2294_v63, 0.0 }
0x17f8   :  { %2299 = vadd.xlane.f32.xlu2 %v2298_v0 }
0x1863   :  { %v2297_v1 = vpop.xlane.xlu1 %2296 }
0x1864   :  { %v2301_v2 = vmul.f32 %v2297_v1, %v5469_v3 }
0x1866   :  { %v2303_v4 = vadd.f32 1e-05, %v2301_v2 }
0x1868   :  { %4303 = vrsqrt.f32 %v2303_v4  ;;  %vm2311_vm7 = vweird.f32 %v2303_v4 }
0x186b   :  { %v2300_v60 = vpop.xlane.xlu2 %2299 }
0x186c   :  { %v2302_v18 = vmul.f32 %v2300_v60, %v5469_v3  ;;  %v4043_v60 = vld [vmem:[%s5990_s17 + $0x18] sm:$0xff] }
0x186d   :  { %2521 = vmatpush.bf16.msrb.mxu2 %v4043_v60 }
0x186e   :  { %v4304_v10 = vpop.eup %4303  ;;  %v2304_v5 = vadd.f32 1e-05, %v2302_v18 }
0x186f   :  { %v2306_v8 = vmul.f32 %v4304_v10, %v2303_v4  ;;  %vm2312_vm3 = vweird.f32 %v4304_v10 }
0x1870   :  { %4305 = vrsqrt.f32 %v2304_v5  ;;  %vm2313_vm5 = vmor %vm2311_vm7, %vm2312_vm3  ;;  %vm2321_vm12 = vweird.f32 %v2304_v5 }
0x1871   :  { %v2307_v11 = vmul.f32 %v4304_v10, %v2306_v8  ;;  %v4042_v8 = vld [vmem:[%s5990_s17 + $0x10] sm:$0xff] }
0x1872   :  { %2522 = vmatpush.bf16.msrb.mxu2 %v4042_v8 }
0x1873   :  { %v2308_v12 = vmul.f32 0.5, %v2307_v11 }
0x1875   :  { %v2309_v59 = vsub.f32 1.5, %v2308_v12 }
0x1876   :  { %v4306_v13 = vpop.eup %4305 }
0x1877   :  { %v2310_v15 = vmul.f32 %v4304_v10, %v2309_v59  ;;  %v2316_v16 = vmul.f32 %v4306_v13, %v2304_v5  ;;  %vm2322_vm6 = vweird.f32 %v4306_v13 }
0x1878   :  { %vm2323_vm13 = vmor %vm2321_vm12, %vm2322_vm6 }
0x1879   :  { %v2317_v17 = vmul.f32 %v4306_v13, %v2316_v16  ;;  %v2314_v19 = vsel %vm2313_vm5, %v4304_v10, %v2310_v15 }
0x187a   :  { %v2325_v29 = vmul.f32 %v2314_v19, %v2291_v57 }
0x187b   :  { %v2318_v22 = vmul.f32 0.5, %v2317_v17 }
0x187c   :  { %v2330_v34 = vmul.f32 %v4171_v27, %v2325_v29 }
0x187d   :  { %v2319_v25 = vsub.f32 1.5, %v2318_v22 }
0x187e   :  { %v2335_v20 = vadd.f32 %v4172_v26, %v2330_v34  ;;  %v4175_v34 = vld [vmem:[%s5996_s29] ss:$0 sm:$0xff] }
0x187f   :  { %v2320_v31 = vmul.f32 %v4306_v13, %v2319_v25 }
0x1881   :  { %v2324_v32 = vsel %vm2323_vm13, %v4306_v13, %v2320_v31 }
0x1882   :  { %v2326_v14 = vmul.f32 %v2324_v32, %v2292_v62 }
0x1884   :  { %v2331_v35 = vmul.f32 %v4171_v27, %v2326_v14 }
0x1886   :  { %v2336_v37 = vadd.f32 %v4172_v26, %v2331_v35 }
0x1888   :  { %v2341_v38 = vpack.c.bf16 %v2336_v37, %v2335_v20 }
0x188a   :  { %3877 = vmatmul.msk.bf16.vlgmr.msra.gmra.mxu0 %vm529_vm0, %v2341_v38 }
0x1907   :  { %v2370_v42 = vpop.f32.mrf.mxu0 }
0x1908   :  { %v2371_v43 = vadd.f32 %v4173_v28, %v2370_v42 }
0x190a   :  { %v2375_v48 = vmax.f32 %v2371_v43, 0.0  ;;  %v4177_v43 = vld [vmem:[#allocation20 + $0x1] ss:$0 sm:$0xff] }
0x190f   :  { %v2372_v44 = vpop.f32.mrf.mxu0 }
0x1910   :  { %v2373_v47 = vadd.f32 %v4173_v28, %v2372_v44 }
0x1912   :  { %v2376_v49 = vmax.f32 %v2373_v47, 0.0 }
0x1914   :  { %v2385_v50 = vpack.c.bf16 %v2376_v49, %v2375_v48 }
0x1916   :  { %3894 = vmatmul.msk.bf16.vlgmr.msrb.gmra.mxu1 %vm1087_vm11, %v2385_v50 }
0x1993   :  { %v2426_v52 = vpop.f32.mrf.mxu1 }
0x1994   :  { %v2427_v53 = vadd.f32 %v4174_v51, %v2426_v52 }
0x1996   :  { %v2431_v54 = vadd.f32 %v2427_v53, %v2335_v20 }
0x1998   :  { %v2435_v55 = vsel %vm529_vm0, %v2431_v54, 0.0 }
0x1999   :  { %2436 = vadd.xlane.f32.xlu0 %v2435_v55 }
0x199b   :  { %v2428_v56 = vpop.f32.mrf.mxu1 }
0x199c   :  { %v2429_v57 = vadd.f32 %v4174_v51, %v2428_v56 }
0x199e   :  { %v2432_v58 = vadd.f32 %v2429_v57, %v2336_v37  ;;  %v4176_v37 = vld [vmem:[#allocation27] ss:$0 sm:$0xff] }
0x19a0   :  { %v2438_v23 = vsel %vm529_vm0, %v2432_v58, 0.0 }
0x19a1   :  { %2439 = vadd.xlane.f32.xlu1 %v2438_v23 }
0x1a0c   :  { %v2437_v61 = vpop.xlane.xlu0 %2436 }
0x1a0d   :  { %v2441_v6 = vmul.f32 %v2437_v61, %v5469_v3 }
0x1a0f   :  { %v2443_v62 = vsub.f32 %v2431_v54, %v2441_v6 }
0x1a11   :  { %v2445_v63 = vmul.f32 %v2443_v62, %v2443_v62 }
0x1a13   :  { %v2447_v0 = vsel %vm529_vm0, %v2445_v63, 0.0 }
0x1a14   :  { %v2440_v7 = vpop.xlane.xlu1 %2439  ;;  %2448 = vadd.xlane.f32.xlu2 %v2447_v0 }
0x1a15   :  { %v2442_v1 = vmul.f32 %v2440_v7, %v5469_v3 }
0x1a17   :  { %v2444_v2 = vsub.f32 %v2432_v58, %v2442_v1 }
0x1a19   :  { %v2446_v4 = vmul.f32 %v2444_v2, %v2444_v2 }
0x1a1b   :  { %v2450_v9 = vsel %vm529_vm0, %v2446_v4, 0.0 }
0x1a1c   :  { %2451 = vadd.xlane.f32.xlu0 %v2450_v9 }
0x1a87   :  { %v2449_v18 = vpop.xlane.xlu2 %2448 }
0x1a88   :  { %v2453_v10 = vmul.f32 %v2449_v18, %v5469_v3 }
0x1a8a   :  { %v2455_v5 = vadd.f32 1e-05, %v2453_v10 }
0x1a8c   :  { %4307 = vrsqrt.f32 %v2455_v5  ;;  %vm2463_vm15 = vweird.f32 %v2455_v5 }
0x1a8f   :  { %v2452_v11 = vpop.xlane.xlu0 %2451 }
0x1a90   :  { %v2454_v12 = vmul.f32 %v2452_v11, %v5469_v3 }
0x1a92   :  { %v4308_v59 = vpop.eup %4307  ;;  %v2456_v13 = vadd.f32 1e-05, %v2454_v12 }
0x1a93   :  { %v2458_v15 = vmul.f32 %v4308_v59, %v2455_v5  ;;  %vm2464_vm14 = vweird.f32 %v4308_v59 }
0x1a94   :  { %4309 = vrsqrt.f32 %v2456_v13  ;;  %vm2465_vm3 = vmor %vm2463_vm15, %vm2464_vm14  ;;  %vm2473_vm5 = vweird.f32 %v2456_v13 }
0x1a95   :  { %v2459_v16 = vmul.f32 %v4308_v59, %v2458_v15 }
0x1a97   :  { %v2460_v17 = vmul.f32 0.5, %v2459_v16 }
0x1a99   :  { %v2461_v19 = vsub.f32 1.5, %v2460_v17 }
0x1a9a   :  { %v4310_v22 = vpop.eup %4309 }
0x1a9b   :  { %v2462_v25 = vmul.f32 %v4308_v59, %v2461_v19  ;;  %v2468_v27 = vmul.f32 %v4310_v22, %v2456_v13  ;;  %vm2474_vm7 = vweird.f32 %v4310_v22 }
0x1a9c   :  { %vm2475_vm6 = vmor %vm2473_vm5, %vm2474_vm7 }
0x1a9d   :  { %v2469_v29 = vmul.f32 %v4310_v22, %v2468_v27  ;;  %v2466_v31 = vsel %vm2465_vm3, %v4308_v59, %v2462_v25 }
0x1a9e   :  { %v2477_v14 = vmul.f32 %v2466_v31, %v2443_v62 }
0x1a9f   :  { %v2470_v32 = vmul.f32 0.5, %v2469_v29 }
0x1aa0   :  { %v2482_v38 = vmul.f32 %v4175_v34, %v2477_v14 }
0x1aa1   :  { %v2471_v26 = vsub.f32 1.5, %v2470_v32 }
0x1aa2   :  { %v5735_v21 = vadd.f32 %v4176_v37, %v2482_v38 }
0x1aa3   :  { %v2472_v35 = vmul.f32 %v4310_v22, %v2471_v26 }
0x1aa5   :  { %v2476_v20 = vsel %vm2475_vm6, %v4310_v22, %v2472_v35 }
0x1aa6   :  { %v2478_v39 = vmul.f32 %v2476_v20, %v2444_v2 }
0x1aa8   :  { %v2483_v40 = vmul.f32 %v4175_v34, %v2478_v39 }
0x1aaa   :  { %v5737_v41 = vadd.f32 %v4176_v37, %v2483_v40 }
0x1aac   :  { %v2494_v42 = vpack.c.bf16 %v5737_v41, %v5735_v21 }
0x1aae   :  { %3907 = vmatmul.msk.bf16.vlgmr.msrb.gmra.mxu2 %vm529_vm0, %v2494_v42 }
0x1b31   :  { %v2524_v28 = vpop.f32.mrf.mxu2 }
0x1b32   :  { %v2525_v47 = vadd.f32 %v4177_v43, %v2524_v28 }
0x1b39   :  { %v2526_v44 = vpop.f32.mrf.mxu2 }
0x1b3a   :  { %v2527_v48 = vadd.f32 %v4177_v43, %v2526_v44 }
0x1b3c   :  { %v4147_v49 = vpack.i.bf16 %v2527_v48, %v2525_v47  ;;  %v5742_v50 = vpack.c.bf16 %v2527_v48, %v2525_v47 }
0x1b3e   :  { %4148 = vrot.lane.b32.xlu1 %v4147_v49, %s4973_s26  ;;  %2649 = vrot.lane.b32.xlu2 %v5742_v50, %s4975_s19 }
0x1b46   :  { %2729 = vrot.lane.b32.xlu1 %v5742_v50, %s4976_s14  ;;  %2809 = vrot.lane.b32.xlu2 %v5742_v50, %s4977_s16 }
0x1b98   :  { %v2650_v61 = vpop.permute.xlu2 %2649 }
0x1ba0   :  { %v2810_v4 = vpop.permute.xlu2 %2809 }
0x1bb0   :  { %v4149_v51 = vpop.permute.xlu1 %4148 }
0x1bb1   :  { %v4150_v52 = vunpack.i.l.bf16 %v4149_v51  ;;  %v4151_v53 = vunpack.i.h.bf16 %v4149_v51 }
0x1bb3   :  { %2544 = vxpose.xlu0.b32.start [1/2] (short) (narrow) %v4150_v52, 32 }
0x1bb8   :  { %v2730_v0 = vpop.permute.xlu1 %2729 }
0x1bbb   :  { %2545 = vxpose.xlu0.b32.end [2/2] (short) (narrow) %v4151_v53, 32 }
0x1c57   :  { %v2560_v54 = vpop.trf.xlu0 }
0x1c58   :  { %v2577_v55 = vpack.c.bf16 %v2560_v54, %v2560_v54 }
0x1c5a   :  { %v2582_v56 = vsel %vm598_vm1, %v2577_v55, 0 }
0x1c5b   :  { %2591 = vmatpush.bf16.msrb.mxu3 %v2582_v56 }
0x1c5e   :  { %3912 = vmatmul.msk.bf16.vlgmr.msrb.gmra.mxu3 %vm594_vm2, %v5742_v50 }
0x1c5f   :  { %v2561_v57 = vpop.trf.xlu0 }
0x1c60   :  { %v2648_v58 = vpack.c.bf16 %v2561_v57, %v2561_v57 }
0x1c62   :  { %v2655_v23 = vsel %vm598_vm1, %v2648_v58, 0 }
0x1c63   :  { %2664 = vmatpush.bf16.msra.mxu1 %v2655_v23 }
0x1c66   :  { %3914 = vmatmul.msk.bf16.vlgmr.msra.gmra.mxu1 %vm594_vm2, %v2650_v61 }
0x1c67   :  { %v2562_v6 = vpop.trf.xlu0 }
0x1c68   :  { %v2728_v62 = vpack.c.bf16 %v2562_v6, %v2562_v6 }
0x1c6a   :  { %v2735_v63 = vsel %vm598_vm1, %v2728_v62, 0 }
0x1c6b   :  { %2744 = vmatpush.bf16.msra.mxu3 %v2735_v63 }
0x1c6e   :  { %3916 = vmatmul.msk.bf16.vlgmr.msra.gmra.mxu3 %vm594_vm2, %v2730_v0 }
0x1c6f   :  { %v2563_v7 = vpop.trf.xlu0 }
0x1c70   :  { %v2808_v1 = vpack.c.bf16 %v2563_v7, %v2563_v7 }
0x1c72   :  { %v2815_v2 = vsel %vm598_vm1, %v2808_v1, 0 }
0x1c73   :  { %2824 = vmatpush.bf16.msrb.mxu1 %v2815_v2 }
0x1c76   :  { %3918 = vmatmul.msk.bf16.vlgmr.msrb.gmra.mxu1 %vm594_vm2, %v2810_v4 }
0x1ce1   :  { %v2593_v9 = vpop.f32.mrf.mxu3 }
0x1ce2   :  { %v2598_v60 = vmul.f32 0.35355338, %v2593_v9 }
0x1ce3   :  { %v2666_v18 = vpop.f32.mrf.mxu1 }
0x1ce4   :  { %v2671_v10 = vmul.f32 0.35355338, %v2666_v18  ;;  %v2600_v5 = vadd.f32 %v2598_v60, %v5637_v33 }
0x1ce6   :  { %v2602_v8 = vsel %vm620_vm4, %v2600_v5, -inf  ;;  %v2673_v11 = vadd.f32 %v2671_v10, %v5637_v33 }
0x1ce7   :  { %2603 = vmax.xlane.f32.xlu0 %v2602_v8 }
0x1ce8   :  { %v2675_v12 = vsel %vm620_vm4, %v2673_v11, -inf }
0x1ce9   :  { %2676 = vmax.xlane.f32.xlu1 %v2675_v12  ;;  %v2595_v59 = vpop.f32.mrf.mxu3 }
0x1cea   :  { %v2599_v13 = vmul.f32 0.35355338, %v2595_v59 }
0x1ceb   :  { %v2668_v15 = vpop.f32.mrf.mxu1 }
0x1cec   :  { %v2672_v16 = vmul.f32 0.35355338, %v2668_v15  ;;  %v2601_v17 = vadd.f32 %v2599_v13, %v5645_v36 }
0x1cee   :  { %v2674_v19 = vadd.f32 %v2672_v16, %v5645_v36  ;;  %v2605_v25 = vsel %vm620_vm4, %v2601_v17, -inf }
0x1cf0   :  { %v2678_v22 = vsel %vm620_vm4, %v2674_v19, -inf }
0x1cf1   :  { %2679 = vmax.xlane.f32.xlu2 %v2678_v22  ;;  %v2746_v27 = vpop.f32.mrf.mxu3  ;;  %2606 = vmax.xlane.f32.xlu1 %v2605_v25 }
0x1cf2   :  { %v2751_v29 = vmul.f32 0.35355338, %v2746_v27 }
0x1cf3   :  { %v2826_v32 = vpop.f32.mrf.mxu1 }
0x1cf4   :  { %v2753_v31 = vadd.f32 %v2751_v29, %v5637_v33  ;;  %v2831_v26 = vmul.f32 0.35355338, %v2826_v32 }
0x1cf6   :  { %v2755_v34 = vsel %vm620_vm4, %v2753_v31, -inf  ;;  %v2833_v14 = vadd.f32 %v2831_v26, %v5637_v33 }
0x1cf8   :  { %v2835_v35 = vsel %vm620_vm4, %v2833_v14, -inf }
0x1cf9   :  { %2756 = vmax.xlane.f32.xlu2 %v2755_v34  ;;  %v2748_v20 = vpop.f32.mrf.mxu3 }
0x1cfa   :  { %v2752_v37 = vmul.f32 0.35355338, %v2748_v20 }
0x1cfb   :  { %2778 = vrot.lane.b32.xlu0 %v5742_v50, %s4980_s22  ;;  %v2828_v39 = vpop.f32.mrf.mxu1 }
0x1cfc   :  { %v2754_v38 = vadd.f32 %v2752_v37, %v5645_v36  ;;  %v2832_v40 = vmul.f32 0.35355338, %v2828_v39 }
0x1cfe   :  { %v2758_v42 = vsel %vm620_vm4, %v2754_v38, -inf  ;;  %v2834_v33 = vadd.f32 %v2832_v40, %v5645_v36 }
0x1d00   :  { %v2838_v28 = vsel %vm620_vm4, %v2834_v33, -inf }
0x1d01   :  { %2836 = vmax.xlane.f32.xlu2 %v2835_v35 }
0x1d0a   :  { %2626 = vrot.lane.b32.xlu1 %v5742_v50, %s4960_s10  ;;  %s5997_s10 = sld [smem:[#allocation62_spill]] }
0x1d19   :  { %2698 = vrot.lane.b32.xlu2 %v5742_v50, %s4978_s5 }
0x1d34   :  { %2759 = vmax.xlane.f32.xlu1 %v2758_v42 }
0x1d3c   :  { %2839 = vmax.xlane.f32.xlu1 %v2838_v28 }
0x1d5a   :  { %v2604_v43 = vpop.xlane.xlu0 %2603 }
0x1d5b   :  { %v2608_v44 = vsub.f32 %v2600_v5, %v2604_v43 }
0x1d5c   :  { %v2677_v47 = vpop.xlane.xlu1 %2676 }
0x1d5d   :  { %v2610_v48 = vmul.f32 1.442695, %v2608_v44  ;;  %v2681_v49 = vsub.f32 %v2673_v11, %v2677_v47 }
0x1d5f   :  { %4311 = vpow2.f32 %v2610_v48  ;;  %v2683_v51 = vmul.f32 1.442695, %v2681_v49 }
0x1d61   :  { %4313 = vpow2.f32 %v2683_v51 }
0x1d64   :  { %v2680_v52 = vpop.xlane.xlu2 %2679  ;;  %v2607_v53 = vpop.xlane.xlu1 %2606 }
0x1d65   :  { %v4312_v54 = vpop.eup %4311  ;;  %v2609_v55 = vsub.f32 %v2601_v17, %v2607_v53  ;;  %v2682_v36 = vsub.f32 %v2674_v19, %v2680_v52 }
0x1d66   :  { %v2614_v56 = vsel %vm620_vm4, %v4312_v54, 0.0 }
0x1d67   :  { %v2612_v57 = vmul.f32 1.442695, %v2609_v55  ;;  %2615 = vadd.xlane.f32.xlu2 %v2614_v56  ;;  %v4314_v58 = vpop.eup %4313  ;;  %v2685_v23 = vmul.f32 1.442695, %v2682_v36 }
0x1d68   :  { %v2687_v62 = vsel %vm620_vm4, %v4314_v58, 0.0 }
0x1d69   :  { %4315 = vpow2.f32 %v2612_v57 }
0x1d6a   :  { %4317 = vpow2.f32 %v2685_v23 }
0x1d6c   :  { %v2757_v61 = vpop.xlane.xlu2 %2756 }
0x1d6d   :  { %v2761_v6 = vsub.f32 %v2753_v31, %v2757_v61  ;;  %v2779_v11 = vpop.permute.xlu0 %2778 }
0x1d6f   :  { %v2763_v63 = vmul.f32 1.442695, %v2761_v6  ;;  %2688 = vadd.xlane.f32.xlu2 %v2687_v62  ;;  %v4316_v0 = vpop.eup %4315 }
0x1d70   :  { %v2617_v7 = vsel %vm620_vm4, %v4316_v0, 0.0  ;;  %v4318_v4 = vpop.eup %4317 }
0x1d71   :  { %4319 = vpow2.f32 %v2763_v63  ;;  %2618 = vadd.xlane.f32.xlu1 %v2617_v7  ;;  %v2690_v10 = vsel %vm620_vm4, %v4318_v4, 0.0 }
0x1d74   :  { %v2837_v1 = vpop.xlane.xlu2 %2836 }
0x1d75   :  { %v2841_v2 = vsub.f32 %v2833_v14, %v2837_v1 }
0x1d77   :  { %v4320_v9 = vpop.eup %4319  ;;  %v2843_v60 = vmul.f32 1.442695, %v2841_v2 }
0x1d78   :  { %v2767_v18 = vsel %vm620_vm4, %v4320_v9, 0.0 }
0x1d79   :  { %4321 = vpow2.f32 %v2843_v60  ;;  %2768 = vadd.xlane.f32.xlu2 %v2767_v18  ;;  %2691 = vadd.xlane.f32.xlu1 %v2690_v10  ;;  %v4045_v10 = vld [vmem:[%s5992_s7 + $0x18] sm:$0xff] }
0x1d7a   :  { %2915 = vmatpush.bf16.msrb.mxu3 %v4045_v10 }
0x1d7c   :  { %v2699_v5 = vpop.permute.xlu2 %2698  ;;  %v2627_v8 = vpop.permute.xlu1 %2626 }
0x1d7d   :  { %2639 = vmatpush.bf16.msrb.mxu0 %v2627_v8  ;;  %2711 = vmatpush.bf16.msra.mxu2 %v2699_v5  ;;  %v4044_v8 = vld [vmem:[%s5992_s7 + $0x10] sm:$0xff] }
0x1d7e   :  { %2916 = vmatpush.bf16.msrb.mxu3 %v4044_v8  ;;  %v4051_v8 = vld [vmem:[%s5993_s4 + $0x38] sm:$0xff] }
0x1d7f   :  { %v4322_v12 = vpop.eup %4321  ;;  %3071 = vmatpush.bf16.msra.mxu1 %v4051_v8 }
0x1d80   :  { %v2847_v59 = vsel %vm620_vm4, %v4322_v12, 0.0 }
0x1d81   :  { %2791 = vmatpush.bf16.msra.mxu0 %v2779_v11  ;;  %2848 = vadd.xlane.f32.xlu2 %v2847_v59  ;;  %v4055_v11 = vld [vmem:[#allocation30 + $0x8] sm:$0xff] }
0x1d82   :  { %3209 = vmatpush.bf16.msra.mxu3 %v4055_v11  ;;  %v4050_v11 = vld [vmem:[%s5993_s4 + $0x30] sm:$0xff] }
0x1d83   :  { %3072 = vmatpush.bf16.msra.mxu1 %v4050_v11 }
0x1da7   :  { %v2760_v13 = vpop.xlane.xlu1 %2759 }
0x1da8   :  { %v2762_v15 = vsub.f32 %v2754_v38, %v2760_v13 }
0x1daa   :  { %v2765_v16 = vmul.f32 1.442695, %v2762_v15 }
0x1dac   :  { %4323 = vpow2.f32 %v2765_v16 }
0x1daf   :  { %v2840_v17 = vpop.xlane.xlu1 %2839 }
0x1db0   :  { %v2842_v19 = vsub.f32 %v2834_v33, %v2840_v17  ;;  %v4169_v17 = vld [vmem:[%s5997_s10] ss:$0 sm:$0xff] }
0x1db2   :  { %v4324_v22 = vpop.eup %4323  ;;  %v2845_v25 = vmul.f32 1.442695, %v2842_v19  ;;  %v1851_v19 = vadd.f32 %v4169_v17, %v5660_v46 }
0x1db3   :  { %v2770_v27 = vsel %vm620_vm4, %v4324_v22, 0.0 }
0x1db4   :  { %4325 = vpow2.f32 %v2845_v25  ;;  %2771 = vadd.xlane.f32.xlu2 %v2770_v27  ;;  %v4178_v27 = vld [vmem:[#allocation21 + $0x1] ss:$0 sm:$0xff] }
0x1dba   :  { %v4326_v29 = vpop.eup %4325 }
0x1dbb   :  { %v2850_v31 = vsel %vm620_vm4, %v4326_v29, 0.0 }
0x1dbc   :  { %2851 = vadd.xlane.f32.xlu1 %v2850_v31 }
0x1dd5   :  { %2858 = vrot.lane.b32.xlu1 %v5742_v50, %s4979_s28 }
0x1dda   :  { %v2616_v32 = vpop.xlane.xlu2 %2615 }
0x1ddb   :  { %4327 = vrcp.f32 %v2616_v32 }
0x1de1   :  { %v4328_v14 = vpop.eup %4327 }
0x1de2   :  { %v2689_v34 = vpop.xlane.xlu2 %2688  ;;  %v2622_v20 = vmul.f32 %v4328_v14, %v4312_v54 }
0x1de4   :  { %v2619_v26 = vpop.xlane.xlu1 %2618 }
0x1de5   :  { %4329 = vrcp.f32 %v2619_v26 }
0x1de6   :  { %4331 = vrcp.f32 %v2689_v34 }
0x1deb   :  { %v4330_v35 = vpop.eup %4329 }
0x1dec   :  { %v2623_v37 = vmul.f32 %v4330_v35, %v4316_v0  ;;  %v2692_v38 = vpop.xlane.xlu1 %2691  ;;  %v4332_v40 = vpop.eup %4331 }
0x1ded   :  { %4333 = vrcp.f32 %v2692_v38  ;;  %v2695_v33 = vmul.f32 %v4332_v40, %v4314_v58  ;;  %v2769_v43 = vpop.xlane.xlu2 %2768 }
0x1dee   :  { %v2624_v39 = vpack.c.bf16 %v2623_v37, %v2622_v20  ;;  %4335 = vrcp.f32 %v2769_v43 }
0x1df0   :  { %3913 = vmatmul.msk.bf16.vlgmr.msrb.gmra.mxu0 %vm620_vm4, %v2624_v39 }
0x1df3   :  { %v4334_v42 = vpop.eup %4333 }
0x1df4   :  { %v2696_v28 = vmul.f32 %v4334_v42, %v4318_v4  ;;  %v4336_v48 = vpop.eup %4335 }
0x1df5   :  { %v2849_v44 = vpop.xlane.xlu2 %2848  ;;  %v2775_v51 = vmul.f32 %v4336_v48, %v4320_v9 }
0x1df6   :  { %v2697_v50 = vpack.c.bf16 %v2696_v28, %v2695_v33 }
0x1df8   :  { %3915 = vmatmul.msk.bf16.vlgmr.msra.gmra.mxu2 %vm620_vm4, %v2697_v50 }
0x1e27   :  { %v2772_v47 = vpop.xlane.xlu2 %2771 }
0x1e28   :  { %4337 = vrcp.f32 %v2772_v47  ;;  %v4046_v47 = vld [vmem:[#allocation26 + $0x10] sm:$0xff] }
0x1e2e   :  { %v4338_v49 = vpop.eup %4337 }
0x1e2f   :  { %v2776_v52 = vmul.f32 %v4338_v49, %v4324_v22  ;;  %v2852_v54 = vpop.xlane.xlu1 %2851  ;;  %v1849_v22 = vadd.f32 %v4169_v17, %v5658_v45 }
0x1e30   :  { %4339 = vrcp.f32 %v2852_v54 }
0x1e31   :  { %v2777_v53 = vpack.c.bf16 %v2776_v52, %v2775_v51  ;;  %4341 = vrcp.f32 %v2849_v44  ;;  %v3183_v25 = vpack.c.bf16 %v1851_v19, %v1849_v22 }
0x1e33   :  { %3917 = vmatmul.msk.bf16.vlgmr.msra.gmra.mxu0 %vm620_vm4, %v2777_v53 }
0x1e36   :  { %v4340_v55 = vpop.eup %4339 }
0x1e37   :  { %v4342_v56 = vpop.eup %4341  ;;  %v2856_v57 = vmul.f32 %v4340_v55, %v4326_v29 }
0x1e38   :  { %v2855_v36 = vmul.f32 %v4342_v56, %v4322_v12  ;;  %v4054_v12 = vld [vmem:[#allocation30] sm:$0xff] }
0x1e39   :  { %3210 = vmatpush.bf16.msra.mxu3 %v4054_v12  ;;  %v4049_v12 = vld [vmem:[%s5993_s4 + $0x28] sm:$0xff] }
0x1e3a   :  { %v2857_v23 = vpack.c.bf16 %v2856_v57, %v2855_v36  ;;  %3073 = vmatpush.bf16.msra.mxu1 %v4049_v12 }
0x1e47   :  { %v2859_v58 = vpop.permute.xlu1 %2858 }
0x1e48   :  { %2871 = vmatpush.bf16.msrb.mxu2 %v2859_v58 }
0x1e4b   :  { %3919 = vmatmul.msk.bf16.vlgmr.msrb.gmra.mxu2 %vm620_vm4, %v2857_v23 }
0x1e6d   :  { %v2641_v61 = vpop.f32.mrf.mxu0 }
0x1e6e   :  { %2646 = vst.msk [vmem:[#allocation2] sm:$0xff] %vm594_vm2, %v2641_v61 }
0x1e75   :  { %v2643_v6 = vpop.f32.mrf.mxu0 }
0x1e76   :  { %2647 = vst.msk [vmem:[#allocation2 + $0x8] sm:$0xff] %vm594_vm2, %v2643_v6 }
0x1e7b   :  { %v2713_v62 = vpop.f32.mrf.mxu2 }
0x1e7c   :  { %2720 = vrot.lane.b32.xlu2 %v2713_v62, %s4949_s15 }
0x1e83   :  { %v2715_v63 = vpop.f32.mrf.mxu2 }
0x1e84   :  { %2722 = vrot.lane.b32.xlu0 %v2715_v63, %s4949_s15  ;;  %v4180_v63 = vld [vmem:[#allocation23 + $0x1] ss:$0 sm:$0xff] }
0x1eb0   :  { %v2793_v0 = vpop.f32.mrf.mxu0 }
0x1eb1   :  { %2800 = vrot.lane.b32.xlu1 %v2793_v0, %s4951_s2 }
0x1eb8   :  { %v2795_v7 = vpop.f32.mrf.mxu0 }
0x1eb9   :  { %2802 = vrot.lane.b32.xlu0 %v2795_v7, %s4951_s2 }
0x1ece   :  { %v2873_v1 = vpop.f32.mrf.mxu2 }
0x1ecf   :  { %2880 = vrot.lane.b32.xlu2 %v2873_v1, %s4981_s6 }
0x1ed6   :  { %v2875_v2 = vpop.f32.mrf.mxu2  ;;  %v2721_v4 = vpop.permute.xlu2 %2720 }
0x1ed7   :  { %2882 = vrot.lane.b32.xlu1 %v2875_v2, %s4981_s6  ;;  %2726 = vst.msk [vmem:[#allocation2] sm:$0xff] %vm745_vm8, %v2721_v4  ;;  %v4181_v2 = vld [vmem:[#allocation24 + $0x1] ss:$0 sm:$0xff] }
0x1ef6   :  { %v2723_v9 = vpop.permute.xlu0 %2722 }
0x1ef7   :  { %2727 = vst.msk [vmem:[#allocation2 + $0x8] sm:$0xff] %vm745_vm8, %v2723_v9 }
0x1f23   :  { %v2801_v60 = vpop.permute.xlu1 %2800 }
0x1f24   :  { %2806 = vst.msk [vmem:[#allocation2] sm:$0xff] %vm826_vm9, %v2801_v60 }
0x1f29   :  { %v2881_v18 = vpop.permute.xlu2 %2880 }
0x1f2a   :  { %2886 = vst.msk [vmem:[#allocation2] sm:$0xff] %vm907_vm10, %v2881_v18 }
0x1f2b   :  { %v2803_v5 = vpop.permute.xlu0 %2802 }
0x1f2c   :  { %2807 = vst.msk [vmem:[#allocation2 + $0x8] sm:$0xff] %vm826_vm9, %v2803_v5 }
0x1f31   :  { %v2888_v13 = vld [vmem:[#allocation2] sm:$0xff] }
0x1f49   :  { %v2883_v59 = vpop.permute.xlu1 %2882 }
0x1f4a   :  { %2887 = vst.msk [vmem:[#allocation2 + $0x8] sm:$0xff] %vm907_vm10, %v2883_v59  ;;  %v4048_v59 = vld [vmem:[%s5993_s4 + $0x20] sm:$0xff] }
0x1f4b   :  { %3074 = vmatpush.bf16.msra.mxu1 %v4048_v59 }
0x1f51   :  { %v2889_v15 = vld [vmem:[#allocation2 + $0x8] sm:$0xff] }
0x1f52   :  { %v2890_v16 = vpack.c.bf16 %v2889_v15, %v2888_v13  ;;  %v4182_v15 = vld [vmem:[%s5994_s25 + $0x1] ss:$0 sm:$0xff] }
0x1f54   :  { %3928 = vmatmul.msk.bf16.vlgmr.msrb.gmra.mxu3 %vm529_vm0, %v2890_v16 }
0x1f64   :  { %3983 = vmatmul.msk.bf16.vlgmr.msra.gmra.mxu3 %vm529_vm0, %v3183_v25 }
0x1fd7   :  { %v2918_v29 = vpop.f32.mrf.mxu3 }
0x1fd8   :  { %v2919_v31 = vadd.f32 %v4178_v27, %v2918_v29  ;;  %v4183_v29 = vld [vmem:[%s5995_s24 + $0x1] ss:$0 sm:$0xff] }
0x1fda   :  { %v2923_v32 = vadd.f32 %v2919_v31, %v5735_v21 }
0x1fdc   :  { %v2929_v26 = vsel %vm529_vm0, %v2923_v32, 0.0 }
0x1fdd   :  { %2930 = vadd.xlane.f32.xlu0 %v2929_v26 }
0x1fdf   :  { %v2920_v34 = vpop.f32.mrf.mxu3 }
0x1fe0   :  { %v2921_v14 = vadd.f32 %v4178_v27, %v2920_v34 }
0x1fe2   :  { %v2924_v35 = vadd.f32 %v2921_v14, %v5737_v41  ;;  %v4047_v41 = vld [vmem:[#allocation26 + $0x18] sm:$0xff] }
0x1fe3   :  { %3015 = vmatpush.bf16.msrb.mxu0 %v4047_v41 }
0x1fe4   :  { %v2932_v20 = vsel %vm529_vm0, %v2924_v35, 0.0 }
0x1fe5   :  { %2933 = vadd.xlane.f32.xlu2 %v2932_v20 }
0x1fe7   :  { %3016 = vmatpush.bf16.msrb.mxu0 %v4046_v47 }
0x2050   :  { %v2931_v46 = vpop.xlane.xlu0 %2930 }
0x2051   :  { %v2935_v45 = vmul.f32 %v2931_v46, %v5469_v3 }
0x2053   :  { %v2937_v37 = vsub.f32 %v2923_v32, %v2935_v45 }
0x2055   :  { %v2939_v38 = vmul.f32 %v2937_v37, %v2937_v37 }
0x2057   :  { %v2941_v39 = vsel %vm529_vm0, %v2939_v38, 0.0 }
0x2058   :  { %v2934_v40 = vpop.xlane.xlu2 %2933  ;;  %2942 = vadd.xlane.f32.xlu1 %v2941_v39 }
0x2059   :  { %v2936_v21 = vmul.f32 %v2934_v40, %v5469_v3 }
0x205b   :  { %v2938_v42 = vsub.f32 %v2924_v35, %v2936_v21 }
0x205d   :  { %v2940_v33 = vmul.f32 %v2938_v42, %v2938_v42 }
0x205f   :  { %v2944_v28 = vsel %vm529_vm0, %v2940_v33, 0.0 }
0x2060   :  { %2945 = vadd.xlane.f32.xlu0 %v2944_v28 }
0x20cb   :  { %v2943_v50 = vpop.xlane.xlu1 %2942 }
0x20cc   :  { %v2947_v43 = vmul.f32 %v2943_v50, %v5469_v3  ;;  %v3212_v50 = vpop.f32.mrf.mxu3 }
0x20ce   :  { %v2949_v44 = vadd.f32 1e-05, %v2947_v43  ;;  %v4179_v43 = vld [vmem:[%s5998_s21] ss:$0 sm:$0xff] }
0x20d0   :  { %4343 = vrsqrt.f32 %v2949_v44  ;;  %vm2957_vm13 = vweird.f32 %v2949_v44 }
0x20d3   :  { %v2946_v48 = vpop.xlane.xlu0 %2945 }
0x20d4   :  { %v2948_v49 = vmul.f32 %v2946_v48, %v5469_v3  ;;  %v3214_v47 = vpop.f32.mrf.mxu3 }
0x20d5   :  { %v5845_v48 = vadd.f32 %v4179_v43, %v3214_v47 }
0x20d6   :  { %v4344_v51 = vpop.eup %4343  ;;  %v2950_v52 = vadd.f32 1e-05, %v2948_v49  ;;  %v4053_v49 = vld [vmem:[#allocation29 + $0x8] sm:$0xff] }
0x20d7   :  { %v2952_v53 = vmul.f32 %v4344_v51, %v2949_v44  ;;  %vm2958_vm12 = vweird.f32 %v4344_v51  ;;  %v5842_v44 = vadd.f32 %v4179_v43, %v3212_v50  ;;  %3171 = vmatpush.bf16.msra.mxu2 %v4053_v49 }
0x20d8   :  { %4345 = vrsqrt.f32 %v2950_v52  ;;  %vm2959_vm14 = vmor %vm2957_vm13, %vm2958_vm12  ;;  %vm2967_vm3 = vweird.f32 %v2950_v52 }
0x20d9   :  { %v2953_v54 = vmul.f32 %v4344_v51, %v2952_v53  ;;  %v5876_v49 = vpack.c.bf16 %v5845_v48, %v5842_v44 }
0x20db   :  { %v2954_v55 = vmul.f32 0.5, %v2953_v54  ;;  %v4052_v54 = vld [vmem:[#allocation29] sm:$0xff] }
0x20dc   :  { %3172 = vmatpush.bf16.msra.mxu2 %v4052_v54 }
0x20dd   :  { %v2955_v56 = vsub.f32 1.5, %v2954_v55 }
0x20de   :  { %v4346_v57 = vpop.eup %4345 }
0x20df   :  { %v2956_v36 = vmul.f32 %v4344_v51, %v2955_v56  ;;  %v2962_v58 = vmul.f32 %v4346_v57, %v2950_v52  ;;  %vm2968_vm15 = vweird.f32 %v4346_v57 }
0x20e0   :  { %vm2969_vm7 = vmor %vm2967_vm3, %vm2968_vm15 }
0x20e1   :  { %v2963_v23 = vmul.f32 %v4346_v57, %v2962_v58  ;;  %v2960_v61 = vsel %vm2959_vm14, %v4344_v51, %v2956_v36 }
0x20e2   :  { %v2971_v0 = vmul.f32 %v2960_v61, %v2937_v37 }
0x20e3   :  { %v2964_v6 = vmul.f32 0.5, %v2963_v23 }
0x20e4   :  { %v2976_v4 = vmul.f32 %v4180_v63, %v2971_v0 }
0x20e5   :  { %v2965_v62 = vsub.f32 1.5, %v2964_v6 }
0x20e6   :  { %v2981_v18 = vadd.f32 %v4181_v2, %v2976_v4 }
0x20e7   :  { %v2966_v7 = vmul.f32 %v4346_v57, %v2965_v62 }
0x20e9   :  { %v2970_v1 = vsel %vm2969_vm7, %v4346_v57, %v2966_v7 }
0x20ea   :  { %v2972_v9 = vmul.f32 %v2970_v1, %v2938_v42 }
0x20ec   :  { %v2977_v60 = vmul.f32 %v4180_v63, %v2972_v9 }
0x20ee   :  { %v2982_v10 = vadd.f32 %v4181_v2, %v2977_v60 }
0x20f0   :  { %v2988_v5 = vpack.c.bf16 %v2982_v10, %v2981_v18 }
0x20f2   :  { %3938 = vmatmul.msk.bf16.vlgmr.msrb.gmra.mxu0 %vm529_vm0, %v2988_v5 }
0x216f   :  { %v3018_v13 = vpop.f32.mrf.mxu0 }
0x2170   :  { %v3019_v16 = vadd.f32 %v4182_v15, %v3018_v13 }
0x2172   :  { %v3023_v22 = vmax.f32 %v3019_v16, 0.0 }
0x2177   :  { %v3020_v17 = vpop.f32.mrf.mxu0 }
0x2178   :  { %v3021_v19 = vadd.f32 %v4182_v15, %v3020_v17 }
0x217a   :  { %v3024_v25 = vmax.f32 %v3021_v19, 0.0 }
0x217c   :  { %v3034_v27 = vpack.c.bf16 %v3024_v25, %v3023_v22  ;;  %v4186_v22 = vld [vmem:[%s5999_s23] ss:$0 sm:$0xff] }
0x217e   :  { %3964 = vmatmul.msk.bf16.vlgmr.msra.gmra.mxu1 %vm1087_vm11, %v3034_v27 }
0x21fb   :  { %v3076_v31 = vpop.f32.mrf.mxu1 }
0x21fc   :  { %v3077_v32 = vadd.f32 %v4183_v29, %v3076_v31 }
0x21fe   :  { %v3081_v26 = vadd.f32 %v3077_v32, %v2981_v18 }
0x2200   :  { %v3087_v34 = vsel %vm529_vm0, %v3081_v26, 0.0 }
0x2201   :  { %3088 = vadd.xlane.f32.xlu2 %v3087_v34 }
0x2203   :  { %v3078_v14 = vpop.f32.mrf.mxu1 }
0x2204   :  { %v3079_v35 = vadd.f32 %v4183_v29, %v3078_v14 }
0x2206   :  { %v3082_v20 = vadd.f32 %v3079_v35, %v2982_v10  ;;  %v4185_v10 = vld [vmem:[#allocation27 + $0x1] ss:$0 sm:$0xff] }
0x2208   :  { %v3090_v46 = vsel %vm529_vm0, %v3082_v20, 0.0 }
0x2209   :  { %3091 = vadd.xlane.f32.xlu1 %v3090_v46 }
0x2274   :  { %v3089_v45 = vpop.xlane.xlu2 %3088 }
0x2275   :  { %v3093_v37 = vmul.f32 %v3089_v45, %v5469_v3 }
0x2277   :  { %v3095_v38 = vsub.f32 %v3081_v26, %v3093_v37 }
0x2279   :  { %v3097_v39 = vmul.f32 %v3095_v38, %v3095_v38 }
0x227b   :  { %v3099_v40 = vsel %vm529_vm0, %v3097_v39, 0.0 }
0x227c   :  { %v3092_v21 = vpop.xlane.xlu1 %3091  ;;  %3100 = vadd.xlane.f32.xlu0 %v3099_v40 }
0x227d   :  { %v3094_v42 = vmul.f32 %v3092_v21, %v5469_v3 }
0x227f   :  { %v3096_v33 = vsub.f32 %v3082_v20, %v3094_v42 }
0x2281   :  { %v3098_v28 = vmul.f32 %v3096_v33, %v3096_v33 }
0x2283   :  { %v3102_v41 = vsel %vm529_vm0, %v3098_v28, 0.0 }
0x2284   :  { %3103 = vadd.xlane.f32.xlu2 %v3102_v41 }
0x22a5   :  { %3222 = vxpose.xlu0.b32.start [1/2] (short) (narrow) %v5842_v44, 32 }
0x22ad   :  { %3223 = vxpose.xlu0.b32.end [2/2] (short) (narrow) %v5845_v48, 32 }
0x22ef   :  { %v3101_v51 = vpop.xlane.xlu0 %3100 }
0x22f0   :  { %v3105_v52 = vmul.f32 %v3101_v51, %v5469_v3 }
0x22f2   :  { %v3107_v53 = vadd.f32 1e-05, %v3105_v52 }
0x22f4   :  { %4347 = vrsqrt.f32 %v3107_v53  ;;  %vm3115_vm5 = vweird.f32 %v3107_v53 }
0x22f7   :  { %v3104_v55 = vpop.xlane.xlu2 %3103 }
0x22f8   :  { %v3106_v56 = vmul.f32 %v3104_v55, %v5469_v3  ;;  %v4184_v3 = vld [vmem:[%s5996_s29 + $0x1] ss:$0 sm:$0xff] }
0x22fa   :  { %v4348_v57 = vpop.eup %4347  ;;  %v3108_v36 = vadd.f32 1e-05, %v3106_v56 }
0x22fb   :  { %v3110_v58 = vmul.f32 %v4348_v57, %v3107_v53  ;;  %vm3116_vm11 = vweird.f32 %v4348_v57 }
0x22fc   :  { %4349 = vrsqrt.f32 %v3108_v36  ;;  %vm3117_vm6 = vmor %vm3115_vm5, %vm3116_vm11  ;;  %vm3125_vm13 = vweird.f32 %v3108_v36 }
0x22fd   :  { %v3111_v23 = vmul.f32 %v4348_v57, %v3110_v58 }
0x22ff   :  { %v3112_v61 = vmul.f32 0.5, %v3111_v23 }
0x2301   :  { %v3113_v6 = vsub.f32 1.5, %v3112_v61 }
0x2302   :  { %v4350_v62 = vpop.eup %4349 }
0x2303   :  { %v3114_v63 = vmul.f32 %v4348_v57, %v3113_v6  ;;  %v3120_v0 = vmul.f32 %v4350_v62, %v3108_v36  ;;  %vm3126_vm12 = vweird.f32 %v4350_v62 }
0x2304   :  { %vm3127_vm14 = vmor %vm3125_vm13, %vm3126_vm12 }
0x2305   :  { %v3121_v7 = vmul.f32 %v4350_v62, %v3120_v0  ;;  %v3118_v1 = vsel %vm3117_vm6, %v4348_v57, %v3114_v63 }
0x2306   :  { %v3129_v9 = vmul.f32 %v3118_v1, %v3095_v38 }
0x2307   :  { %v3122_v2 = vmul.f32 0.5, %v3121_v7 }
0x2308   :  { %v3134_v5 = vmul.f32 %v4184_v3, %v3129_v9 }
0x2309   :  { %v3123_v4 = vsub.f32 1.5, %v3122_v2 }
0x230a   :  { %v5851_v12 = vadd.f32 %v4185_v10, %v3134_v5 }
0x230b   :  { %v3124_v60 = vmul.f32 %v4350_v62, %v3123_v4 }
0x230d   :  { %v3128_v18 = vsel %vm3127_vm14, %v4350_v62, %v3124_v60 }
0x230e   :  { %v3130_v8 = vmul.f32 %v3128_v18, %v3096_v33 }
0x2310   :  { %v3135_v11 = vmul.f32 %v4184_v3, %v3130_v8 }
0x2312   :  { %v5853_v59 = vadd.f32 %v4185_v10, %v3135_v11 }
0x2314   :  { %v3145_v13 = vpack.c.bf16 %v5853_v59, %v5851_v12 }
0x2316   :  { %3974 = vmatmul.msk.bf16.vlgmr.msra.gmra.mxu2 %vm529_vm0, %v3145_v13 }
0x2349   :  { %v3238_v15 = vpop.trf.xlu0 }
0x234a   :  { %v3255_v16 = vpack.c.bf16 %v3238_v15, %v3238_v15 }
0x234c   :  { %v3261_v17 = vsel %vm598_vm1, %v3255_v16, 0 }
0x234d   :  { %3270 = vmatpush.bf16.msra.mxu0 %v3261_v17 }
0x2351   :  { %v3239_v32 = vpop.trf.xlu0 }
0x2352   :  { %v3327_v26 = vpack.c.bf16 %v3239_v32, %v3239_v32 }
0x2354   :  { %v3335_v34 = vsel %vm598_vm1, %v3327_v26, 0 }
0x2355   :  { %3344 = vmatpush.bf16.msrb.mxu2 %v3335_v34 }
0x2359   :  { %v3240_v14 = vpop.trf.xlu0 }
0x235a   :  { %v3408_v35 = vpack.c.bf16 %v3240_v14, %v3240_v14 }
0x235c   :  { %v3415_v20 = vsel %vm598_vm1, %v3408_v35, 0 }
0x235d   :  { %3424 = vmatpush.bf16.msrb.mxu0 %v3415_v20 }
0x2361   :  { %v3241_v46 = vpop.trf.xlu0 }
0x2362   :  { %v3488_v45 = vpack.c.bf16 %v3241_v46, %v3241_v46 }
0x2364   :  { %v3495_v37 = vsel %vm598_vm1, %v3488_v45, 0 }
0x2365   :  { %3504 = vmatpush.bf16.msra.mxu2 %v3495_v37 }
0x2399   :  { %v3174_v19 = vpop.f32.mrf.mxu2 }
0x239a   :  { %v3175_v27 = vadd.f32 %v4186_v22, %v3174_v19 }
0x23a1   :  { %v3176_v25 = vpop.f32.mrf.mxu2 }
0x23a2   :  { %v3177_v29 = vadd.f32 %v4186_v22, %v3176_v25 }
0x23a4   :  { %v3254_v31 = vpack.c.bf16 %v3177_v29, %v3175_v27 }
0x23a6   :  { %3489 = vrot.lane.b32.xlu2 %v3254_v31, %s4977_s16  ;;  %3329 = vrot.lane.b32.xlu1 %v3254_v31, %s4975_s19 }
0x23a7   :  { %3984 = vmatmul.msk.bf16.vlgmr.msra.gmra.mxu0 %vm594_vm2, %v3254_v31 }
0x23ae   :  { %3409 = vrot.lane.b32.xlu1 %v3254_v31, %s4976_s14 }
0x2400   :  { %v3490_v33 = vpop.permute.xlu2 %3489 }
0x2418   :  { %v3330_v38 = vpop.permute.xlu1 %3329 }
0x2419   :  { %3986 = vmatmul.msk.bf16.vlgmr.msrb.gmra.mxu2 %vm594_vm2, %v3330_v38 }
0x2420   :  { %v3410_v39 = vpop.permute.xlu1 %3409 }
0x2421   :  { %3988 = vmatmul.msk.bf16.vlgmr.msrb.gmra.mxu0 %vm594_vm2, %v3410_v39 }
0x2424   :  { %v3272_v40 = vpop.f32.mrf.mxu0 }
0x2425   :  { %v3277_v21 = vmul.f32 0.35355338, %v3272_v40 }
0x2427   :  { %v3279_v42 = vadd.f32 %v3277_v21, %v5387_v24 }
0x2429   :  { %3990 = vmatmul.msk.bf16.vlgmr.msra.gmra.mxu2 %vm594_vm2, %v3490_v33  ;;  %v3281_v28 = vsel %vm620_vm4, %v3279_v42, -inf }
0x242a   :  { %3282 = vmax.xlane.f32.xlu0 %v3281_v28 }
0x242c   :  { %v3274_v41 = vpop.f32.mrf.mxu0 }
0x242d   :  { %v3278_v50 = vmul.f32 0.35355338, %v3274_v41 }
0x242f   :  { %v3280_v43 = vadd.f32 %v3278_v50, %v5400_v30 }
0x2431   :  { %v3284_v47 = vsel %vm620_vm4, %v3280_v43, -inf }
0x2432   :  { %3285 = vmax.xlane.f32.xlu2 %v3284_v47 }
0x243e   :  { %3458 = vrot.lane.b32.xlu0 %v5876_v49, %s4983_s18 }
0x249c   :  { %v3346_v51 = vpop.f32.mrf.mxu2 }
0x249d   :  { %v3351_v52 = vmul.f32 0.35355338, %v3346_v51  ;;  %v3283_v53 = vpop.xlane.xlu0 %3282 }
0x249e   :  { %v3287_v54 = vsub.f32 %v3279_v42, %v3283_v53  ;;  %v3426_v55 = vpop.f32.mrf.mxu0 }
0x249f   :  { %v3353_v56 = vadd.f32 %v3351_v52, %v5387_v24  ;;  %v3431_v57 = vmul.f32 0.35355338, %v3426_v55 }
0x24a0   :  { %v3289_v36 = vmul.f32 1.442695, %v3287_v54 }
0x24a1   :  { %v3433_v58 = vadd.f32 %v3431_v57, %v5387_v24  ;;  %v3355_v23 = vsel %vm620_vm4, %v3353_v56, -inf }
0x24a2   :  { %4351 = vpow2.f32 %v3289_v36  ;;  %3356 = vmax.xlane.f32.xlu2 %v3355_v23 }
0x24a3   :  { %v3435_v44 = vsel %vm620_vm4, %v3433_v58, -inf }
0x24a4   :  { %v3348_v48 = vpop.f32.mrf.mxu2  ;;  %3436 = vmax.xlane.f32.xlu1 %v3435_v44 }
0x24a5   :  { %v3286_v61 = vpop.xlane.xlu2 %3285  ;;  %v3352_v2 = vmul.f32 0.35355338, %v3348_v48 }
0x24a6   :  { %v3288_v6 = vsub.f32 %v3280_v43, %v3286_v61  ;;  %v3428_v62 = vpop.f32.mrf.mxu0 }
0x24a7   :  { %v3432_v63 = vmul.f32 0.35355338, %v3428_v62  ;;  %v3354_v60 = vadd.f32 %v3352_v2, %v5400_v30 }
0x24a8   :  { %v4352_v0 = vpop.eup %4351  ;;  %v3291_v7 = vmul.f32 1.442695, %v3288_v6 }
0x24a9   :  { %v5884_v1 = vadd.f32 %v3432_v63, %v5400_v30  ;;  %v3293_v4 = vsel %vm620_vm4, %v4352_v0, 0.0  ;;  %v3358_v10 = vsel %vm620_vm4, %v3354_v60, -inf }
0x24aa   :  { %4353 = vpow2.f32 %v3291_v7 }
0x24ab   :  { %v3438_v3 = vsel %vm620_vm4, %v5884_v1, -inf }
0x24ac   :  { %v3506_v9 = vpop.f32.mrf.mxu2  ;;  %3294 = vadd.xlane.f32.xlu1 %v3293_v4  ;;  %3439 = vmax.xlane.f32.xlu2 %v3438_v3 }
0x24ad   :  { %v3511_v16 = vmul.f32 0.35355338, %v3506_v9 }
0x24af   :  { %v3513_v17 = vadd.f32 %v3511_v16, %v5387_v24 }
0x24b0   :  { %v4354_v18 = vpop.eup %4353 }
0x24b1   :  { %v3296_v5 = vsel %vm620_vm4, %v4354_v18, 0.0  ;;  %v3515_v19 = vsel %vm620_vm4, %v3513_v17, -inf }
0x24b4   :  { %v3508_v8 = vpop.f32.mrf.mxu2  ;;  %3359 = vmax.xlane.f32.xlu1 %v3358_v10  ;;  %3297 = vadd.xlane.f32.xlu2 %v3296_v5 }
0x24b5   :  { %v3512_v11 = vmul.f32 0.35355338, %v3508_v8 }
0x24b7   :  { %v3514_v13 = vadd.f32 %v3512_v11, %v5400_v30 }
0x24b9   :  { %v3518_v15 = vsel %vm620_vm4, %v3514_v13, -inf }
0x24bc   :  { %3519 = vmax.xlane.f32.xlu2 %v3518_v15 }
0x24cd   :  { %3378 = vrot.lane.b32.xlu1 %v5876_v49, %s4984_s9 }
0x24f7   :  { %3516 = vmax.xlane.f32.xlu1 %v3515_v19 }
0x2515   :  { %v3357_v22 = vpop.xlane.xlu2 %3356 }
0x2516   :  { %v3361_v25 = vsub.f32 %v3353_v56, %v3357_v22 }
0x2517   :  { %v3437_v27 = vpop.xlane.xlu1 %3436 }
0x2518   :  { %v3363_v29 = vmul.f32 1.442695, %v3361_v25  ;;  %v3441_v31 = vsub.f32 %v3433_v58, %v3437_v27 }
0x251a   :  { %4355 = vpow2.f32 %v3363_v29  ;;  %v3443_v32 = vmul.f32 1.442695, %v3441_v31 }
0x251c   :  { %4357 = vpow2.f32 %v3443_v32 }
0x251f   :  { %v3295_v30 = vpop.xlane.xlu1 %3294  ;;  %v3440_v26 = vpop.xlane.xlu2 %3439 }
0x2520   :  { %v4356_v34 = vpop.eup %4355  ;;  %4359 = vrcp.f32 %v3295_v30  ;;  %v3442_v52 = vsub.f32 %v5884_v1, %v3440_v26  ;;  %v3459_v1 = vpop.permute.xlu0 %3458 }
0x2521   :  { %v3367_v14 = vsel %vm620_vm4, %v4356_v34, 0.0 }
0x2522   :  { %3368 = vadd.xlane.f32.xlu1 %v3367_v14  ;;  %v5898_v35 = vpop.eup %4357  ;;  %v3445_v55 = vmul.f32 1.442695, %v3442_v52 }
0x2523   :  { %v3447_v45 = vsel %vm620_vm4, %v5898_v35, 0.0 }
0x2526   :  { %v4360_v38 = vpop.eup %4359 }
0x2527   :  { %v3360_v24 = vpop.xlane.xlu1 %3359  ;;  %v3298_v20 = vpop.xlane.xlu2 %3297  ;;  %v3301_v40 = vmul.f32 %v4360_v38, %v4352_v0 }
0x2528   :  { %v3362_v46 = vsub.f32 %v3354_v60, %v3360_v24  ;;  %4361 = vrcp.f32 %v3298_v20  ;;  %v4057_v24 = vld [vmem:[#allocation32 + $0x8] sm:$0xff]  ;;  %v4056_v20 = vld [vmem:[#allocation32] sm:$0xff] }
0x2529   :  { %3595 = vmatpush.bf16.msra.mxu0 %v4057_v24 }
0x252a   :  { %v3365_v37 = vmul.f32 1.442695, %v3362_v46  ;;  %3448 = vadd.xlane.f32.xlu1 %v3447_v45 }
0x252c   :  { %4363 = vpow2.f32 %v3365_v37 }
0x252d   :  { %3596 = vmatpush.bf16.msra.mxu0 %v4056_v20 }
0x252e   :  { %v4362_v39 = vpop.eup %4361 }
0x252f   :  { %v3302_v21 = vmul.f32 %v4362_v39, %v4354_v18  ;;  %v3520_v50 = vpop.xlane.xlu2 %3519 }
0x2530   :  { %v3522_v43 = vsub.f32 %v3514_v13, %v3520_v50 }
0x2531   :  { %v3303_v42 = vpack.c.bf16 %v3302_v21, %v3301_v40  ;;  %v4059_v21 = vld [vmem:[#allocation33 + $0x8] sm:$0xff] }
0x2532   :  { %v4364_v33 = vpop.eup %4363  ;;  %v3525_v47 = vmul.f32 1.442695, %v3522_v43 }
0x2533   :  { %v3370_v28 = vsel %vm620_vm4, %v4364_v33, 0.0 }
0x2534   :  { %3371 = vadd.xlane.f32.xlu2 %v3370_v28  ;;  %4365 = vpow2.f32 %v3525_v47  ;;  %v4187_v28 = vld [vmem:[%s5160_s12] ss:$0 sm:$0xff]  ;;  %s3651_s12 = sshll.u32 %s5175_s27, 4  ;;  %s3652_s12 = int_to_ptr.hbm [resolvable:$true] %s3651_s12 }
0x253a   :  { %v4366_v56 = vpop.eup %4365 }
0x253b   :  { %v3530_v57 = vsel %vm620_vm4, %v4366_v56, 0.0 }
0x253f   :  { %v3379_v41 = vpop.permute.xlu1 %3378 }
0x2540   :  { %3391 = vmatpush.bf16.msrb.mxu3 %v3379_v41 }
0x254c   :  { %3305 = vrot.lane.b32.xlu2 %v5876_v49, %s4973_s26  ;;  %s4875_s26 = sshra.s32 %s3652_s12, 4  ;;  %s4876_s26 = int_to_ptr.hbm [resolvable:$true] %s4875_s26 }
0x254d   :  { %s4877_s19 = scalar_lea.hbm %s4876_s26, 16  ;;  %p4880_p3 = scmp.lt.s32.totalorder %s4876_s26, %s5175_s27 }
0x254e   :  { %p4878_p2 = scmp.ne.s32.totalorder %s4876_s26, %s4877_s19 }
0x256a   :  { %v3517_v51 = vpop.xlane.xlu1 %3516 }
0x256b   :  { %v3521_v53 = vsub.f32 %v3513_v17, %v3517_v51 }
0x256d   :  { %v3523_v54 = vmul.f32 1.442695, %v3521_v53  ;;  %v4188_v53 = vld [vmem:[%s5170_s13] ss:$0 sm:$0xff]  ;;  %s4879_s13 = scalar_lea.hbm %s5175_s27, 16 }
0x256e   :  { %p4881_p4 = scmp.lt.s32.totalorder %s4879_s13, %s4877_s19 }
0x256f   :  { %4367 = vpow2.f32 %v3523_v54 }
0x2570   :  { %4369 = vpow2.f32 %v3445_v55  ;;  %p4882_p5 = por %p4881_p4, %p4880_p3 }
0x2572   :  { %p4883_p6 = pnand %p4882_p5, %p4878_p2 }
0x2575   :  { %v4368_v36 = vpop.eup %4367  ;;  %3531 = vadd.xlane.f32.xlu2 %v3530_v57 }
0x2576   :  { %v3527_v58 = vsel %vm620_vm4, %v4368_v36, 0.0  ;;  %v4370_v23 = vpop.eup %4369 }
0x2577   :  { %3528 = vadd.xlane.f32.xlu1 %v3527_v58  ;;  %v3450_v44 = vsel %vm620_vm4, %v4370_v23, 0.0 }
0x257d   :  { %3451 = vadd.xlane.f32.xlu2 %v3450_v44 }
0x2590   :  { %3538 = vrot.lane.b32.xlu1 %v5876_v49, %s4985_s0 }
0x2595   :  { %v3369_v48 = vpop.xlane.xlu1 %3368 }
0x2596   :  { %4371 = vrcp.f32 %v3369_v48 }
0x259c   :  { %v4372_v6 = vpop.eup %4371 }
0x259d   :  { %v3375_v63 = vmul.f32 %v4372_v6, %v4356_v34  ;;  %v3449_v3 = vpop.xlane.xlu1 %3448 }
0x25a7   :  { %v3372_v61 = vpop.xlane.xlu2 %3371 }
0x25a8   :  { %4373 = vrcp.f32 %v3372_v61 }
0x25a9   :  { %4375 = vrcp.f32 %v3449_v3 }
0x25ae   :  { %v4374_v62 = vpop.eup %4373 }
0x25af   :  { %v3376_v0 = vmul.f32 %v4374_v62, %v4364_v33  ;;  %v3306_v7 = vpop.permute.xlu2 %3305  ;;  %v4376_v60 = vpop.eup %4375 }
0x25b0   :  { %3318 = vmatpush.bf16.msrb.mxu1 %v3306_v7  ;;  %v3455_v10 = vmul.f32 %v4376_v60, %v5898_v35 }
0x25b1   :  { %v3377_v2 = vpack.c.bf16 %v3376_v0, %v3375_v63 }
0x25b3   :  { %3985 = vmatmul.msk.bf16.vlgmr.msrb.gmra.mxu1 %vm620_vm4, %v3303_v42  ;;  %3987 = vmatmul.msk.bf16.vlgmr.msrb.gmra.mxu3 %vm620_vm4, %v3377_v2  ;;  %v4058_v42 = vld [vmem:[#allocation33] sm:$0xff] }
0x25b4   :  { %3471 = vmatpush.bf16.msra.mxu1 %v3459_v1 }
0x25b8   :  { %3635 = vmatpush.bf16.msrb.mxu1 %v4059_v21 }
0x25bc   :  { %3636 = vmatpush.bf16.msrb.mxu1 %v4058_v42 }
0x25e8   :  { %v3532_v4 = vpop.xlane.xlu2 %3531 }
0x25ea   :  { %v3529_v9 = vpop.xlane.xlu1 %3528 }
0x25f0   :  { %v3452_v49 = vpop.xlane.xlu2 %3451 }
0x25f1   :  { %4377 = vrcp.f32 %v3452_v49 }
0x25f2   :  { %4379 = vrcp.f32 %v3529_v9 }
0x25f3   :  { %4381 = vrcp.f32 %v3532_v4 }
0x25f7   :  { %v4378_v18 = vpop.eup %4377 }
0x25f8   :  { %v3456_v5 = vmul.f32 %v4378_v18, %v4370_v23  ;;  %v4380_v11 = vpop.eup %4379 }
0x25f9   :  { %v4382_v13 = vpop.eup %4381  ;;  %v3535_v15 = vmul.f32 %v4380_v11, %v4368_v36 }
0x25fa   :  { %v3457_v8 = vpack.c.bf16 %v3456_v5, %v3455_v10  ;;  %v3536_v16 = vmul.f32 %v4382_v13, %v4366_v56 }
0x25fc   :  { %3989 = vmatmul.msk.bf16.vlgmr.msra.gmra.mxu1 %vm620_vm4, %v3457_v8  ;;  %v3537_v19 = vpack.c.bf16 %v3536_v16, %v3535_v15 }
0x2602   :  { %v3539_v17 = vpop.permute.xlu1 %3538 }
0x2603   :  { %3551 = vmatpush.bf16.msra.mxu3 %v3539_v17 }
0x2606   :  { %3991 = vmatmul.msk.bf16.vlgmr.msra.gmra.mxu3 %vm620_vm4, %v3537_v19 }
0x2630   :  { %v3320_v22 = vpop.f32.mrf.mxu1 }
0x2631   :  { %3325 = vst.msk [vmem:[#allocation2] sm:$0xff] %vm594_vm2, %v3320_v22 }
0x2636   :  { %v3393_v25 = vpop.f32.mrf.mxu3 }
0x2637   :  { %3400 = vrot.lane.b32.xlu2 %v3393_v25, %s4949_s15 }
0x2638   :  { %v3322_v27 = vpop.f32.mrf.mxu1 }
0x2639   :  { %3326 = vst.msk [vmem:[#allocation2 + $0x8] sm:$0xff] %vm594_vm2, %v3322_v27 }
0x263e   :  { %v3395_v29 = vpop.f32.mrf.mxu3 }
0x263f   :  { %3402 = vrot.lane.b32.xlu0 %v3395_v29, %s4949_s15 }
0x2679   :  { %v3473_v31 = vpop.f32.mrf.mxu1 }
0x267a   :  { %3480 = vrot.lane.b32.xlu1 %v3473_v31, %s4951_s2 }
0x2681   :  { %v3475_v32 = vpop.f32.mrf.mxu1 }
0x2682   :  { %3482 = vrot.lane.b32.xlu2 %v3475_v32, %s4951_s2  ;;  %s4986_s2 = smov [#allocation35]  }
0x2683   :  { %s3649_s20 = sshll.u32 %s4986_s2, 4  ;;  %s3650_s20 = int_to_ptr.vmem [resolvable:$true] %s3649_s20 }
0x2689   :  { %v3553_v30 = vpop.f32.mrf.mxu3 }
0x268a   :  { %3560 = vrot.lane.b32.xlu0 %v3553_v30, %s4981_s6 }
0x2691   :  { %v3555_v26 = vpop.f32.mrf.mxu3  ;;  %v3401_v34 = vpop.permute.xlu2 %3400 }
0x2692   :  { %3406 = vst.msk [vmem:[#allocation2] sm:$0xff] %vm745_vm8, %v3401_v34  ;;  %3562 = vrot.lane.b32.xlu1 %v3555_v26, %s4981_s6 }
0x26b1   :  { %v3403_v14 = vpop.permute.xlu0 %3402 }
0x26b2   :  { %3407 = vst.msk [vmem:[#allocation2 + $0x8] sm:$0xff] %vm745_vm8, %v3403_v14 }
0x26dc   :  { %v3483_v35 = vpop.permute.xlu2 %3482 }
0x26dd   :  { %3487 = vst.msk [vmem:[#allocation2 + $0x8] sm:$0xff] %vm826_vm9, %v3483_v35 }
0x26ec   :  { %v3481_v46 = vpop.permute.xlu1 %3480 }
0x26ed   :  { %3486 = vst.msk [vmem:[#allocation2] sm:$0xff] %vm826_vm9, %v3481_v46 }
0x26fc   :  { %v3561_v45 = vpop.permute.xlu0 %3560 }
0x26fd   :  { %3566 = vst.msk [vmem:[#allocation2] sm:$0xff] %vm907_vm10, %v3561_v45 }
0x2704   :  { %v3563_v37 = vpop.permute.xlu1 %3562  ;;  %v3568_v38 = vld [vmem:[#allocation2] sm:$0xff] }
0x2705   :  { %3567 = vst.msk [vmem:[#allocation2 + $0x8] sm:$0xff] %vm907_vm10, %v3563_v37 }
0x270c   :  { %v3569_v39 = vld [vmem:[#allocation2 + $0x8] sm:$0xff] }
0x270d   :  { %v3570_v40 = vpack.c.bf16 %v3569_v39, %v3568_v38 }
0x270f   :  { %4000 = vmatmul.msk.bf16.vlgmr.msra.gmra.mxu0 %vm529_vm0, %v3570_v40 }
0x278c   :  { %v3598_v33 = vpop.f32.mrf.mxu0 }
0x278d   :  { %v3599_v41 = vadd.f32 %v4187_v28, %v3598_v33 }
0x278f   :  { %v3603_v47 = vadd.f32 %v3599_v41, %v5851_v12 }
0x2794   :  { %v3600_v50 = vpop.f32.mrf.mxu0 }
0x2795   :  { %v3601_v43 = vadd.f32 %v4187_v28, %v3600_v50 }
0x2797   :  { %v3604_v51 = vadd.f32 %v3601_v43, %v5853_v59 }
0x2799   :  { %v3609_v52 = vpack.c.bf16 %v3604_v51, %v3603_v47 }
0x279b   :  { %4009 = vmatmul.msk.bf16.vlgmr.msrb.gmra.mxu1 %vm529_vm0, %v3609_v52 }
0x2818   :  { %v3638_v54 = vpop.f32.mrf.mxu1 }
0x2819   :  { %v3639_v55 = vadd.f32 %v4188_v53, %v3638_v54 }
0x281b   :  { %3643 = vst.msk [vmem:[#allocation35] sm:$0xff] %vm529_vm0, %v3639_v55 }
0x2820   :  { %v3640_v56 = vpop.f32.mrf.mxu1 }
0x2821   :  { %v3641_v57 = vadd.f32 %v4188_v53, %v3640_v56 }
0x2823   :  { %3644 = vst.msk [vmem:[#allocation35 + $0x8] sm:$0xff] %vm529_vm0, %v3641_v57 }
0x2824   :  { %4886 = shalt.err (!%p4883_p6)
}
0x2825   :  { %3657 = dma.vmem_to_hbm [thread:$0]  %s3650_s20, 256, %s3652_s12, [#allocation5], %s4948_s11, %s4948_s11, %s4949_s15  }
0x2826   :  { %4909 = dma.done.wait [#allocation5], 256  }
0x2827   :  { %4910 = vsyncadd [#allocation5], 4294967040 }
0x2828   :  { %3662 = vsyncpa [#allocation4], 1 }
0x2829   :  { %3663 = vsyncpa [#allocation7], 1 }
0x282a   :  { %3664 = vsyncpa [#allocation10], 1 }
0x282b   :  { %3665 = vsyncpa [#allocation13], 1 }
0x282c   :  { %3666 = vsyncpa [#allocation16], 1 }
0x282d   :  { %3667 = vsyncpa [#allocation19], 1 }
0x282e   :  { %3668 = vsyncpa [#allocation22], 1 }
0x282f   :  { %3669 = vsyncpa [#allocation25], 1 }
0x2830   :  { %3670 = vsyncpa [#allocation28], 1 }
0x2831   :  { %3671 = vsyncpa [#allocation31], 1 }
0x2832   :  { %3672 = vsyncpa [#allocation34], 1 }
0x2833   :  { %3673 = vsyncpa [#allocation5], 1 }

</bundles_post_ra>
